<compile_context>
chip_gen: v7x
topology: tpu7x:2x2x1
jax: 0.10.0
libtpu: 0.0.40
codegen_flags: <defaults>
</compile_context>

<pallas_src>
import functools

import jax
import jax.numpy as jnp
from jax import lax
from jax.experimental import pallas as pl
from jax.experimental.pallas import tpu as pltpu

EPS = 1e-5  # torch.nn.GroupNorm default eps


def residual_block_kernel(x_ref, w1_ref, b1_ref, g1_ref, bt1_ref,
                          w2_ref, b2_ref, g2_ref, bt2_ref,
                          o_ref, *, H, W, C):
    n = H * W

    # Boundary masks for the reflect padding, built once from a 2-D iota.
    idx = lax.broadcasted_iota(jnp.int32, (n, 1), 0)
    col = idx % W
    is_c0 = col == 0                   # output col 0   -> halo reads col 1
    is_cW = col == W - 1               # output col W-1 -> halo reads col W-2
    is_r0 = idx < W                    # output row 0   -> halo reads row 1
    is_rH = idx >= n - W               # output row H-1 -> halo reads row H-2

    # Lane parity mask for the size-2 group averaging in GroupNorm.
    lane = lax.broadcasted_iota(jnp.int32, (2, C), 1)
    lane_even = (lane & 1) == 0

    def shift(v, k):
        # result[p] = v[(p - k) % rows]; wrapped rows are masked out by callers.
        return pltpu.roll(v, k % v.shape[0], axis=0)

    def conv3x3(inp, w_ref, b_ref):
        """3x3 reflect-padded conv: inp (H*W, C), w_ref (9*C, C), b_ref (1, C)."""
        dn = shift(inp, 1)             # reads column j-1
        up = shift(inp, -1)            # reads column j+1
        t0 = jnp.where(is_c0, up, dn)  # kw=0 tap, left edge reflected
        t2 = jnp.where(is_cW, dn, up)  # kw=2 tap, right edge reflected
        cat = jnp.concatenate([t0, inp, t2], axis=1)          # (H*W, 3C)
        cat_up = shift(cat, -W)        # reads row i+1 (computed once, reused)
        cat_dn = shift(cat, W)         # reads row i-1 (computed once, reused)
        r0 = jnp.where(is_r0, cat_up, cat_dn)                 # kh=0 rows
        r2 = jnp.where(is_rH, cat_dn, cat_up)                 # kh=2 rows
        cat9 = jnp.concatenate([r0, cat, r2], axis=1)         # (H*W, 9C)
        # Single fat-K matmul: K reduction done inside the MXU (no VMEM acc).
        return jnp.dot(cat9, w_ref[...],
                       preferred_element_type=jnp.float32) + b_ref[...]

    def group_norm(y, gamma_ref, beta_ref):
        # One-pass per-channel stats, then size-2 group averaging via a lane
        # roll + parity select (every channel in a group sees the same number
        # of spatial elements, so averaging the per-channel stats is exact).
        mean_c = jnp.mean(y, axis=0, keepdims=True)            # (1, C)
        msq_c = jnp.mean(y * y, axis=0, keepdims=True)         # (1, C)
        stats = jnp.concatenate([mean_c, msq_c], axis=0)       # (2, C)
        partner = jnp.where(lane_even,
                            pltpu.roll(stats, C - 1, axis=1),  # v[i+1]
                            pltpu.roll(stats, 1, axis=1))      # v[i-1]
        stats_g = 0.5 * (stats + partner)
        mean_g = stats_g[0:1, :]
        var_g = jnp.maximum(stats_g[1:2, :] - mean_g * mean_g, 0.0)
        return ((y - mean_g) * lax.rsqrt(var_g + EPS)
                * gamma_ref[...] + beta_ref[...])

    # ConvBlock 1: conv -> GroupNorm -> ReLU
    y1 = group_norm(conv3x3(x_ref[0], w1_ref, b1_ref), g1_ref, bt1_ref)
    y1 = jnp.maximum(y1, 0.0)
    # ConvBlock 2 (no act) fused with the residual add (x re-read from VMEM).
    y2 = group_norm(conv3x3(y1, w2_ref, b2_ref), g2_ref, bt2_ref)
    o_ref[0] = x_ref[0] + y2


def residual_block(x, params):
    """x: (N, H, W, C) float32 -> (N, H, W, C) float32."""
    N, H, W, C = x.shape

    x_flat = x.reshape(N, H * W, C)            # free metadata reshape
    w1 = params["w1"].reshape(9 * C, C)        # rows ordered (kh, kw, cin)
    w2 = params["w2"].reshape(9 * C, C)

    img_spec = pl.BlockSpec((1, H * W, C), lambda n: (n, 0, 0))
    w_spec = pl.BlockSpec((9 * C, C), lambda n: (0, 0))
    v_spec = pl.BlockSpec((1, C), lambda n: (0, 0))

    out_flat = pl.pallas_call(
        functools.partial(residual_block_kernel, H=H, W=W, C=C),
        out_shape=jax.ShapeDtypeStruct((N, H * W, C), jnp.float32),
        grid_spec=pltpu.PrefetchScalarGridSpec(
            num_scalar_prefetch=0,
            grid=(N,),
            in_specs=[img_spec, w_spec, v_spec, v_spec, v_spec,
                      w_spec, v_spec, v_spec, v_spec],
            out_specs=img_spec),
        compiler_params=pltpu.CompilerParams(
            dimension_semantics=("parallel",)),
    )(x_flat, w1, params["b1"], params["g1"], params["bt1"],
      w2, params["b2"], params["g2"], params["bt2"])
    return out_flat.reshape(N, H, W, C)


def residual_block_reference(x, params):
    """Pure-JAX reference (mirrors the PyTorch module semantics)."""
    C = x.shape[-1]
    G = C // 2

    def conv(xin, w, b):
        xp = jnp.pad(xin, ((0, 0), (1, 1), (1, 1), (0, 0)), mode="reflect")
        y = jax.lax.conv_general_dilated(
            xp, w, window_strides=(1, 1), padding="VALID",
            dimension_numbers=("NHWC", "HWIO", "NHWC"))
        return y + b.reshape(1, 1, 1, -1)

    def group_norm(y, gamma, beta):
        N, H, W, Cc = y.shape
        yg = y.reshape(N, H, W, G, Cc // G)
        mean = jnp.mean(yg, axis=(1, 2, 4), keepdims=True)
        var = jnp.mean((yg - mean) ** 2, axis=(1, 2, 4), keepdims=True)
        yn = ((yg - mean) * jax.lax.rsqrt(var + EPS)).reshape(N, H, W, Cc)
        return yn * gamma.reshape(1, 1, 1, -1) + beta.reshape(1, 1, 1, -1)

    y = jax.nn.relu(group_norm(conv(x, params["w1"], params["b1"]),
                               params["g1"], params["bt1"]))
    y = group_norm(conv(y, params["w2"], params["b2"]),
                   params["g2"], params["bt2"])
    return x + y


if __name__ == "__main__":
    N, H, W = 2, 16, 16
    C = 128  # base_channels (lane-aligned for the TPU kernel)

    key = jax.random.PRNGKey(0)
    k = jax.random.split(key, 5)
    x = jax.random.normal(k[0], (N, H, W, C), jnp.float32)
    params = {
        "w1": jax.random.normal(k[1], (3, 3, C, C), jnp.float32) * 0.05,
        "b1": jax.random.normal(k[2], (1, C), jnp.float32) * 0.05,
        "g1": jnp.ones((1, C), jnp.float32),    # GroupNorm weight init = 1
        "bt1": jnp.zeros((1, C), jnp.float32),  # GroupNorm bias init = 0
        "w2": jax.random.normal(k[3], (3, 3, C, C), jnp.float32) * 0.05,
        "b2": jax.random.normal(k[4], (1, C), jnp.float32) * 0.05,
        "g2": jnp.ones((1, C), jnp.float32),
        "bt2": jnp.zeros((1, C), jnp.float32),
    }

    out = jax.block_until_ready(residual_block(x, params))
    ref = jax.block_until_ready(residual_block_reference(x, params))

    assert out.shape == x.shape and out.dtype == x.dtype
    max_err = float(jnp.max(jnp.abs(out - ref)))
    # Tolerance accounts for MXU f32 accumulation-order/precision differences
    # vs. XLA's conv lowering and the one-pass GroupNorm variance.
    assert max_err < 1e-2, f"max abs error {max_err}"
    print("KERNEL_OK")
</pallas_src>

<mosaic_0001>
module attributes {stable_mosaic.version = 11 : i64} {
  func.func @residual_block_kernel(%arg0: i32, %arg1: memref<1x256x128xf32, #tpu.memory_space<vmem>>, %arg2: memref<1152x128xf32, #tpu.memory_space<vmem>>, %arg3: memref<1x128xf32, #tpu.memory_space<vmem>>, %arg4: memref<1x128xf32, #tpu.memory_space<vmem>>, %arg5: memref<1x128xf32, #tpu.memory_space<vmem>>, %arg6: memref<1152x128xf32, #tpu.memory_space<vmem>>, %arg7: memref<1x128xf32, #tpu.memory_space<vmem>>, %arg8: memref<1x128xf32, #tpu.memory_space<vmem>>, %arg9: memref<1x128xf32, #tpu.memory_space<vmem>>, %arg10: memref<1x256x128xf32, #tpu.memory_space<vmem>>) attributes {dimension_semantics = [#tpu.dimension_semantics<parallel>], iteration_bounds = array<i64: 2>, scalar_prefetch = 0 : i64, scratch_operands = 0 : i64, tpu.core_type = #tpu.core_type<tc>, window_params = [{transform_indices = @transform_0, window_bounds = array<i64: 1, 256, 128>}, {pipeline_mode = #tpu.pipeline_mode<synchronous>, transform_indices = @transform_1, window_bounds = array<i64: 1152, 128>}, {pipeline_mode = #tpu.pipeline_mode<synchronous>, transform_indices = @transform_2, window_bounds = array<i64: 1, 128>}, {pipeline_mode = #tpu.pipeline_mode<synchronous>, transform_indices = @transform_3, window_bounds = array<i64: 1, 128>}, {pipeline_mode = #tpu.pipeline_mode<synchronous>, transform_indices = @transform_4, window_bounds = array<i64: 1, 128>}, {pipeline_mode = #tpu.pipeline_mode<synchronous>, transform_indices = @transform_5, window_bounds = array<i64: 1152, 128>}, {pipeline_mode = #tpu.pipeline_mode<synchronous>, transform_indices = @transform_6, window_bounds = array<i64: 1, 128>}, {pipeline_mode = #tpu.pipeline_mode<synchronous>, transform_indices = @transform_7, window_bounds = array<i64: 1, 128>}, {pipeline_mode = #tpu.pipeline_mode<synchronous>, transform_indices = @transform_8, window_bounds = array<i64: 1, 128>}, {transform_indices = @transform_9, window_bounds = array<i64: 1, 256, 128>}]} {
    %0 = tpu.iota {dimensions = array<i32: 0>} : vector<256x1xi32>
    %c16_i32 = arith.constant 16 : i32
    %c0_i32 = arith.constant 0 : i32
    %1 = arith.cmpi eq, %c16_i32, %c0_i32 : i32
    %c1_i32 = arith.constant 1 : i32
    %2 = arith.select %1, %c1_i32, %c16_i32 : i32
    %3 = vector.broadcast %2 : i32 to vector<256x1xi32>
    %4 = arith.remsi %0, %3 : vector<256x1xi32>
    %c0_i32_0 = arith.constant 0 : i32
    %5 = vector.broadcast %c0_i32_0 : i32 to vector<256x1xi32>
    %6 = arith.cmpi ne, %4, %5 : vector<256x1xi32>
    %c0_i32_1 = arith.constant 0 : i32
    %7 = vector.broadcast %c0_i32_1 : i32 to vector<256x1xi32>
    %8 = arith.cmpi slt, %4, %7 : vector<256x1xi32>
    %c0_i32_2 = arith.constant 0 : i32
    %9 = arith.cmpi slt, %2, %c0_i32_2 : i32
    %10 = vector.broadcast %9 : i1 to vector<256x1xi1>
    %11 = vector.broadcast %10 : vector<256x1xi1> to vector<256x1xi1>
    %12 = arith.xori %8, %11 : vector<256x1xi1>
    %13 = arith.andi %12, %6 : vector<256x1xi1>
    %14 = vector.broadcast %2 : i32 to vector<256x1xi32>
    %15 = arith.addi %4, %14 : vector<256x1xi32>
    %16 = arith.select %13, %15, %4 : vector<256x1xi1>, vector<256x1xi32>
    %c0_i32_3 = arith.constant 0 : i32
    %17 = vector.broadcast %c0_i32_3 : i32 to vector<256x1xi32>
    %18 = arith.cmpi eq, %16, %17 : vector<256x1xi32>
    %c15_i32 = arith.constant 15 : i32
    %19 = vector.broadcast %c15_i32 : i32 to vector<256x1xi32>
    %20 = arith.cmpi eq, %16, %19 : vector<256x1xi32>
    %c16_i32_4 = arith.constant 16 : i32
    %21 = vector.broadcast %c16_i32_4 : i32 to vector<256x1xi32>
    %22 = arith.cmpi slt, %0, %21 : vector<256x1xi32>
    %c240_i32 = arith.constant 240 : i32
    %23 = vector.broadcast %c240_i32 : i32 to vector<256x1xi32>
    %24 = arith.cmpi sge, %0, %23 : vector<256x1xi32>
    %25 = tpu.iota {dimensions = array<i32: 1>} : vector<2x128xi32>
    %c1_i32_5 = arith.constant 1 : i32
    %26 = vector.broadcast %c1_i32_5 : i32 to vector<2x128xi32>
    %27 = arith.andi %25, %26 : vector<2x128xi32>
    %c0_i32_6 = arith.constant 0 : i32
    %28 = vector.broadcast %c0_i32_6 : i32 to vector<2x128xi32>
    %29 = arith.cmpi eq, %27, %28 : vector<2x128xi32>
    %c0 = arith.constant 0 : index
    %c0_7 = arith.constant 0 : index
    %c0_8 = arith.constant 0 : index
    %30 = vector.load %arg1[%c0, %c0_7, %c0_8] : memref<1x256x128xf32, #tpu.memory_space<vmem>>, vector<1x256x128xf32>
    %31 = vector.shape_cast %30 : vector<1x256x128xf32> to vector<256x128xf32>
    %c1_i32_9 = arith.constant 1 : i32
    %32 = tpu.dynamic_rotate %31 by %c1_i32_9 dim 0 : vector<256x128xf32>, i32 -> vector<256x128xf32>
    %c255_i32 = arith.constant 255 : i32
    %33 = tpu.dynamic_rotate %31 by %c255_i32 dim 0 : vector<256x128xf32>, i32 -> vector<256x128xf32>
    %34 = vector.shape_cast %18 : vector<256x1xi1> to vector<256x1xi1>
    %35 = vector.broadcast %34 : vector<256x1xi1> to vector<256x128xi1>
    %36 = arith.select %35, %33, %32 : vector<256x128xi1>, vector<256x128xf32>
    %37 = vector.shape_cast %20 : vector<256x1xi1> to vector<256x1xi1>
    %38 = vector.broadcast %37 : vector<256x1xi1> to vector<256x128xi1>
    %39 = arith.select %38, %32, %33 : vector<256x128xi1>, vector<256x128xf32>
    %40 = tpu.concatenate %36, %31, %39 in 1 : vector<256x128xf32>, vector<256x128xf32>, vector<256x128xf32> -> vector<256x384xf32>
    %c240_i32_10 = arith.constant 240 : i32
    %41 = tpu.dynamic_rotate %40 by %c240_i32_10 dim 0 : vector<256x384xf32>, i32 -> vector<256x384xf32>
    %c16_i32_11 = arith.constant 16 : i32
    %42 = tpu.dynamic_rotate %40 by %c16_i32_11 dim 0 : vector<256x384xf32>, i32 -> vector<256x384xf32>
    %43 = vector.shape_cast %22 : vector<256x1xi1> to vector<256x1xi1>
    %44 = vector.broadcast %43 : vector<256x1xi1> to vector<256x384xi1>
    %45 = arith.select %44, %41, %42 : vector<256x384xi1>, vector<256x384xf32>
    %46 = vector.shape_cast %24 : vector<256x1xi1> to vector<256x1xi1>
    %47 = vector.broadcast %46 : vector<256x1xi1> to vector<256x384xi1>
    %48 = arith.select %47, %42, %41 : vector<256x384xi1>, vector<256x384xf32>
    %49 = tpu.concatenate %45, %40, %48 in 1 : vector<256x384xf32>, vector<256x384xf32>, vector<256x384xf32> -> vector<256x1152xf32>
    %c0_12 = arith.constant 0 : index
    %c0_13 = arith.constant 0 : index
    %50 = vector.load %arg2[%c0_12, %c0_13] : memref<1152x128xf32, #tpu.memory_space<vmem>>, vector<1152x128xf32>
    %cst = arith.constant dense<0.000000e+00> : vector<256x128xf32>
    %51 = tpu.matmul %49, %50, %cst {dimension_numbers = #tpu.dot_dimension_numbers<[1], [0], [0], [1], [0, 0, 1, 1], [], []>} : vector<256x1152xf32>, vector<1152x128xf32>, vector<256x128xf32> -> vector<256x128xf32>
    %c0_14 = arith.constant 0 : index
    %c0_15 = arith.constant 0 : index
    %52 = vector.load %arg3[%c0_14, %c0_15] : memref<1x128xf32, #tpu.memory_space<vmem>>, vector<1x128xf32>
    %53 = vector.broadcast %52 : vector<1x128xf32> to vector<256x128xf32>
    %54 = arith.addf %51, %53 : vector<256x128xf32>
    %cst_16 = arith.constant dense<0.000000e+00> : vector<128xf32>
    %55 = vector.multi_reduction <add>, %54, %cst_16 [0] : vector<256x128xf32> to vector<128xf32>
    %56 = vector.shape_cast %55 : vector<128xf32> to vector<1x128xf32>
    %cst_17 = arith.constant 2.560000e+02 : f32
    %57 = vector.broadcast %cst_17 : f32 to vector<1x128xf32>
    %58 = arith.divf %56, %57 : vector<1x128xf32>
    %59 = arith.mulf %54, %54 : vector<256x128xf32>
    %cst_18 = arith.constant dense<0.000000e+00> : vector<128xf32>
    %60 = vector.multi_reduction <add>, %59, %cst_18 [0] : vector<256x128xf32> to vector<128xf32>
    %61 = vector.shape_cast %60 : vector<128xf32> to vector<1x128xf32>
    %cst_19 = arith.constant 2.560000e+02 : f32
    %62 = vector.broadcast %cst_19 : f32 to vector<1x128xf32>
    %63 = arith.divf %61, %62 : vector<1x128xf32>
    %64 = tpu.concatenate %58, %63 in 0 : vector<1x128xf32>, vector<1x128xf32> -> vector<2x128xf32>
    %c127_i32 = arith.constant 127 : i32
    %65 = tpu.dynamic_rotate %64 by %c127_i32 dim 1 : vector<2x128xf32>, i32 -> vector<2x128xf32>
    %c1_i32_20 = arith.constant 1 : i32
    %66 = tpu.dynamic_rotate %64 by %c1_i32_20 dim 1 : vector<2x128xf32>, i32 -> vector<2x128xf32>
    %67 = arith.select %29, %65, %66 : vector<2x128xi1>, vector<2x128xf32>
    %68 = arith.addf %64, %67 : vector<2x128xf32>
    %cst_21 = arith.constant 5.000000e-01 : f32
    %69 = vector.broadcast %cst_21 : f32 to vector<2x128xf32>
    %70 = arith.mulf %69, %68 : vector<2x128xf32>
    %71 = vector.extract_strided_slice %70 {offsets = [0, 0], sizes = [1, 128], strides = [1, 1]} : vector<2x128xf32> to vector<1x128xf32>
    %72 = vector.extract_strided_slice %70 {offsets = [1, 0], sizes = [1, 128], strides = [1, 1]} : vector<2x128xf32> to vector<1x128xf32>
    %73 = arith.mulf %71, %71 : vector<1x128xf32>
    %74 = arith.subf %72, %73 : vector<1x128xf32>
    %cst_22 = arith.constant 0.000000e+00 : f32
    %75 = vector.broadcast %cst_22 : f32 to vector<1x128xf32>
    %76 = arith.maximumf %74, %75 : vector<1x128xf32>
    %77 = vector.broadcast %71 : vector<1x128xf32> to vector<256x128xf32>
    %78 = arith.subf %54, %77 : vector<256x128xf32>
    %cst_23 = arith.constant 9.99999974E-6 : f32
    %79 = vector.broadcast %cst_23 : f32 to vector<1x128xf32>
    %80 = arith.addf %76, %79 : vector<1x128xf32>
    %81 = math.rsqrt %80 : vector<1x128xf32>
    %82 = vector.broadcast %81 : vector<1x128xf32> to vector<256x128xf32>
    %83 = arith.mulf %78, %82 : vector<256x128xf32>
    %c0_24 = arith.constant 0 : index
    %c0_25 = arith.constant 0 : index
    %84 = vector.load %arg4[%c0_24, %c0_25] : memref<1x128xf32, #tpu.memory_space<vmem>>, vector<1x128xf32>
    %85 = vector.broadcast %84 : vector<1x128xf32> to vector<256x128xf32>
    %86 = arith.mulf %83, %85 : vector<256x128xf32>
    %c0_26 = arith.constant 0 : index
    %c0_27 = arith.constant 0 : index
    %87 = vector.load %arg5[%c0_26, %c0_27] : memref<1x128xf32, #tpu.memory_space<vmem>>, vector<1x128xf32>
    %88 = vector.broadcast %87 : vector<1x128xf32> to vector<256x128xf32>
    %89 = arith.addf %86, %88 : vector<256x128xf32>
    %cst_28 = arith.constant 0.000000e+00 : f32
    %90 = vector.broadcast %cst_28 : f32 to vector<256x128xf32>
    %91 = arith.maximumf %89, %90 : vector<256x128xf32>
    %c1_i32_29 = arith.constant 1 : i32
    %92 = tpu.dynamic_rotate %91 by %c1_i32_29 dim 0 : vector<256x128xf32>, i32 -> vector<256x128xf32>
    %c255_i32_30 = arith.constant 255 : i32
    %93 = tpu.dynamic_rotate %91 by %c255_i32_30 dim 0 : vector<256x128xf32>, i32 -> vector<256x128xf32>
    %94 = vector.shape_cast %18 : vector<256x1xi1> to vector<256x1xi1>
    %95 = vector.broadcast %94 : vector<256x1xi1> to vector<256x128xi1>
    %96 = arith.select %95, %93, %92 : vector<256x128xi1>, vector<256x128xf32>
    %97 = vector.shape_cast %20 : vector<256x1xi1> to vector<256x1xi1>
    %98 = vector.broadcast %97 : vector<256x1xi1> to vector<256x128xi1>
    %99 = arith.select %98, %92, %93 : vector<256x128xi1>, vector<256x128xf32>
    %100 = tpu.concatenate %96, %91, %99 in 1 : vector<256x128xf32>, vector<256x128xf32>, vector<256x128xf32> -> vector<256x384xf32>
    %c240_i32_31 = arith.constant 240 : i32
    %101 = tpu.dynamic_rotate %100 by %c240_i32_31 dim 0 : vector<256x384xf32>, i32 -> vector<256x384xf32>
    %c16_i32_32 = arith.constant 16 : i32
    %102 = tpu.dynamic_rotate %100 by %c16_i32_32 dim 0 : vector<256x384xf32>, i32 -> vector<256x384xf32>
    %103 = vector.shape_cast %22 : vector<256x1xi1> to vector<256x1xi1>
    %104 = vector.broadcast %103 : vector<256x1xi1> to vector<256x384xi1>
    %105 = arith.select %104, %101, %102 : vector<256x384xi1>, vector<256x384xf32>
    %106 = vector.shape_cast %24 : vector<256x1xi1> to vector<256x1xi1>
    %107 = vector.broadcast %106 : vector<256x1xi1> to vector<256x384xi1>
    %108 = arith.select %107, %102, %101 : vector<256x384xi1>, vector<256x384xf32>
    %109 = tpu.concatenate %105, %100, %108 in 1 : vector<256x384xf32>, vector<256x384xf32>, vector<256x384xf32> -> vector<256x1152xf32>
    %c0_33 = arith.constant 0 : index
    %c0_34 = arith.constant 0 : index
    %110 = vector.load %arg6[%c0_33, %c0_34] : memref<1152x128xf32, #tpu.memory_space<vmem>>, vector<1152x128xf32>
    %cst_35 = arith.constant dense<0.000000e+00> : vector<256x128xf32>
    %111 = tpu.matmul %109, %110, %cst_35 {dimension_numbers = #tpu.dot_dimension_numbers<[1], [0], [0], [1], [0, 0, 1, 1], [], []>} : vector<256x1152xf32>, vector<1152x128xf32>, vector<256x128xf32> -> vector<256x128xf32>
    %c0_36 = arith.constant 0 : index
    %c0_37 = arith.constant 0 : index
    %112 = vector.load %arg7[%c0_36, %c0_37] : memref<1x128xf32, #tpu.memory_space<vmem>>, vector<1x128xf32>
    %113 = vector.broadcast %112 : vector<1x128xf32> to vector<256x128xf32>
    %114 = arith.addf %111, %113 : vector<256x128xf32>
    %cst_38 = arith.constant dense<0.000000e+00> : vector<128xf32>
    %115 = vector.multi_reduction <add>, %114, %cst_38 [0] : vector<256x128xf32> to vector<128xf32>
    %116 = vector.shape_cast %115 : vector<128xf32> to vector<1x128xf32>
    %cst_39 = arith.constant 2.560000e+02 : f32
    %117 = vector.broadcast %cst_39 : f32 to vector<1x128xf32>
    %118 = arith.divf %116, %117 : vector<1x128xf32>
    %119 = arith.mulf %114, %114 : vector<256x128xf32>
    %cst_40 = arith.constant dense<0.000000e+00> : vector<128xf32>
    %120 = vector.multi_reduction <add>, %119, %cst_40 [0] : vector<256x128xf32> to vector<128xf32>
    %121 = vector.shape_cast %120 : vector<128xf32> to vector<1x128xf32>
    %cst_41 = arith.constant 2.560000e+02 : f32
    %122 = vector.broadcast %cst_41 : f32 to vector<1x128xf32>
    %123 = arith.divf %121, %122 : vector<1x128xf32>
    %124 = tpu.concatenate %118, %123 in 0 : vector<1x128xf32>, vector<1x128xf32> -> vector<2x128xf32>
    %c127_i32_42 = arith.constant 127 : i32
    %125 = tpu.dynamic_rotate %124 by %c127_i32_42 dim 1 : vector<2x128xf32>, i32 -> vector<2x128xf32>
    %c1_i32_43 = arith.constant 1 : i32
    %126 = tpu.dynamic_rotate %124 by %c1_i32_43 dim 1 : vector<2x128xf32>, i32 -> vector<2x128xf32>
    %127 = arith.select %29, %125, %126 : vector<2x128xi1>, vector<2x128xf32>
    %128 = arith.addf %124, %127 : vector<2x128xf32>
    %cst_44 = arith.constant 5.000000e-01 : f32
    %129 = vector.broadcast %cst_44 : f32 to vector<2x128xf32>
    %130 = arith.mulf %129, %128 : vector<2x128xf32>
    %131 = vector.extract_strided_slice %130 {offsets = [0, 0], sizes = [1, 128], strides = [1, 1]} : vector<2x128xf32> to vector<1x128xf32>
    %132 = vector.extract_strided_slice %130 {offsets = [1, 0], sizes = [1, 128], strides = [1, 1]} : vector<2x128xf32> to vector<1x128xf32>
    %133 = arith.mulf %131, %131 : vector<1x128xf32>
    %134 = arith.subf %132, %133 : vector<1x128xf32>
    %cst_45 = arith.constant 0.000000e+00 : f32
    %135 = vector.broadcast %cst_45 : f32 to vector<1x128xf32>
    %136 = arith.maximumf %134, %135 : vector<1x128xf32>
    %137 = vector.broadcast %131 : vector<1x128xf32> to vector<256x128xf32>
    %138 = arith.subf %114, %137 : vector<256x128xf32>
    %cst_46 = arith.constant 9.99999974E-6 : f32
    %139 = vector.broadcast %cst_46 : f32 to vector<1x128xf32>
    %140 = arith.addf %136, %139 : vector<1x128xf32>
    %141 = math.rsqrt %140 : vector<1x128xf32>
    %142 = vector.broadcast %141 : vector<1x128xf32> to vector<256x128xf32>
    %143 = arith.mulf %138, %142 : vector<256x128xf32>
    %c0_47 = arith.constant 0 : index
    %c0_48 = arith.constant 0 : index
    %144 = vector.load %arg8[%c0_47, %c0_48] : memref<1x128xf32, #tpu.memory_space<vmem>>, vector<1x128xf32>
    %145 = vector.broadcast %144 : vector<1x128xf32> to vector<256x128xf32>
    %146 = arith.mulf %143, %145 : vector<256x128xf32>
    %c0_49 = arith.constant 0 : index
    %c0_50 = arith.constant 0 : index
    %147 = vector.load %arg9[%c0_49, %c0_50] : memref<1x128xf32, #tpu.memory_space<vmem>>, vector<1x128xf32>
    %148 = vector.broadcast %147 : vector<1x128xf32> to vector<256x128xf32>
    %149 = arith.addf %146, %148 : vector<256x128xf32>
    %c0_51 = arith.constant 0 : index
    %c0_52 = arith.constant 0 : index
    %c0_53 = arith.constant 0 : index
    %150 = vector.load %arg1[%c0_51, %c0_52, %c0_53] : memref<1x256x128xf32, #tpu.memory_space<vmem>>, vector<1x256x128xf32>
    %151 = vector.shape_cast %150 : vector<1x256x128xf32> to vector<256x128xf32>
    %152 = arith.addf %151, %149 : vector<256x128xf32>
    %c0_54 = arith.constant 0 : index
    %c0_55 = arith.constant 0 : index
    %c0_56 = arith.constant 0 : index
    %153 = vector.load %arg10[%c0_54, %c0_55, %c0_56] : memref<1x256x128xf32, #tpu.memory_space<vmem>>, vector<1x256x128xf32>
    %154 = vector.shape_cast %153 : vector<1x256x128xf32> to vector<256x128xf32>
    %155 = vector.shape_cast %152 : vector<256x128xf32> to vector<1x256x128xf32>
    tpu.vector_store %arg10[%c0_54, %c0_55, %c0_56], %155 {strides = array<i32>} : memref<1x256x128xf32, #tpu.memory_space<vmem>>, vector<1x256x128xf32>,
    return
  }
  func.func @transform_0(%arg0: i32) -> (i32, i32, i32) {
    %c0_i32 = arith.constant 0 : i32
    %c0_i32_0 = arith.constant 0 : i32
    %c0_i32_1 = arith.constant 0 : i32
    return %arg0, %c0_i32, %c0_i32_0 : i32, i32, i32
  }
  func.func @transform_1(%arg0: i32) -> (i32, i32) {
    %c0_i32 = arith.constant 0 : i32
    %c0_i32_0 = arith.constant 0 : i32
    %c0_i32_1 = arith.constant 0 : i32
    return %c0_i32, %c0_i32_0 : i32, i32
  }
  func.func @transform_2(%arg0: i32) -> (i32, i32) {
    %c0_i32 = arith.constant 0 : i32
    %c0_i32_0 = arith.constant 0 : i32
    %c0_i32_1 = arith.constant 0 : i32
    return %c0_i32, %c0_i32_0 : i32, i32
  }
  func.func @transform_3(%arg0: i32) -> (i32, i32) {
    %c0_i32 = arith.constant 0 : i32
    %c0_i32_0 = arith.constant 0 : i32
    %c0_i32_1 = arith.constant 0 : i32
    return %c0_i32, %c0_i32_0 : i32, i32
  }
  func.func @transform_4(%arg0: i32) -> (i32, i32) {
    %c0_i32 = arith.constant 0 : i32
    %c0_i32_0 = arith.constant 0 : i32
    %c0_i32_1 = arith.constant 0 : i32
    return %c0_i32, %c0_i32_0 : i32, i32
  }
  func.func @transform_5(%arg0: i32) -> (i32, i32) {
    %c0_i32 = arith.constant 0 : i32
    %c0_i32_0 = arith.constant 0 : i32
    %c0_i32_1 = arith.constant 0 : i32
    return %c0_i32, %c0_i32_0 : i32, i32
  }
  func.func @transform_6(%arg0: i32) -> (i32, i32) {
    %c0_i32 = arith.constant 0 : i32
    %c0_i32_0 = arith.constant 0 : i32
    %c0_i32_1 = arith.constant 0 : i32
    return %c0_i32, %c0_i32_0 : i32, i32
  }
  func.func @transform_7(%arg0: i32) -> (i32, i32) {
    %c0_i32 = arith.constant 0 : i32
    %c0_i32_0 = arith.constant 0 : i32
    %c0_i32_1 = arith.constant 0 : i32
    return %c0_i32, %c0_i32_0 : i32, i32
  }
  func.func @transform_8(%arg0: i32) -> (i32, i32) {
    %c0_i32 = arith.constant 0 : i32
    %c0_i32_0 = arith.constant 0 : i32
    %c0_i32_1 = arith.constant 0 : i32
    return %c0_i32, %c0_i32_0 : i32, i32
  }
  func.func @transform_9(%arg0: i32) -> (i32, i32, i32) {
    %c0_i32 = arith.constant 0 : i32
    %c0_i32_0 = arith.constant 0 : i32
    %c0_i32_1 = arith.constant 0 : i32
    return %arg0, %c0_i32, %c0_i32_0 : i32, i32, i32
  }
}

</mosaic_0001>

<bundles_post_ra>
// kernel: tpu_custom_call.1
= control target key start
LH: loop header
LB: loop body
LE: loop exit
PB: predicated region body
PF: predicated region fallthrough
CT: control target
= control target key end

     0   :  { %14 = vsyncpa [#allocation3], 0  ;;  %s10370_s0 = inlined_call_operand.hbm [shape: f32[2,256,128], index: 0, kind: input, shape index: {}]   ;;  %s10371_s1 = inlined_call_operand.hbm [shape: f32[1152,128], index: 1, kind: input, shape index: {}]   ;;  %s10372_s2 = inlined_call_operand.vmem [shape: f32[1,128], index: 2, kind: input, shape index: {}]   ;;  %s10373_s3 = inlined_call_operand.vmem [shape: f32[1,128], index: 3, kind: input, shape index: {}]   ;;  %s10374_s4 = inlined_call_operand.vmem [shape: f32[1,128], index: 4, kind: input, shape index: {}]   ;;  %s10375_s5 = inlined_call_operand.hbm [shape: f32[1152,128], index: 5, kind: input, shape index: {}]   ;;  %s10376_s6 = inlined_call_operand.vmem [shape: f32[1,128], index: 6, kind: input, shape index: {}]   ;;  %s10377_s7 = inlined_call_operand.vmem [shape: f32[1,128], index: 7, kind: input, shape index: {}]   ;;  %s10378_s8 = inlined_call_operand.vmem [shape: f32[1,128], index: 8, kind: input, shape index: {}]   ;;  %s10379_s9 = inlined_call_operand.hbm [shape: f32[2,256,128], index: 9, kind: output, shape index: {}]  }
   0x1   :  { %16 = vsyncpa [#allocation3 + $0x1], 0 }
   0x2   :  { %17 = vsyncpa [#allocation6], 0 }
   0x3   :  { %18 = vsyncpa [#allocation4], 0 }
   0x4   :  { %20 = vsyncpa [#allocation4 + $0x1], 0  ;;  %s6845_s30 = smov 0   ;;  %s6847_s10 = smov 0  }
   0x5   :  { %s6849_s11 = smov 0   ;;  %s6851_s12 = smov 0  }
   0x6 LB: > { %s6866_s13 = sadd.s32 4294967295, %s6782_s12   ;;  %s5291_s14 = sadd.s32 4294967294, %s6782_s12   ;;  %s6782_s12 = sphi %s6851_s12, %s11271_s12   ;;  %s6778_s11 = sphi %s6849_s11, %s11270_s11   ;;  %s6774_s10 = sphi %s6847_s10, %s11269_s10   ;;  %s6770_s30 = sphi %s6845_s30, %s11268_s30  }
   0x7   : > { %p46_p0 = scmp.ne.s32.totalorder %s6774_s10, %s6770_s30  ;;  %p10380_p1 = scmp.eq.s32.totalorder %s6866_s13, 0 }
   0x8   : > { %p244_p3 = scmp.eq.s32.totalorder %s5291_s14, 1  ;;  %p5292_p5 = scmp.ge.s32.totalorder %s6782_s12, 1 }
   0x9   : > { %p6875_p4 = por %p10380_p1, %p46_p0  ;;  %p251_p7 = scmp.lt.s32.totalorder %s6782_s12, 3 }
   0xa   : > { %p6880_p6 = por %p244_p3, %p46_p0  ;;  %s6784_s18 = smov [#allocation5]  }
   0xb   : > { %s10656_s15 = scalar_select %p6875_p4, 1, 0 }
   0xc   : > { %s10657_s16 = scalar_select %p6880_p6, 1, 0 }
   0xd   : > { %p6885_p8 = pnand %p5292_p5, %p251_p7  ;;  %s263_s19 = sshll.u32 %s6784_s18, 4  ;;  %s6889_s19 = int_to_ptr.vmem [resolvable:$true] %s263_s19 }
   0xe   : > { %10658 = sst [smem:[#allocation12_spill]] %s10657_s16  ;;  %s6785_s21 = smov [#allocation7]  }
   0xf   : > { %p6497_p9 = pneg %p6885_p8  ;;  %s285_s22 = sshll.u32 %s6785_s21, 4  ;;  %s6900_s22 = int_to_ptr.vmem [resolvable:$true] %s285_s22 }
  0x10   : > { %s6626_s25 = scalar_lea.hbm %s10371_s1, 18432 }
  0x11   : > { %p6896_p11 = pnand %p6497_p9, %p10380_p1  ;;  %p6627_p12 = scmp.ne.s32.totalorder %s10371_s1, %s6626_s25 }
  0x12   : > { %p6633_p5 = scmp.lt.u32.totalorder %s6626_s25, %s10371_s1 }
  0x13   : > { %p6628_p13 = pneg %p6896_p11 }
  0x15   : > { %p6629_p0 = pnand %p6628_p13, %p6627_p12 }
  0x17   : > { %p6630_p3 = pneg %p6629_p0 }
  0x19   : > { %p6635_p7 = pnand %p6633_p5, %p6630_p3 }
  0x1b   : > { %6638 = shalt.err (!%p6635_p7)
}
  0x1c   : > { %s6639_s14 = scalar_lea.vmem %s6889_s19, 18432  ;;  %p6647_p2 = scmp.lt.s32.totalorder %s6889_s19, %s6889_s19 }
  0x1d   : > { %p6640_p9 = scmp.ne.s32.totalorder %s6889_s19, %s6639_s14  ;;  %p6648_p12 = scmp.lt.s32.totalorder %s6639_s14, %s6639_s14 }
  0x1f   : > { %p6642_p10 = pnand %p6640_p9, %p6628_p13  ;;  %p6649_p0 = por %p6648_p12, %p6647_p2 }
  0x21   : > { %p6643_p1 = pneg %p6642_p10 }
  0x23   : > { %p6650_p6 = pnand %p6649_p0, %p6643_p1 }
  0x25   : > { %6653 = shalt.err (!%p6650_p6)
}
  0x26   : > { %s10382_s18 = smov 128   ;;  %s10383_s21 = smov 8  }
  0x27   : > { %6500 = dma.hbm_to_vmem [thread:$0]  (!%p6896_p11), %s10371_s1, 18432, %s6889_s19, [#allocation6], %s10382_s18, %s10382_s18, %s10383_s21  }
  0x28   : > { %s6654_s27 = scalar_lea.hbm %s10375_s5, 18432 }
  0x29   : > { %p6655_p1 = scmp.ne.s32.totalorder %s10375_s5, %s6654_s27  ;;  %p6661_p10 = scmp.lt.u32.totalorder %s6654_s27, %s10375_s5 }
  0x2b   : > { %p6657_p2 = pnand %p6655_p1, %p6628_p13 }
  0x2d   : > { %p6658_p6 = pneg %p6657_p2 }
  0x2f   : > { %p6663_p3 = pnand %p6661_p10, %p6658_p6 }
  0x31   : > { %6666 = shalt.err (!%p6663_p3)
}
  0x32   : > { %s6667_s19 = scalar_lea.vmem %s6900_s22, 18432  ;;  %p6675_p12 = scmp.lt.s32.totalorder %s6900_s22, %s6900_s22 }
  0x33   : > { %p6668_p5 = scmp.ne.s32.totalorder %s6900_s22, %s6667_s19  ;;  %p6676_p0 = scmp.lt.s32.totalorder %s6667_s19, %s6667_s19 }
  0x35   : > { %p6670_p7 = pnand %p6668_p5, %p6628_p13  ;;  %p6677_p1 = por %p6676_p0, %p6675_p12 }
  0x37   : > { %p6671_p9 = pneg %p6670_p7 }
  0x39   : > { %p6678_p2 = pnand %p6677_p1, %p6671_p9 }
  0x3b   : > { %6681 = shalt.err (!%p6678_p2)
}
  0x3c   : > { %6503 = dma.hbm_to_vmem [thread:$0]  (!%p6896_p11), %s10375_s5, 18432, %s6900_s22, [#allocation6], %s10382_s18, %s10382_s18, %s10383_s21  }
  0x3d   : > { %s6961_s20 = sadd.s32 1, %s6782_s12   ;;  %s33_s24 = sadd.s32 1, %s6778_s11 }
  0x3e   : > { %s30_s25 = ssub.s32 %s6782_s12, %s6961_s20  ;;  %p40_p13 = scmp.ne.s32.totalorder %s6778_s11, %s6774_s10 }
  0x3f   : > { %p31_p6 = scmp.eq.s32.totalorder %s30_s25, 0  ;;  %p41_p10 = scmp.eq.s32.totalorder %s6782_s12, 0 }
  0x40   : > { %p10661_p3 = scmp.eq.s32.totalorder %s6866_s13, 1  ;;  %p6514_p7 = scmp.lt.s32.totalorder %s6782_s12, 2 }
  0x41   : > { %s6977_s27 = scalar_select %p31_p6, %s6778_s11, %s33_s24  }
  0x42   : > { %p6971_p5 = por %p10661_p3, %p40_p13  ;;  %p42_p9 = por %p41_p10, %p40_p13 }
  0x43   : > { %s308_s28 = sand.u32 1, %s6778_s11   ;;  %s5315_s22 = sshll.u32 %s6782_s12, 12 }
  0x44   : > { %s10662_s26 = scalar_select %p6971_p5, 1, 0 }
  0x45   : > { %s5296_s29 = sshll.u32 %s308_s28, 8  ;;  %s6984_s16 = scalar_lea.hbm %s10370_s0, %s5315_s22 }
  0x46   : > { %s312_s23 = scalar_lea.vmem [#allocation2], %s5296_s29  ;;  %p6988_p11 = pnand %p6514_p7, %p42_p9 }
  0x47   : > { %s319_s25 = sshll.u32 %s312_s23, 4  ;;  %s6992_s18 = scalar_lea.sflag [#allocation3], %s308_s28  ;;  %s6986_s25 = int_to_ptr.vmem [resolvable:$true] %s319_s25 }
  0x48   : > { %s6682_s21 = scalar_lea.hbm %s6984_s16, 4096  ;;  %p6684_p0 = pneg %p6988_p11 }
  0x49   : > { %p6683_p12 = scmp.ne.s32.totalorder %s6984_s16, %s6682_s21  ;;  %s6687_s14 = scalar_lea.hbm %s10370_s0, 8192 }
  0x4a   : > { %p6688_p13 = scmp.lt.u32.totalorder %s6984_s16, %s10370_s0  ;;  %p6689_p6 = scmp.lt.u32.totalorder %s6687_s14, %s6682_s21 }
  0x4b   : > { %p6685_p1 = pnand %p6684_p0, %p6683_p12  ;;  %p6691_p3 = scmp.lt.u32.totalorder %s6682_s21, %s6984_s16 }
  0x4c   : > { %p6690_p10 = por %p6689_p6, %p6688_p13 }
  0x4d   : > { %p6686_p2 = pneg %p6685_p1 }
  0x4e   : > { %p6692_p7 = por %p6691_p3, %p6690_p10 }
  0x50   : > { %p6693_p9 = pnand %p6692_p7, %p6686_p2 }
  0x52   : > { %6696 = shalt.err (!%p6693_p9)
}
  0x53   : > { %s6697_s28 = scalar_lea.vmem %s6986_s25, 4096  ;;  %s6788_s29 = smov [#allocation2]  }
  0x54   : > { %p6698_p12 = scmp.ne.s32.totalorder %s6986_s25, %s6697_s28  ;;  %s6702_s22 = sshll.u32 %s6788_s29, 4  ;;  %s6703_s22 = int_to_ptr.vmem [resolvable:$false] %s6702_s22 }
  0x55   : > { %s6704_s19 = scalar_lea.vmem %s6703_s22, 8192  ;;  %p6705_p4 = scmp.lt.s32.totalorder %s6986_s25, %s6703_s22 }
  0x56   : > { %p6700_p1 = pnand %p6698_p12, %p6684_p0  ;;  %p6706_p13 = scmp.lt.s32.totalorder %s6704_s19, %s6697_s28 }
  0x58   : > { %p6701_p5 = pneg %p6700_p1  ;;  %p6707_p6 = por %p6706_p13, %p6705_p4 }
  0x5a   : > { %p6708_p10 = pnand %p6707_p6, %p6701_p5 }
  0x5c   : > { %6711 = shalt.err (!%p6708_p10)
}
  0x5d   : > { %s10664_s21 = smov 8   ;;  %s10665_s14 = smov 128  }
  0x5e   : > { %6507 = dma.hbm_to_vmem [thread:$0]  (!%p6988_p11), %s6984_s16, 4096, %s6986_s25, %s6992_s18, %s10665_s14, %s10665_s14, %s10664_s21  }
  0x5f   : > { %331 = sbr.rel (%p6885_p8) target bundleno = 2061 (0x80d), region = 56 }
  0x66   : > { %s7026_s23 = sand.u32 1, %s6774_s10   ;;  %p10666_p4 = scmp.ne.s32.totalorder %s10656_s15, 0 }
  0x67   : > { %s5300_s28 = sshll.u32 %s7026_s23, 8  ;;  %s334_s29 = scalar_lea.sflag [#allocation3], %s7026_s23 }
  0x68   : > { %s7032_s24 = scalar_lea.vmem [#allocation2], %s5300_s28 }
  0x69   : > { %6757 = dma.done.wait (%p10666_p4), %s334_s29, 4096  }
  0x6a   : > { %6759 = vsyncadd (%p10666_p4), %s334_s29, 4294963200  ;;  %p10667_p5 = scmp.eq.s32.totalorder %s6866_s13, 0 }
  0x6c   : > { %6761 = dma.done.wait (%p10667_p5), [#allocation6], 36864   ;;  %p10668_p8 = pmov %p10667_p5 }
  0x6d   : > { %v10402_v0 = vmov 0.0|0.0   ;;  %v1603_v1 = vld [vmem:[#allocation5] sm:$0xff]  ;;  %v1604_v2 = vld [vmem:[#allocation5 + $0x8] sm:$0xff]  ;;  %v1605_v3 = vld [vmem:[#allocation5 + $0x10] sm:$0xff]  ;;  %v10386_v9 = vlaneseq  ;;  %v10670_v61 = vmov 0  ;;  %s6790_s18 = smov 127  }
  0x6e   : > { %6763 = vsyncadd (%p10668_p8), [#allocation6], 4294930432  ;;  %5573 = vmatprep.subr.bf16.mxu0 %v10402_v0  ;;  %v5574_v4 = vpack.c.bf16 %v1604_v2, %v1603_v1  ;;  %v1606_v5 = vld [vmem:[#allocation5 + $0x18] sm:$0xff]  ;;  %v1607_v7 = vld [vmem:[#allocation5 + $0x20] sm:$0xff]  ;;  %s6791_s16 = smov 1   ;;  %s10248_s25 = scalar_lea.vmem [#allocation8], %s5300_s28 }
  0x6f   : > { %v5577_v6 = vpack.c.bf16 %v1606_v5, %v1605_v3  ;;  %v1608_v8 = vld [vmem:[#allocation5 + $0x28] sm:$0xff]  ;;  %v1609_v11 = vld [vmem:[#allocation5 + $0x30] sm:$0xff]  ;;  %v1610_v12 = vld [vmem:[#allocation5 + $0x38] sm:$0xff]  ;;  %v7049_v14 = vshrl.u32 %v10386_v9, 7  ;;  %s5316_s28 = sshll.u32 %s6866_s13, 12  ;;  %s5199_s22 = sshll.u32 %s10248_s25, 4  ;;  %s10306_s22 = int_to_ptr.vmem [resolvable:$true] %s5199_s22 }
  0x70   : > { %5575 = vmatpush1.bf16.msra.mxu0 %v5574_v4  ;;  %v5580_v10 = vpack.c.bf16 %v1608_v8, %v1607_v7  ;;  %v7046_v13 = vld [vmem:[%s7032_s24 + $0x10] sm:$0xff]  ;;  %v5583_v15 = vpack.c.bf16 %v1610_v12, %v1609_v11  ;;  %v7053_v16 = vld [vmem:[%s7032_s24 + $0x18] sm:$0xff]  ;;  %v1611_v18 = vld [vmem:[#allocation5 + $0x40] sm:$0xff]  ;;  %s10302_s14 = scalar_lea.hbm %s10379_s9, %s5316_s28  ;;  %s5186_s13 = scalar_lea.sflag [#allocation4], %s7026_s23 }
  0x71   : > { %5576 = vmatprep.subr.bf16.mxu0 %v10402_v0  ;;  %10669 = vst [vmem:[#allocation13_spill] sm:$0xff] %v7049_v14  ;;  %1818 = vmatprep.mubr.f32.mxu0 %v7046_v13  ;;  %v1028_v17 = vrot.slane %v7046_v13, 1  ;;  %v1612_v19 = vld [vmem:[#allocation5 + $0x48] sm:$0xff]  ;;  %v1029_v20 = vrot.slane %v7053_v16, 1  ;;  %vm10457_vm0 = vcmp.lt.s32.totalorder %v7049_v14, 7  ;;  %v1613_v23 = vld [vmem:[#allocation5 + $0x50] sm:$0xff] }
  0x72   : > { %v5586_v21 = vpack.c.bf16 %v1612_v19, %v1611_v18  ;;  %v1614_v24 = vld [vmem:[#allocation5 + $0x58] sm:$0xff]  ;;  %v1615_v26 = vld [vmem:[#allocation5 + $0x60] sm:$0xff]  ;;  %v1616_v27 = vld [vmem:[#allocation5 + $0x68] sm:$0xff]  ;;  %v383_v52 = vadd.s32 16, %v7049_v14  ;;  %v963_v59 = vrot.slane %v7046_v13, 7  ;;  %vm10473_vm1 = vcmp.lt.s32.totalorder %v7049_v14, 1 }
  0x73   : > { %v7065_v22 = vsel %vm10457_vm0, %v1028_v17, %v1029_v20  ;;  %v5589_v25 = vpack.c.bf16 %v1614_v24, %v1613_v23  ;;  %v5592_v28 = vpack.c.bf16 %v1616_v27, %v1615_v26  ;;  %v1617_v29 = vld [vmem:[#allocation5 + $0x70] sm:$0xff]  ;;  %v1618_v30 = vld [vmem:[#allocation5 + $0x78] sm:$0xff]  ;;  %v1619_v32 = vld [vmem:[#allocation5 + $0x80] sm:$0xff]  ;;  %v964_v7 = vrot.slane %v7053_v16, 7  ;;  %s6712_s29 = scalar_lea.vmem %s10306_s22, 4096  ;;  %p11264_p0 = scmp.ne.s32.totalorder %s10662_s26, 0 }
  0x74   : > { %5578 = vmatpush1.bf16.msra.mxu0 %v5577_v6  ;;  %5445 = vmatprep.mubr.f32.mxu1 %v7065_v22  ;;  %v5595_v31 = vpack.c.bf16 %v1618_v30, %v1617_v29  ;;  %v1620_v33 = vld [vmem:[#allocation5 + $0x88] sm:$0xff]  ;;  %v1621_v35 = vld [vmem:[#allocation5 + $0x90] sm:$0xff]  ;;  %v1622_v36 = vld [vmem:[#allocation5 + $0x98] sm:$0xff]  ;;  %v431_v57 = vand.u32 15, %v383_v52  ;;  %v417_v8 = vand.u32 15, %v7049_v14  ;;  %v10675_v26 = vmov 0  ;;  %p6713_p11 = scmp.ne.s32.totalorder %s10306_s22, %s6712_s29 }
  0x75   : > { %5579 = vmatprep.subr.bf16.mxu0 %v10402_v0  ;;  %v5598_v34 = vpack.c.bf16 %v1620_v33, %v1619_v32  ;;  %v5601_v37 = vpack.c.bf16 %v1622_v36, %v1621_v35  ;;  %v1623_v38 = vld [vmem:[#allocation5 + $0xa0] sm:$0xff]  ;;  %v1624_v39 = vld [vmem:[#allocation5 + $0xa8] sm:$0xff]  ;;  %v1625_v41 = vld [vmem:[#allocation5 + $0xb0] sm:$0xff]  ;;  %v7115_v23 = vsel %vm10473_vm1, %v963_v59, %v964_v7 }
  0x76   : > { %v5604_v40 = vpack.c.bf16 %v1624_v39, %v1623_v38  ;;  %v1626_v42 = vld [vmem:[#allocation5 + $0xb8] sm:$0xff]  ;;  %v1627_v44 = vld [vmem:[#allocation5 + $0xc0] sm:$0xff]  ;;  %v1628_v45 = vld [vmem:[#allocation5 + $0xc8] sm:$0xff]  ;;  %vm7084_vm2 = vcmp.eq.s32.totalorder %v431_v57, 0  ;;  %vm7123_vm3 = vcmp.eq.s32.totalorder %v417_v8, 0  ;;  %v389_v8 = vadd.s32 64, %v7049_v14  ;;  %p6714_p2 = pnand %p6713_p11, %p11264_p0 }
  0x77   : > { %v5607_v43 = vpack.c.bf16 %v1626_v42, %v1625_v41  ;;  %v5610_v46 = vpack.c.bf16 %v1628_v45, %v1627_v44  ;;  %v1629_v47 = vld [vmem:[#allocation5 + $0xd0] sm:$0xff]  ;;  %v1630_v48 = vld [vmem:[#allocation5 + $0xd8] sm:$0xff]  ;;  %v1631_v50 = vld [vmem:[#allocation5 + $0xe0] sm:$0xff]  ;;  %v10671_v61 = vsel %vm7084_vm2, 4294967295, %v10670_v61  ;;  %v10676_v26 = vsel %vm7123_vm3, 4294967295, %v10675_v26 }
  0x78   : > { %5581 = vmatpush1.bf16.msra.mxu0 %v5580_v10  ;;  %v5613_v49 = vpack.c.bf16 %v1630_v48, %v1629_v47  ;;  %v1632_v51 = vld [vmem:[#allocation5 + $0xe8] sm:$0xff]  ;;  %v1633_v55 = vld [vmem:[#allocation5 + $0xf0] sm:$0xff]  ;;  %v1634_v56 = vld [vmem:[#allocation5 + $0xf8] sm:$0xff]  ;;  %10672 = vst [vmem:[#allocation14_spill] sm:$0xff] %v10671_v61  ;;  %p6715_p3 = pneg %p6714_p2 }
  0x79   : > { %5582 = vmatprep.subr.bf16.mxu0 %v10402_v0  ;;  %v930_v53 = vld [vmem:[%s7032_s24 + $0x8] sm:$0xff]  ;;  %v5616_v54 = vpack.c.bf16 %v1632_v51, %v1631_v50  ;;  %v5619_v60 = vpack.c.bf16 %v1634_v56, %v1633_v55  ;;  %v1635_v63 = vld [vmem:[#allocation5 + $0x100] sm:$0xff]  ;;  %v7094_v3 = vld [vmem:[%s7032_s24 + $0xf8] sm:$0xff]  ;;  %10677 = vst [vmem:[#allocation17_spill] sm:$0xff] %v10676_v26 }
  0x7a   : > { %v962_v58 = vrot.slane %v930_v53, 7  ;;  %v1636_v1 = vld [vmem:[#allocation5 + $0x108] sm:$0xff]  ;;  %v7091_v2 = vld [vmem:[%s7032_s24] sm:$0xff]  ;;  %10674 = vst [vmem:[#allocation16_spill] sm:$0xff] %v7094_v3  ;;  %v10388_v11 = vrot.slane %v7094_v3, 7  ;;  %v1637_v18 = vld [vmem:[#allocation5 + $0x110] sm:$0xff] }
  0x7b   : > { %10673 = vst [vmem:[#allocation15_spill] sm:$0xff] %v7091_v2  ;;  %v7097_v4 = vld [vmem:[%s7032_s24 + $0x20] sm:$0xff]  ;;  %v5622_v6 = vpack.c.bf16 %v1636_v1, %v1635_v63  ;;  %v961_v10 = vrot.slane %v7091_v2, 7  ;;  %v10387_v12 = vrot.slane %v7091_v2, 1  ;;  %v1638_v19 = vld [vmem:[#allocation5 + $0x118] sm:$0xff]  ;;  %v1641_v32 = vld [vmem:[#allocation5 + $0x130] sm:$0xff] }
  0x7c   : > { %5584 = vmatpush1.bf16.msra.mxu0 %v5583_v15  ;;  %v1023_v62 = vsel %vm10473_vm1, %v962_v58, %v963_v59  ;;  %v1027_v15 = vrot.slane %v930_v53, 1  ;;  %v5625_v24 = vpack.c.bf16 %v1638_v19, %v1637_v18  ;;  %v1639_v29 = vld [vmem:[#allocation5 + $0x120] sm:$0xff]  ;;  %v1642_v33 = vld [vmem:[#allocation5 + $0x138] sm:$0xff]  ;;  %v1644_v39 = vld [vmem:[#allocation5 + $0x148] sm:$0xff] }
  0x7d   : > { %5585 = vmatprep.subr.bf16.mxu0 %v10402_v0  ;;  %v7102_v5 = vsel %vm7084_vm2, %v7065_v22, %v1023_v62  ;;  %v1025_v27 = vsel %vm10473_vm1, %v10388_v11, %v961_v10  ;;  %v5631_v35 = vpack.c.bf16 %v1642_v33, %v1641_v32  ;;  %v1643_v38 = vld [vmem:[#allocation5 + $0x140] sm:$0xff]  ;;  %v1645_v44 = vld [vmem:[#allocation5 + $0x150] sm:$0xff]  ;;  %v1646_v45 = vld [vmem:[#allocation5 + $0x158] sm:$0xff] }
  0x7e   : > { %v7155_v36 = vsel %vm10457_vm0, %v1027_v15, %v1028_v17  ;;  %v5634_v41 = vpack.c.bf16 %v1644_v39, %v1643_v38  ;;  %v1648_v50 = vld [vmem:[#allocation5 + $0x168] sm:$0xff]  ;;  %v7184_v51 = vld [vmem:[%s7032_s24 + $0x30] sm:$0xff]  ;;  %v7187_v52 = vld [vmem:[%s7032_s24 + $0x38] sm:$0xff]  ;;  %v10684_v39 = vmov 0 }
  0x7f   : > { %v967_v57 = vrot.slane %v7184_v51, 7  ;;  %v10396_v59 = vrot.slane %v7187_v52, 1  ;;  %v1650_v62 = vld [vmem:[#allocation5 + $0x178] sm:$0xff]  ;;  %v7224_v18 = vld [vmem:[%s7032_s24 + $0x40] sm:$0xff]  ;;  %v7227_v19 = vld [vmem:[%s7032_s24 + $0x48] sm:$0xff] }
  0x80   : > { %5587 = vmatpush1.bf16.msra.mxu0 %v5586_v21  ;;  %v1030_v21 = vrot.slane %v7097_v4, 1  ;;  %v10394_v32 = vrot.slane %v7227_v19, 1  ;;  %v1653_v33 = vld [vmem:[#allocation5 + $0x190] sm:$0xff] }
  0x81   : > { %5588 = vmatprep.subr.bf16.mxu0 %v10402_v0  ;;  %v7499_v26 = vld [vmem:[%s7032_s24 + $0xb0] sm:$0xff] }
  0x82   : > { %10720 = vst [vmem:[#allocation42_spill] sm:$0xff] %v7499_v26  ;;  %v10425_v61 = vrot.slane %v7499_v26, 1 }
  0x84   : > { %5590 = vmatpush1.bf16.msra.mxu0 %v5589_v25  ;;  %v7121_v25 = vsel %vm10457_vm0, %v1029_v20, %v1030_v21  ;;  %v1640_v20 = vld [vmem:[#allocation5 + $0x128] sm:$0xff] }
  0x85   : > { %5591 = vmatprep.subr.bf16.mxu0 %v10402_v0 }
  0x88   : > { %5593 = vmatpush1.bf16.msra.mxu0 %v5592_v28  ;;  %v7135_v28 = vsel %vm10457_vm0, %v10387_v12, %v1027_v15  ;;  %v1652_v15 = vld [vmem:[#allocation5 + $0x188] sm:$0xff] }
  0x89   : > { %5594 = vmatprep.subr.bf16.mxu0 %v10402_v0  ;;  %v7143_v30 = vsel %vm7123_vm3, %v7135_v28, %v1025_v27 }
  0x8c   : > { %5596 = vmatpush1.bf16.msra.mxu0 %v5595_v31  ;;  %v5628_v31 = vpack.c.bf16 %v1640_v20, %v1639_v29  ;;  %v473_v29 = vand.u32 15, %v389_v8  ;;  %v969_v20 = vrot.slane %v7224_v18, 7  ;;  %v10688_v8 = vmov 0 }
  0x8d   : > { %5597 = vmatprep.subr.bf16.mxu0 %v10402_v0 }
  0x8e   : > { %vm7247_vm6 = vcmp.eq.s32.totalorder %v473_v29, 0  ;;  %v1660_v29 = vld [vmem:[#allocation5 + $0x1c8] sm:$0xff] }
  0x8f   : > { %v10685_v39 = vsel %vm7247_vm6, 4294967295, %v10684_v39 }
  0x90   : > { %5599 = vmatpush1.bf16.msra.mxu0 %v5598_v34  ;;  %v7149_v34 = vsel %vm10473_vm1, %v961_v10, %v962_v58  ;;  %v10401_v58 = vrot.slane %v7184_v51, 1  ;;  %v1651_v10 = vld [vmem:[#allocation5 + $0x180] sm:$0xff]  ;;  %10686 = vst [vmem:[#allocation20_spill] sm:$0xff] %v10685_v39 }
  0x91   : > { %5600 = vmatprep.subr.bf16.mxu0 %v10402_v0  ;;  %v5646_v27 = vpack.c.bf16 %v1652_v15, %v1651_v10 }
  0x94   : > { %5602 = vmatpush1.bf16.msra.mxu0 %v5601_v37  ;;  %v385_v37 = vadd.s32 32, %v7049_v14 }
  0x95   : > { %5603 = vmatprep.subr.bf16.mxu0 %v10402_v0 }
  0x96   : > { %v445_v42 = vand.u32 15, %v385_v37 }
  0x98   : > { %5605 = vmatpush1.bf16.msra.mxu0 %v5604_v40  ;;  %v7160_v40 = vld [vmem:[%s7032_s24 + $0x28] sm:$0xff]  ;;  %vm7169_vm4 = vcmp.eq.s32.totalorder %v445_v42, 0 }
  0x99   : > { %5606 = vmatprep.subr.bf16.mxu0 %v10402_v0  ;;  %v10400_v17 = vrot.slane %v7160_v40, 1 }
  0x9b   : > { %v7179_v48 = vsel %vm10457_vm0, %v1030_v21, %v10400_v17 }
  0x9c   : > { %5608 = vmatpush1.bf16.msra.mxu0 %v5607_v43  ;;  %v965_v43 = vrot.slane %v7097_v4, 7 }
  0x9d   : > { %5609 = vmatprep.subr.bf16.mxu0 %v10402_v0 }
  0x9e   : > { %v1021_v47 = vsel %vm10473_vm1, %v964_v7, %v965_v43  ;;  %v7219_v7 = vsel %vm10457_vm0, %v10401_v58, %v10396_v59  ;;  %v399_v59 = vadd.s32 144, %v7049_v14 }
  0xa0   : > { %5611 = vmatpush1.bf16.msra.mxu0 %v5610_v46  ;;  %v5637_v46 = vpack.c.bf16 %v1646_v45, %v1645_v44  ;;  %v1655_v44 = vld [vmem:[#allocation5 + $0x1a0] sm:$0xff]  ;;  %v1656_v45 = vld [vmem:[#allocation5 + $0x1a8] sm:$0xff] }
  0xa1   : > { %5612 = vmatprep.subr.bf16.mxu0 %v10402_v0 }
  0xa4   : > { %5614 = vmatpush1.bf16.msra.mxu0 %v5613_v49  ;;  %v387_v49 = vadd.s32 48, %v7049_v14 }
  0xa5   : > { %5615 = vmatprep.subr.bf16.mxu0 %v10402_v0 }
  0xa6   : > { %v459_v56 = vand.u32 15, %v387_v49 }
  0xa8   : > { %5617 = vmatpush1.bf16.msra.mxu0 %v5616_v54  ;;  %v966_v54 = vrot.slane %v7160_v40, 7  ;;  %vm7207_vm5 = vcmp.eq.s32.totalorder %v459_v56, 0 }
  0xa9   : > { %5618 = vmatprep.subr.bf16.mxu0 %v10402_v0 }
  0xaa   : > { %v7205_v63 = vsel %vm10473_vm1, %v965_v43, %v966_v54  ;;  %v391_v43 = vadd.s32 80, %v7049_v14 }
  0xac   : > { %5620 = vmatpush1.bf16.msra.mxu0 %v5619_v60  ;;  %v1649_v60 = vld [vmem:[#allocation5 + $0x170] sm:$0xff] }
  0xad   : > { %5621 = vmatprep.subr.bf16.mxu0 %v10402_v0  ;;  %v5643_v1 = vpack.c.bf16 %v1650_v62, %v1649_v60  ;;  %v1657_v60 = vld [vmem:[#allocation5 + $0x1b0] sm:$0xff]  ;;  %v1658_v62 = vld [vmem:[#allocation5 + $0x1b8] sm:$0xff] }
  0xaf   : > { %1819 = vmatmul.mubr.f32.vlgmr.msra.gmra.mrb[0].mxu0 %v7102_v5 }
  0xb0   : > { %5623 = vmatpush1.bf16.msra.mxu0 %v5622_v6  ;;  %1823 = vmatprep.mubr.f32.mxu0 %v7053_v16  ;;  %v1019_v6 = vsel %vm10473_vm1, %v966_v54, %v967_v57  ;;  %v487_v54 = vand.u32 15, %v391_v43 }
  0xb1   : > { %5624 = vmatprep.subr.bf16.mxu0 %v10402_v0  ;;  %v7234_v21 = vsel %vm7207_vm5, %v7219_v7, %v1019_v6  ;;  %v5655_v6 = vpack.c.bf16 %v1658_v62, %v1657_v60 }
  0xb2   : > { %vm7287_vm7 = vcmp.eq.s32.totalorder %v487_v54, 0  ;;  %v1662_v54 = vld [vmem:[#allocation5 + $0x1d8] sm:$0xff] }
  0xb3   : > { %1824 = vmatmul.mubr.f32.gmra.mrb[2].mxu0 %v7115_v23  ;;  %v10689_v8 = vsel %vm7287_vm7, 4294967295, %v10688_v8 }
  0xb4   : > { %1828 = vmatprep.mubr.f32.mxu0 %v7091_v2  ;;  %5626 = vmatpush1.bf16.msra.mxu0 %v5625_v24  ;;  %v968_v24 = vrot.slane %v7187_v52, 7  ;;  %10690 = vst [vmem:[#allocation22_spill] sm:$0xff] %v10689_v8 }
  0xb5   : > { %5627 = vmatprep.subr.bf16.mxu0 %v10402_v0 }
  0xb6   : > { %v7245_v37 = vsel %vm10473_vm1, %v967_v57, %v968_v24 }
  0xb7   : > { %1829 = vmatmul.mubr.f32.gmra.mrb[4].mxu0 %v7143_v30 }
  0xb8   : > { %1833 = vmatprep.mubr.f32.mxu0 %v930_v53  ;;  %5629 = vmatpush1.bf16.msra.mxu0 %v5628_v31  ;;  %v7194_v53 = vsel %vm7169_vm4, %v7179_v48, %v1021_v47  ;;  %v10397_v31 = vrot.slane %v7224_v18, 1  ;;  %v7267_v47 = vld [vmem:[%s7032_s24 + $0x58] sm:$0xff] }
  0xb9   : > { %5630 = vmatprep.subr.bf16.mxu0 %v10402_v0  ;;  %v10390_v57 = vrot.slane %v7267_v47, 1 }
  0xba   : > { %v7259_v42 = vsel %vm10457_vm0, %v10397_v31, %v10394_v32  ;;  %v7423_v31 = vld [vmem:[%s7032_s24 + $0x90] sm:$0xff] }
  0xbb   : > { %1834 = vmatmul.mubr.f32.gmra.mrb[6].mxu0 %v7149_v34  ;;  %v10408_v17 = vrot.slane %v7423_v31, 1 }
  0xbc   : > { %1838 = vmatprep.mubr.f32.mxu0 %v7046_v13  ;;  %5632 = vmatpush1.bf16.msra.mxu0 %v5631_v35  ;;  %v10678_v13 = vmov 0  ;;  %v1654_v35 = vld [vmem:[#allocation5 + $0x198] sm:$0xff] }
  0xbd   : > { %5633 = vmatprep.subr.bf16.mxu0 %v10402_v0  ;;  %v10679_v13 = vsel %vm7169_vm4, 4294967295, %v10678_v13  ;;  %v5649_v38 = vpack.c.bf16 %v1654_v35, %v1653_v33  ;;  %v7307_v33 = vld [vmem:[%s7032_s24 + $0x68] sm:$0xff] }
  0xbe   : > { %10680 = vst [vmem:[#allocation18_spill] sm:$0xff] %v10679_v13  ;;  %v403_v13 = vadd.s32 176, %v7049_v14 }
  0xbf   : > { %1839 = vmatmul.mubr.f32.gmra.mrb[8].mxu0 %v7102_v5 }
  0xc0   : > { %1843 = vmatprep.mubr.f32.mxu0 %v7053_v16  ;;  %5635 = vmatpush1.bf16.msra.mxu0 %v5634_v41  ;;  %v1647_v16 = vld [vmem:[#allocation5 + $0x160] sm:$0xff]  ;;  %v1017_v41 = vsel %vm10473_vm1, %v968_v24, %v969_v20  ;;  %v393_v24 = vadd.s32 96, %v7049_v14 }
  0xc1   : > { %5636 = vmatprep.subr.bf16.mxu0 %v10402_v0  ;;  %v5640_v55 = vpack.c.bf16 %v1648_v50, %v1647_v16  ;;  %v7274_v49 = vsel %vm7247_vm6, %v7259_v42, %v1017_v41  ;;  %v970_v16 = vrot.slane %v7227_v19, 7  ;;  %v5652_v50 = vpack.c.bf16 %v1656_v45, %v1655_v44 }
  0xc2   : > { %v501_v43 = vand.u32 15, %v393_v24 }
  0xc3   : > { %1844 = vmatmul.mubr.f32.gmra.mrb[10].mxu0 %v7115_v23 }
  0xc4   : > { %1848 = vmatprep.mubr.f32.mxu0 %v7097_v4  ;;  %5638 = vmatpush1.bf16.msra.mxu0 %v5637_v46  ;;  %v10681_v4 = vmov 0  ;;  %v7264_v46 = vld [vmem:[%s7032_s24 + $0x50] sm:$0xff]  ;;  %vm7327_vm8 = vcmp.eq.s32.totalorder %v501_v43, 0  ;;  %v7347_v43 = vld [vmem:[%s7032_s24 + $0x78] sm:$0xff] }
  0xc5   : > { %5639 = vmatprep.subr.bf16.mxu0 %v10402_v0  ;;  %v10682_v4 = vsel %vm7207_vm5, 4294967295, %v10681_v4  ;;  %v10395_v56 = vrot.slane %v7264_v46, 1 }
  0xc6   : > { %10683 = vst [vmem:[#allocation19_spill] sm:$0xff] %v10682_v4 }
  0xc7   : > { %1849 = vmatmul.mubr.f32.gmra.mrb[12].mxu0 %v7194_v53  ;;  %v7299_v15 = vsel %vm10457_vm0, %v10395_v56, %v10390_v57  ;;  %v1665_v57 = vld [vmem:[#allocation5 + $0x1f0] sm:$0xff]  ;;  %v10703_v56 = vmov 0 }
  0xc8   : > { %1853 = vmatprep.mubr.f32.mxu0 %v7160_v40  ;;  %5641 = vmatpush1.bf16.msra.mxu0 %v5640_v55  ;;  %v971_v55 = vrot.slane %v7264_v46, 7 }
  0xc9   : > { %5642 = vmatprep.subr.bf16.mxu0 %v10402_v0 }
  0xca   : > { %v1015_v10 = vsel %vm10473_vm1, %v970_v16, %v971_v55 }
  0xcb   : > { %1854 = vmatmul.mubr.f32.gmra.mrb[14].mxu0 %v7205_v63  ;;  %v7314_v35 = vsel %vm7287_vm7, %v7299_v15, %v1015_v10 }
  0xcc   : > { %1858 = vmatprep.mubr.f32.mxu0 %v7184_v51  ;;  %5644 = vmatpush1.bf16.msra.mxu0 %v5643_v1  ;;  %v7285_v1 = vsel %vm10473_vm1, %v969_v20, %v970_v16  ;;  %v7304_v20 = vld [vmem:[%s7032_s24 + $0x60] sm:$0xff]  ;;  %10691 = vst [vmem:[#allocation23_spill] sm:$0xff] %v7314_v35  ;;  %v10389_v16 = vrot.slane %v7307_v33, 1 }
  0xcd   : > { %5645 = vmatprep.subr.bf16.mxu0 %v10402_v0  ;;  %10687 = vst [vmem:[#allocation21_spill] sm:$0xff] %v7285_v1  ;;  %v973_v44 = vrot.slane %v7304_v20, 7  ;;  %v10391_v45 = vrot.slane %v7304_v20, 1 }
  0xcf   : > { %1859 = vmatmul.mubr.f32.gmra.mrb[16].mxu0 %v7234_v21  ;;  %v7339_v24 = vsel %vm10457_vm0, %v10391_v45, %v10389_v16  ;;  %v10392_v16 = vrot.slane %v7347_v43, 1  ;;  %v1666_v45 = vld [vmem:[#allocation5 + $0x1f8] sm:$0xff] }
  0xd0   : > { %1863 = vmatprep.mubr.f32.mxu0 %v7187_v52  ;;  %5647 = vmatpush1.bf16.msra.mxu0 %v5646_v27  ;;  %v1659_v27 = vld [vmem:[#allocation5 + $0x1c0] sm:$0xff] }
  0xd1   : > { %5648 = vmatprep.subr.bf16.mxu0 %v10402_v0  ;;  %v5658_v41 = vpack.c.bf16 %v1660_v29, %v1659_v27  ;;  %v1663_v27 = vld [vmem:[#allocation5 + $0x1e0] sm:$0xff]  ;;  %v1664_v29 = vld [vmem:[#allocation5 + $0x1e8] sm:$0xff] }
  0xd3   : > { %1864 = vmatmul.mubr.f32.gmra.mrb[18].mxu0 %v7245_v37 }
  0xd4   : > { %1868 = vmatprep.mubr.f32.mxu0 %v7224_v18  ;;  %5650 = vmatpush1.bf16.msra.mxu0 %v5649_v38  ;;  %v972_v38 = vrot.slane %v7267_v47, 7 }
  0xd5   : > { %5651 = vmatprep.subr.bf16.mxu0 %v10402_v0 }
  0xd6   : > { %v7325_v60 = vsel %vm10473_vm1, %v971_v55, %v972_v38  ;;  %v1013_v10 = vsel %vm10473_vm1, %v972_v38, %v973_v44  ;;  %v395_v55 = vadd.s32 112, %v7049_v14 }
  0xd7   : > { %1869 = vmatmul.mubr.f32.gmra.mrb[20].mxu0 %v7274_v49  ;;  %10692 = vst [vmem:[#allocation24_spill] sm:$0xff] %v7325_v60  ;;  %v7354_v38 = vsel %vm7327_vm8, %v7339_v24, %v1013_v10  ;;  %v5667_v10 = vpack.c.bf16 %v1666_v45, %v1665_v57  ;;  %v7384_v57 = vld [vmem:[%s7032_s24 + $0x80] sm:$0xff] }
  0xd8   : > { %1873 = vmatprep.mubr.f32.mxu0 %v7227_v19  ;;  %5653 = vmatpush1.bf16.msra.mxu0 %v5652_v50  ;;  %v1661_v50 = vld [vmem:[#allocation5 + $0x1d0] sm:$0xff]  ;;  %10696 = vst [vmem:[#allocation26_spill] sm:$0xff] %v7354_v38  ;;  %v515_v9 = vand.u32 15, %v395_v55  ;;  %v10698_v55 = vmov 0 }
  0xd9   : > { %5654 = vmatprep.subr.bf16.mxu0 %v10402_v0  ;;  %v5661_v62 = vpack.c.bf16 %v1662_v54, %v1661_v50  ;;  %v974_v50 = vrot.slane %v7307_v33, 7  ;;  %v5664_v54 = vpack.c.bf16 %v1664_v29, %v1663_v27 }
  0xda   : > { %vm7367_vm9 = vcmp.eq.s32.totalorder %v515_v9, 0  ;;  %v7387_v9 = vld [vmem:[%s7032_s24 + $0x88] sm:$0xff] }
  0xdb   : > { %1874 = vmatmul.mubr.f32.gmra.mrb[22].mxu0 %v7285_v1  ;;  %v10699_v55 = vsel %vm7367_vm9, 4294967295, %v10698_v55  ;;  %v10398_v32 = vrot.slane %v7387_v9, 1 }
  0xdc   : > { %1878 = vmatprep.mubr.f32.mxu0 %v7264_v46  ;;  %5656 = vmatpush1.bf16.msra.mxu0 %v5655_v6  ;;  %v10693_v6 = vmov 0  ;;  %10700 = vst [vmem:[#allocation28_spill] sm:$0xff] %v10699_v55  ;;  %v401_v55 = vadd.s32 160, %v7049_v14 }
  0xdd   : > { %5657 = vmatprep.subr.bf16.mxu0 %v10402_v0  ;;  %v10694_v6 = vsel %vm7327_vm8, 4294967295, %v10693_v6 }
  0xde   : > { %10695 = vst [vmem:[#allocation25_spill] sm:$0xff] %v10694_v6  ;;  %v7461_v6 = vld [vmem:[%s7032_s24 + $0xa0] sm:$0xff] }
  0xdf   : > { %1879 = vmatmul.mubr.f32.gmra.mrb[24].mxu0 %v7314_v35  ;;  %v10416_v8 = vrot.slane %v7461_v6, 1 }
  0xe0   : > { %1883 = vmatprep.mubr.f32.mxu0 %v7267_v47  ;;  %5659 = vmatpush1.bf16.msra.mxu0 %v5658_v41  ;;  %v7344_v41 = vld [vmem:[%s7032_s24 + $0x70] sm:$0xff] }
  0xe1   : > { %5660 = vmatprep.subr.bf16.mxu0 %v10402_v0  ;;  %v975_v12 = vrot.slane %v7344_v41, 7  ;;  %v10393_v11 = vrot.slane %v7344_v41, 1 }
  0xe3   : > { %1884 = vmatmul.mubr.f32.gmra.mrb[26].mxu0 %v7325_v60  ;;  %v1011_v27 = vsel %vm10473_vm1, %v974_v50, %v975_v12  ;;  %v7379_v29 = vsel %vm10457_vm0, %v10393_v11, %v10392_v16  ;;  %v977_v16 = vrot.slane %v7384_v57, 7  ;;  %v10399_v11 = vrot.slane %v7384_v57, 1 }
  0xe4   : > { %1888 = vmatprep.mubr.f32.mxu0 %v7304_v20  ;;  %5662 = vmatpush1.bf16.msra.mxu0 %v5661_v62  ;;  %v7365_v62 = vsel %vm10473_vm1, %v973_v44, %v974_v50  ;;  %v397_v44 = vadd.s32 128, %v7049_v14  ;;  %v7394_v45 = vsel %vm7367_vm9, %v7379_v29, %v1011_v27  ;;  %v976_v50 = vrot.slane %v7347_v43, 7 }
  0xe5   : > { %5663 = vmatprep.subr.bf16.mxu0 %v10402_v0  ;;  %10697 = vst [vmem:[#allocation27_spill] sm:$0xff] %v7365_v62  ;;  %10701 = vst [vmem:[#allocation29_spill] sm:$0xff] %v7394_v45 }
  0xe6   : > { %v7405_v27 = vsel %vm10473_vm1, %v975_v12, %v976_v50  ;;  %v7426_v12 = vld [vmem:[%s7032_s24 + $0x98] sm:$0xff] }
  0xe7   : > { %1889 = vmatmul.mubr.f32.gmra.mrb[28].mxu0 %v7354_v38  ;;  %10702 = vst [vmem:[#allocation30_spill] sm:$0xff] %v7405_v27  ;;  %10706 = vst [vmem:[#allocation32_spill] sm:$0xff] %v7426_v12  ;;  %v10407_v58 = vrot.slane %v7426_v12, 1 }
  0xe8   : > { %1893 = vmatprep.mubr.f32.mxu0 %v7307_v33  ;;  %5665 = vmatpush1.bf16.msra.mxu0 %v5664_v54  ;;  %v529_v54 = vand.u32 15, %v397_v44  ;;  %v7419_v44 = vsel %vm10457_vm0, %v10399_v11, %v10398_v32  ;;  %v543_v32 = vand.u32 15, %v399_v59  ;;  %v979_v11 = vrot.slane %v7423_v31, 7 }
  0xe9   : > { %5666 = vmatprep.subr.bf16.mxu0 %v10402_v0 }
  0xea   : > { %vm7407_vm10 = vcmp.eq.s32.totalorder %v529_v54, 0  ;;  %v978_v54 = vrot.slane %v7387_v9, 7  ;;  %vm7445_vm11 = vcmp.eq.s32.totalorder %v543_v32, 0 }
  0xeb   : > { %1894 = vmatmul.mubr.f32.gmra.mrb[30].mxu0 %v7365_v62  ;;  %v10704_v56 = vsel %vm7407_vm10, 4294967295, %v10703_v56 }
  0xec   : > { %1898 = vmatprep.mubr.f32.mxu0 %v7344_v41  ;;  %5668 = vmatpush1.bf16.msra.mxu0 %v5667_v10  ;;  %10705 = vst [vmem:[#allocation31_spill] sm:$0xff] %v10704_v56  ;;  %v1009_v10 = vsel %vm10473_vm1, %v976_v50, %v977_v16  ;;  %v1007_v59 = vsel %vm10473_vm1, %v978_v54, %v979_v11 }
  0xed   : > { %5669 = vmatprep.subr.bf16.mxu0 %v10402_v0  ;;  %v7433_v50 = vsel %vm7407_vm10, %v7419_v44, %v1009_v10  ;;  %v7443_v0 = vsel %vm10473_vm1, %v977_v16, %v978_v54  ;;  %v10709_v10 = vmov 0  ;;  %v7457_v56 = vsel %vm10457_vm0, %v10408_v17, %v10407_v58  ;;  %v7464_v16 = vld [vmem:[%s7032_s24 + $0xa8] sm:$0xff] }
  0xee   : > { %10707 = vst [vmem:[#allocation33_spill] sm:$0xff] %v7433_v50  ;;  %10708 = vst [vmem:[#allocation34_spill] sm:$0xff] %v7443_v0  ;;  %v10710_v10 = vsel %vm7445_vm11, 4294967295, %v10709_v10  ;;  %v7471_v32 = vsel %vm7445_vm11, %v7457_v56, %v1007_v59  ;;  %v980_v54 = vrot.slane %v7426_v12, 7  ;;  %v557_v58 = vand.u32 15, %v401_v55 }
  0xef   : > { %1899 = vmatmul.mubr.f32.gmra.mrb[32].mxu0 %v7394_v45  ;;  %10711 = vst [vmem:[#allocation35_spill] sm:$0xff] %v10710_v10  ;;  %10712 = vst [vmem:[#allocation36_spill] sm:$0xff] %v7457_v56  ;;  %v981_v17 = vrot.slane %v7461_v6, 7  ;;  %v10415_v39 = vrot.slane %v7464_v16, 1  ;;  %v10716_v59 = vmov 0  ;;  %vm10789_vm11 = vcmp.lt.s32.totalorder %v7049_v14, 7 }
  0xf0   : > { %1903 = vmatprep.mubr.f32.mxu0 %v7347_v43  ;;  %10713 = vst [vmem:[#allocation37_spill] sm:$0xff] %v7464_v16  ;;  %10714 = vst [vmem:[#allocation38_spill] sm:$0xff] %v7471_v32  ;;  %v7481_v4 = vsel %vm10473_vm1, %v979_v11, %v980_v54  ;;  %vm7483_vm12 = vcmp.eq.s32.totalorder %v557_v58, 0  ;;  %v7502_v11 = vld [vmem:[%s7032_s24 + $0xb8] sm:$0xff]  ;;  %vm10795_vm10 = vcmp.lt.s32.totalorder %v7049_v14, 7 }
  0xf1   : > { %10715 = vst [vmem:[#allocation39_spill] sm:$0xff] %v7481_v4  ;;  %v10717_v59 = vsel %vm7483_vm12, 4294967295, %v10716_v59  ;;  %v1005_v55 = vsel %vm10473_vm1, %v980_v54, %v981_v17  ;;  %v7495_v10 = vsel %vm10457_vm0, %v10416_v8, %v10415_v39  ;;  %10721 = vst [vmem:[#allocation43_spill] sm:$0xff] %v7502_v11  ;;  %v982_v54 = vrot.slane %v7464_v16, 7 }
  0xf2   : > { %10718 = vst [vmem:[#allocation40_spill] sm:$0xff] %v10717_v59  ;;  %10719 = vst [vmem:[#allocation41_spill] sm:$0xff] %v7495_v10  ;;  %v7509_v58 = vsel %vm7483_vm12, %v7495_v10, %v1005_v55  ;;  %v571_v39 = vand.u32 15, %v403_v13  ;;  %v983_v8 = vrot.slane %v7499_v26, 7  ;;  %v10424_v2 = vrot.slane %v7502_v11, 1 }
  0xf3   : > { %1904 = vmatmul.mubr.f32.gmra.mrb[34].mxu0 %v7405_v27  ;;  %10722 = vst [vmem:[#allocation44_spill] sm:$0xff] %v7509_v58  ;;  %v7519_v3 = vsel %vm10473_vm1, %v981_v17, %v982_v54  ;;  %v10724_v55 = vmov 0  ;;  %v405_v10 = vadd.s32 192, %v7049_v14  ;;  %v7540_v17 = vld [vmem:[%s7032_s24 + $0xc8] sm:$0xff]  ;;  %vm10783_vm12 = vcmp.lt.s32.totalorder %v7049_v14, 7 }
  0xf4   : > { %1908 = vmatprep.mubr.f32.mxu0 %v7384_v57  ;;  %10723 = vst [vmem:[#allocation45_spill] sm:$0xff] %v7519_v3  ;;  %vm7521_vm13 = vcmp.eq.s32.totalorder %v571_v39, 0  ;;  %v1003_v13 = vsel %vm10473_vm1, %v982_v54, %v983_v8  ;;  %v7533_v59 = vsel %vm10457_vm0, %v10425_v61, %v10424_v2  ;;  %10729 = vst [vmem:[#allocation49_spill] sm:$0xff] %v7540_v17  ;;  %v984_v54 = vrot.slane %v7502_v11, 7 }
  0xf5   : > { %v10725_v55 = vsel %vm7521_vm13, 4294967295, %v10724_v55  ;;  %10727 = vst [vmem:[#allocation47_spill] sm:$0xff] %v7533_v59  ;;  %v7547_v39 = vsel %vm7521_vm13, %v7533_v59, %v1003_v13  ;;  %v585_v2 = vand.u32 15, %v405_v10  ;;  %v10732_v13 = vmov 0 }
  0xf6   : > { %10726 = vst [vmem:[#allocation46_spill] sm:$0xff] %v10725_v55  ;;  %10730 = vst [vmem:[#allocation50_spill] sm:$0xff] %v7547_v39  ;;  %v407_v59 = vadd.s32 208, %v7049_v14  ;;  %vm10777_vm13 = vcmp.lt.s32.totalorder %v7049_v14, 7 }
  0xf7   : > { %1909 = vmatmul.mubr.f32.gmra.mrb[36].mxu0 %v7433_v50  ;;  %vm7559_vm14 = vcmp.eq.s32.totalorder %v585_v2, 0 }
  0xf8   : > { %1913 = vmatprep.mubr.f32.mxu0 %v7387_v9  ;;  %v10733_v13 = vsel %vm7559_vm14, 4294967295, %v10732_v13 }
  0xf9   : > { %10734 = vst [vmem:[#allocation52_spill] sm:$0xff] %v10733_v13 }
  0xfb   : > { %1914 = vmatmul.mubr.f32.gmra.mrb[38].mxu0 %v7443_v0 }
  0xfc   : > { %1918 = vmatprep.mubr.f32.mxu0 %v7423_v31 }
  0xff   : > { %1919 = vmatmul.mubr.f32.gmra.mrb[40].mxu0 %v7471_v32 }
 0x100   : > { %1923 = vmatprep.mubr.f32.mxu0 %v7426_v12  ;;  %v10436_v12 = vrot.slane %v7540_v17, 1 }
 0x103   : > { %1924 = vmatmul.mubr.f32.gmra.mrb[42].mxu0 %v7481_v4 }
 0x104   : > { %1928 = vmatprep.mubr.f32.mxu0 %v7461_v6 }
 0x107   : > { %1929 = vmatmul.mubr.f32.gmra.mrb[44].mxu0 %v7509_v58 }
 0x108   : > { %1933 = vmatprep.mubr.f32.mxu0 %v7464_v16  ;;  %v7537_v16 = vld [vmem:[%s7032_s24 + $0xc0] sm:$0xff] }
 0x109   : > { %10728 = vst [vmem:[#allocation48_spill] sm:$0xff] %v7537_v16  ;;  %v985_v61 = vrot.slane %v7537_v16, 7  ;;  %v10437_v56 = vrot.slane %v7537_v16, 1 }
 0x10b   : > { %1934 = vmatmul.mubr.f32.gmra.mrb[46].mxu0 %v7519_v3  ;;  %v1001_v10 = vsel %vm10473_vm1, %v984_v54, %v985_v61  ;;  %v7571_v55 = vsel %vm10457_vm0, %v10437_v56, %v10436_v12  ;;  %v599_v12 = vand.u32 15, %v407_v59 }
 0x10c   : > { %1938 = vmatprep.mubr.f32.mxu0 %v7499_v26  ;;  %v7557_v26 = vsel %vm10473_vm1, %v983_v8, %v984_v54  ;;  %10735 = vst [vmem:[#allocation53_spill] sm:$0xff] %v7571_v55  ;;  %v7578_v8 = vld [vmem:[%s7032_s24 + $0xd8] sm:$0xff]  ;;  %v7585_v2 = vsel %vm7559_vm14, %v7571_v55, %v1001_v10  ;;  %v986_v54 = vrot.slane %v7540_v17, 7  ;;  %v10740_v10 = vmov 0 }
 0x10d   : > { %10731 = vst [vmem:[#allocation51_spill] sm:$0xff] %v7557_v26  ;;  %10737 = vst [vmem:[#allocation55_spill] sm:$0xff] %v7578_v8  ;;  %v10451_v3 = vrot.slane %v7578_v8, 1  ;;  %vm7597_vm15 = vcmp.eq.s32.totalorder %v599_v12, 0  ;;  %v409_v55 = vadd.s32 224, %v7049_v14  ;;  %vm10771_vm14 = vcmp.lt.s32.totalorder %v7049_v14, 7 }
 0x10e   : > { %10738 = vst [vmem:[#allocation56_spill] sm:$0xff] %v7585_v2  ;;  %v10741_v10 = vsel %vm7597_vm15, 4294967295, %v10740_v10 }
 0x10f   : > { %1939 = vmatmul.mubr.f32.gmra.mrb[48].mxu0 %v7547_v39  ;;  %10742 = vst [vmem:[#allocation58_spill] sm:$0xff] %v10741_v10 }
 0x110   : > { %1943 = vmatprep.mubr.f32.mxu0 %v7502_v11  ;;  %v7575_v11 = vld [vmem:[%s7032_s24 + $0xd0] sm:$0xff] }
 0x111   : > { %10736 = vst [vmem:[#allocation54_spill] sm:$0xff] %v7575_v11  ;;  %v987_v56 = vrot.slane %v7575_v11, 7  ;;  %v10452_v39 = vrot.slane %v7575_v11, 1 }
 0x113   : > { %1944 = vmatmul.mubr.f32.gmra.mrb[50].mxu0 %v7557_v26  ;;  %v999_v59 = vsel %vm10473_vm1, %v986_v54, %v987_v56  ;;  %v7609_v13 = vsel %vm10457_vm0, %v10452_v39, %v10451_v3 }
 0x114   : > { %1948 = vmatprep.mubr.f32.mxu0 %v7537_v16  ;;  %v7595_v16 = vsel %vm10473_vm1, %v985_v61, %v986_v54  ;;  %10743 = vst [vmem:[#allocation59_spill] sm:$0xff] %v7609_v13  ;;  %v7616_v61 = vld [vmem:[%s7032_s24 + $0xe8] sm:$0xff]  ;;  %v7623_v12 = vsel %vm7597_vm15, %v7609_v13, %v999_v59  ;;  %v988_v54 = vrot.slane %v7578_v8, 7  ;;  %v10747_v59 = vmov 0 }
 0x115   : > { %10739 = vst [vmem:[#allocation57_spill] sm:$0xff] %v7595_v16  ;;  %10745 = vst [vmem:[#allocation61_spill] sm:$0xff] %v7616_v61  ;;  %v10460_v26 = vrot.slane %v7616_v61, 1  ;;  %vm10750_vm15 = vcmp.lt.s32.totalorder %v7049_v14, 7  ;;  %v1668_v13 = vld [vmem:[#allocation5 + $0x208] sm:$0xff] }
 0x116   : > { %10746 = vst [vmem:[#allocation62_spill] sm:$0xff] %v7623_v12 }
 0x117   : > { %1949 = vmatmul.mubr.f32.gmra.mrb[52].mxu0 %v7585_v2  ;;  %v613_v2 = vand.u32 15, %v409_v55 }
 0x118   : > { %1953 = vmatprep.mubr.f32.mxu0 %v7540_v17  ;;  %v7613_v17 = vld [vmem:[%s7032_s24 + $0xe0] sm:$0xff] }
 0x119   : > { %10744 = vst [vmem:[#allocation60_spill] sm:$0xff] %v7613_v17  ;;  %v989_v3 = vrot.slane %v7613_v17, 7  ;;  %v10461_v39 = vrot.slane %v7613_v17, 1  ;;  %vm7635_vm0 = vcmp.eq.s32.totalorder %v613_v2, 0  ;;  %v10474_v2 = vrot.slane %v7616_v61, 7 }
 0x11a   : > { %v10748_v59 = vsel %vm7635_vm0, 4294967295, %v10747_v59 }
 0x11b   : > { %1954 = vmatmul.mubr.f32.gmra.mrb[54].mxu0 %v7595_v16  ;;  %10749 = vst [vmem:[#allocation63_spill] sm:$0xff] %v10748_v59  ;;  %v997_v55 = vsel %vm10473_vm1, %v988_v54, %v989_v3  ;;  %v7647_v10 = vsel %vm10750_vm15, %v10461_v39, %v10460_v26  ;;  %v7664_v26 = vsel %vm10473_vm1, %v989_v3, %v10474_v2  ;;  %v1667_v39 = vld [vmem:[#allocation5 + $0x200] sm:$0xff]  ;;  %v10753_v59 = vmov 0 }
 0x11c   : > { %1958 = vmatprep.mubr.f32.mxu0 %v7575_v11  ;;  %v7633_v11 = vsel %vm10473_vm1, %v987_v56, %v988_v54  ;;  %10751 = vst [vmem:[#allocation64_spill] sm:$0xff] %v7647_v10  ;;  %v7654_v56 = vsel %vm7635_vm0, %v7647_v10, %v997_v55  ;;  %v384_v54 = vadd.s32 24, %v7049_v14  ;;  %v5670_v55 = vpack.c.bf16 %v1668_v13, %v1667_v39  ;;  %v1669_v10 = vld [vmem:[#allocation5 + $0x210] sm:$0xff] }
 0x11d   : > { %10752 = vst [vmem:[#allocation65_spill] sm:$0xff] %v7654_v56  ;;  %v10756_v39 = vmov 0.0|0.0   ;;  %v10757_v2 = vmov 0  ;;  %vm10765_vm0 = vcmp.lt.s32.totalorder %v7049_v14, 7 }
 0x11f   : > { %1959 = vmatmul.mubr.f32.gmra.mrb[56].mxu0 %v7623_v12 }
 0x120   : > { %1963 = vmatprep.mubr.f32.mxu0 %v7578_v8  ;;  %v438_v8 = vand.u32 15, %v384_v54  ;;  %v1672_v54 = vld [vmem:[#allocation5 + $0x228] sm:$0xff] }
 0x122   : > { %vm7668_vm15 = vcmp.eq.s32.totalorder %v438_v8, 15  ;;  %v1671_v8 = vld [vmem:[#allocation5 + $0x220] sm:$0xff] }
 0x123   : > { %1964 = vmatmul.mubr.f32.gmra.mrb[58].mxu0 %v7633_v11  ;;  %v10754_v59 = vsel %vm7668_vm15, 4294967295, %v10753_v59  ;;  %v7679_v3 = vsel %vm7668_vm15, %v7115_v23, %v7121_v25  ;;  %v1673_v25 = vld [vmem:[#allocation5 + $0x230] sm:$0xff] }
 0x124   : > { %1968 = vmatprep.mubr.f32.mxu0 %v7613_v17  ;;  %10755 = vst [vmem:[#allocation66_spill] sm:$0xff] %v10754_v59  ;;  %v1670_v17 = vld [vmem:[#allocation5 + $0x218] sm:$0xff] }
 0x125   : > { %v1674_v59 = vld [vmem:[#allocation5 + $0x238] sm:$0xff] }
 0x127   : > { %1969 = vmatmul.mubr.f32.gmra.mrb[60].mxu0 %v7654_v56 }
 0x128   : > { %1973 = vmatprep.mubr.f32.mxu0 %v7616_v61  ;;  %v382_v61 = vadd.s32 8, %v7049_v14 }
 0x12a   : > { %v424_v13 = vand.u32 15, %v382_v61  ;;  %v1675_v61 = vld [vmem:[#allocation5 + $0x240] sm:$0xff] }
 0x12b   : > { %1974 = vmatmul.mubr.f32.gmra.mrb[62].mxu0 %v7664_v26 }
 0x12c   : > { %2043 = vmatprep.mubr.f32.mxu0 %v7143_v30  ;;  %v5673_v30 = vpack.c.bf16 %v1670_v17, %v1669_v10  ;;  %vm7684_vm1 = vcmp.eq.s32.totalorder %v424_v13, 15  ;;  %v5679_v10 = vpack.c.bf16 %v1674_v59, %v1673_v25  ;;  %v1679_v59 = vld [vmem:[#allocation5 + $0x260] sm:$0xff] }
 0x12d   : > { %v10758_v2 = vsel %vm7684_vm1, 4294967295, %v10757_v2  ;;  %v7695_v17 = vsel %vm7684_vm1, %v7149_v34, %v7155_v36 }
 0x12e   : > { %10759 = vst [vmem:[#allocation67_spill] sm:$0xff] %v10758_v2  ;;  %v1678_v2 = vld [vmem:[#allocation5 + $0x258] sm:$0xff] }
 0x12f   : > { %2044 = vmatmul.mubr.f32.vlgmr.msra.gmra.mrb[0].mxu0 %v7065_v22 }
 0x130   : > { %5671 = vmatpush1.bf16.msra.mxu0 %v5670_v55  ;;  %2048 = vmatprep.mubr.f32.mxu0 %v7149_v34  ;;  %v5676_v55 = vpack.c.bf16 %v1672_v54, %v1671_v8  ;;  %v386_v8 = vadd.s32 40, %v7049_v14  ;;  %v1677_v54 = vld [vmem:[#allocation5 + $0x250] sm:$0xff] }
 0x131   : > { %5672 = vmatprep.subr.bf16.mxu0 %v10756_v39  ;;  %v5685_v34 = vpack.c.bf16 %v1678_v2, %v1677_v54  ;;  %v1682_v54 = vld [vmem:[#allocation5 + $0x278] sm:$0xff] }
 0x132   : > { %v452_v36 = vand.u32 15, %v386_v8  ;;  %v1681_v8 = vld [vmem:[#allocation5 + $0x270] sm:$0xff] }
 0x133   : > { %2049 = vmatmul.mubr.f32.gmra.mrb[2].mxu0 %v7679_v3 }
 0x134   : > { %2053 = vmatprep.mubr.f32.mxu0 %v7102_v5  ;;  %5674 = vmatpush1.bf16.msra.mxu0 %v5673_v30  ;;  %v1676_v30 = vld [vmem:[#allocation5 + $0x248] sm:$0xff]  ;;  %vm7707_vm1 = vcmp.eq.s32.totalorder %v452_v36, 15  ;;  %v1683_v36 = vld [vmem:[#allocation5 + $0x280] sm:$0xff] }
 0x135   : > { %5675 = vmatprep.subr.bf16.mxu0 %v10756_v39  ;;  %v5682_v13 = vpack.c.bf16 %v1676_v30, %v1675_v61  ;;  %v10763_v61 = vrot.slane %v7184_v51, 1  ;;  %v10764_v30 = vrot.slane %v7160_v40, 1  ;;  %v5691_v40 = vpack.c.bf16 %v1682_v54, %v1681_v8  ;;  %v1685_v8 = vld [vmem:[#allocation5 + $0x290] sm:$0xff]  ;;  %v1686_v54 = vld [vmem:[#allocation5 + $0x298] sm:$0xff] }
 0x137   : > { %2054 = vmatmul.mubr.f32.gmra.mrb[4].mxu0 %v7135_v28  ;;  %v1084_v2 = vsel %vm10765_vm0, %v10764_v30, %v10763_v61  ;;  %v10766_v61 = vmov 0  ;;  %v10769_v30 = vrot.slane %v7224_v18, 1 }
 0x138   : > { %2058 = vmatprep.mubr.f32.mxu0 %v7115_v23  ;;  %5677 = vmatpush1.bf16.msra.mxu0 %v5676_v55  ;;  %v1680_v55 = vld [vmem:[#allocation5 + $0x268] sm:$0xff] }
 0x139   : > { %5678 = vmatprep.subr.bf16.mxu0 %v10756_v39  ;;  %v5688_v25 = vpack.c.bf16 %v1680_v55, %v1679_v59  ;;  %v1684_v59 = vld [vmem:[#allocation5 + $0x288] sm:$0xff] }
 0x13a   : > { %v5694_v55 = vpack.c.bf16 %v1684_v59, %v1683_v36  ;;  %v1688_v36 = vld [vmem:[#allocation5 + $0x2a8] sm:$0xff] }
 0x13b   : > { %2059 = vmatmul.mubr.f32.gmra.mrb[6].mxu0 %v7695_v17 }
 0x13c   : > { %2063 = vmatprep.mubr.f32.mxu0 %v7194_v53  ;;  %5680 = vmatpush1.bf16.msra.mxu0 %v5679_v10  ;;  %v10760_v10 = vmov 0 }
 0x13d   : > { %5681 = vmatprep.subr.bf16.mxu0 %v10756_v39  ;;  %v10761_v10 = vsel %vm7707_vm1, 4294967295, %v10760_v10 }
 0x13e   : > { %10762 = vst [vmem:[#allocation68_spill] sm:$0xff] %v10761_v10  ;;  %v1732_v10 = vld [vmem:[#allocation5 + $0x408] sm:$0xff] }
 0x13f   : > { %2064 = vmatmul.mubr.f32.gmra.mrb[8].mxu0 %v7065_v22 }
 0x140   : > { %2068 = vmatprep.mubr.f32.mxu0 %v7205_v63  ;;  %5683 = vmatpush1.bf16.msra.mxu0 %v5682_v13  ;;  %v388_v13 = vadd.s32 56, %v7049_v14 }
 0x141   : > { %5684 = vmatprep.subr.bf16.mxu0 %v10756_v39 }
 0x142   : > { %v466_v51 = vand.u32 15, %v388_v13  ;;  %v390_v13 = vadd.s32 72, %v7049_v14 }
 0x143   : > { %2069 = vmatmul.mubr.f32.gmra.mrb[10].mxu0 %v7679_v3 }
 0x144   : > { %2073 = vmatprep.mubr.f32.mxu0 %v7234_v21  ;;  %5686 = vmatpush1.bf16.msra.mxu0 %v5685_v34  ;;  %v7724_v34 = vsel %vm7707_vm1, %v7205_v63, %v1084_v2  ;;  %vm7729_vm0 = vcmp.eq.s32.totalorder %v466_v51, 15  ;;  %v480_v18 = vand.u32 15, %v390_v13  ;;  %v1687_v51 = vld [vmem:[#allocation5 + $0x2a0] sm:$0xff]  ;;  %v392_v13 = vadd.s32 88, %v7049_v14 }
 0x145   : > { %5687 = vmatprep.subr.bf16.mxu0 %v10756_v39  ;;  %v10767_v61 = vsel %vm7729_vm0, 4294967295, %v10766_v61  ;;  %v5700_v59 = vpack.c.bf16 %v1688_v36, %v1687_v51  ;;  %v1692_v51 = vld [vmem:[#allocation5 + $0x2c8] sm:$0xff] }
 0x146   : > { %10768 = vst [vmem:[#allocation69_spill] sm:$0xff] %v10767_v61 }
 0x147   : > { %2074 = vmatmul.mubr.f32.gmra.mrb[12].mxu0 %v7179_v48 }
 0x148   : > { %2078 = vmatprep.mubr.f32.mxu0 %v7245_v37  ;;  %5689 = vmatpush1.bf16.msra.mxu0 %v5688_v25  ;;  %v10770_v25 = vrot.slane %v7187_v52, 1  ;;  %v5697_v52 = vpack.c.bf16 %v1686_v54, %v1685_v8  ;;  %v1689_v8 = vld [vmem:[#allocation5 + $0x2b0] sm:$0xff]  ;;  %v1690_v54 = vld [vmem:[#allocation5 + $0x2b8] sm:$0xff] }
 0x149   : > { %5690 = vmatprep.subr.bf16.mxu0 %v10756_v39 }
 0x14a   : > { %v1082_v2 = vsel %vm10771_vm14, %v10770_v25, %v10769_v30  ;;  %vm7751_vm14 = vcmp.eq.s32.totalorder %v480_v18, 15  ;;  %v10772_v30 = vmov 0  ;;  %v10775_v25 = vrot.slane %v7264_v46, 1  ;;  %v1691_v18 = vld [vmem:[#allocation5 + $0x2c0] sm:$0xff] }
 0x14b   : > { %2079 = vmatmul.mubr.f32.gmra.mrb[14].mxu0 %v7724_v34  ;;  %v10773_v30 = vsel %vm7751_vm14, 4294967295, %v10772_v30  ;;  %v494_v46 = vand.u32 15, %v392_v13  ;;  %v5706_v36 = vpack.c.bf16 %v1692_v51, %v1691_v18  ;;  %v394_v13 = vadd.s32 104, %v7049_v14  ;;  %v1696_v18 = vld [vmem:[#allocation5 + $0x2e8] sm:$0xff] }
 0x14c   : > { %2083 = vmatprep.mubr.f32.mxu0 %v7274_v49  ;;  %5692 = vmatpush1.bf16.msra.mxu0 %v5691_v40  ;;  %v7746_v40 = vsel %vm7729_vm0, %v7245_v37, %v1082_v2  ;;  %10774 = vst [vmem:[#allocation70_spill] sm:$0xff] %v10773_v30 }
 0x14d   : > { %5693 = vmatprep.subr.bf16.mxu0 %v10756_v39 }
 0x14f   : > { %2084 = vmatmul.mubr.f32.gmra.mrb[16].mxu0 %v7219_v7 }
 0x150   : > { %2088 = vmatprep.mubr.f32.mxu0 %v7285_v1  ;;  %5695 = vmatpush1.bf16.msra.mxu0 %v5694_v55  ;;  %v10776_v55 = vrot.slane %v7227_v19, 1  ;;  %v5703_v19 = vpack.c.bf16 %v1690_v54, %v1689_v8  ;;  %v1693_v8 = vld [vmem:[#allocation5 + $0x2d0] sm:$0xff]  ;;  %v1694_v54 = vld [vmem:[#allocation5 + $0x2d8] sm:$0xff] }
 0x151   : > { %5696 = vmatprep.subr.bf16.mxu0 %v10756_v39 }
 0x152   : > { %v1080_v2 = vsel %vm10777_vm13, %v10776_v55, %v10775_v25  ;;  %vm7773_vm13 = vcmp.eq.s32.totalorder %v494_v46, 15  ;;  %v10778_v25 = vmov 0  ;;  %v10781_v55 = vrot.slane %v7304_v20, 1  ;;  %v1695_v46 = vld [vmem:[#allocation5 + $0x2e0] sm:$0xff] }
 0x153   : > { %2089 = vmatmul.mubr.f32.gmra.mrb[18].mxu0 %v7746_v40  ;;  %v10779_v25 = vsel %vm7773_vm13, 4294967295, %v10778_v25  ;;  %v508_v20 = vand.u32 15, %v394_v13  ;;  %v5712_v51 = vpack.c.bf16 %v1696_v18, %v1695_v46  ;;  %v396_v13 = vadd.s32 120, %v7049_v14 }
 0x154   : > { %2093 = vmatprep.mubr.f32.mxu0 %v7314_v35  ;;  %5698 = vmatpush1.bf16.msra.mxu0 %v5697_v52  ;;  %v7768_v52 = vsel %vm7751_vm14, %v7285_v1, %v1080_v2  ;;  %10780 = vst [vmem:[#allocation71_spill] sm:$0xff] %v10779_v25  ;;  %v10793_v46 = vrot.slane %v7384_v57, 1  ;;  %v10794_v18 = vrot.slane %v7347_v43, 1  ;;  %v10796_v43 = vmov 0  ;;  %v10825_v25 = vld [vmem:[#allocation43_spill] sm:$0xff]  ;;  %v1742_v1 = vld [vmem:[#allocation5 + $0x458] sm:$0xff] }
 0x155   : > { %5699 = vmatprep.subr.bf16.mxu0 %v10756_v39  ;;  %v10799_v57 = vrot.slane %v7423_v31, 1  ;;  %v10801_v31 = vmov 0  ;;  %v10826_v30 = vrot.slane %v10825_v25, 1 }
 0x157   : > { %2094 = vmatmul.mubr.f32.gmra.mrb[20].mxu0 %v7259_v42 }
 0x158   : > { %2098 = vmatprep.mubr.f32.mxu0 %v7325_v60  ;;  %5701 = vmatpush1.bf16.msra.mxu0 %v5700_v59  ;;  %v10782_v59 = vrot.slane %v7267_v47, 1  ;;  %v5709_v47 = vpack.c.bf16 %v1694_v54, %v1693_v8  ;;  %v1697_v8 = vld [vmem:[#allocation5 + $0x2f0] sm:$0xff]  ;;  %v1698_v54 = vld [vmem:[#allocation5 + $0x2f8] sm:$0xff] }
 0x159   : > { %5702 = vmatprep.subr.bf16.mxu0 %v10756_v39 }
 0x15a   : > { %v1078_v2 = vsel %vm10783_vm12, %v10782_v59, %v10781_v55  ;;  %vm7795_vm12 = vcmp.eq.s32.totalorder %v508_v20, 15  ;;  %v10784_v55 = vmov 0  ;;  %v10787_v59 = vrot.slane %v7344_v41, 1 }
 0x15b   : > { %2099 = vmatmul.mubr.f32.gmra.mrb[22].mxu0 %v7768_v52  ;;  %v10785_v55 = vsel %vm7795_vm12, 4294967295, %v10784_v55  ;;  %v522_v41 = vand.u32 15, %v396_v13  ;;  %v10790_v20 = vmov 0  ;;  %v10800_v13 = vrot.slane %v7387_v9, 1 }
 0x15c   : > { %2103 = vmatprep.mubr.f32.mxu0 %v7354_v38  ;;  %5704 = vmatpush1.bf16.msra.mxu0 %v5703_v19  ;;  %v7790_v19 = vsel %vm7773_vm13, %v7325_v60, %v1078_v2  ;;  %10786 = vst [vmem:[#allocation72_spill] sm:$0xff] %v10785_v55  ;;  %v10804_v9 = vrot.slane %v7461_v6, 1  ;;  %v10809_v6 = vld [vmem:[#allocation50_spill] sm:$0xff]  ;;  %v10819_v55 = vld [vmem:[#allocation56_spill] sm:$0xff] }
 0x15d   : > { %5705 = vmatprep.subr.bf16.mxu0 %v10756_v39 }
 0x15f   : > { %2104 = vmatmul.mubr.f32.gmra.mrb[24].mxu0 %v7299_v15 }
 0x160   : > { %2108 = vmatprep.mubr.f32.mxu0 %v7365_v62  ;;  %5707 = vmatpush1.bf16.msra.mxu0 %v5706_v36  ;;  %v10788_v36 = vrot.slane %v7307_v33, 1  ;;  %v5715_v33 = vpack.c.bf16 %v1698_v54, %v1697_v8  ;;  %v1072_v8 = vsel %vm10795_vm10, %v10800_v13, %v10799_v57  ;;  %v400_v54 = vadd.s32 152, %v7049_v14  ;;  %v10808_v57 = vld [vmem:[#allocation45_spill] sm:$0xff] }
 0x161   : > { %5708 = vmatprep.subr.bf16.mxu0 %v10756_v39 }
 0x162   : > { %v1076_v2 = vsel %vm10789_vm11, %v10788_v36, %v10787_v59  ;;  %vm7817_vm11 = vcmp.eq.s32.totalorder %v522_v41, 15  ;;  %v398_v59 = vadd.s32 136, %v7049_v14  ;;  %v550_v41 = vand.u32 15, %v400_v54 }
 0x163   : > { %2109 = vmatmul.mubr.f32.gmra.mrb[26].mxu0 %v7790_v19  ;;  %v10791_v20 = vsel %vm7817_vm11, 4294967295, %v10790_v20  ;;  %v10810_v54 = vmov 0 }
 0x164   : > { %2113 = vmatprep.mubr.f32.mxu0 %v7394_v45  ;;  %5710 = vmatpush1.bf16.msra.mxu0 %v5709_v47  ;;  %v7812_v47 = vsel %vm7795_vm12, %v7365_v62, %v1076_v2  ;;  %10792 = vst [vmem:[#allocation73_spill] sm:$0xff] %v10791_v20  ;;  %v536_v2 = vand.u32 15, %v398_v59  ;;  %vm7858_vm8 = vcmp.eq.s32.totalorder %v550_v41, 15  ;;  %v402_v59 = vadd.s32 168, %v7049_v14  ;;  %v10813_v41 = vld [vmem:[#allocation42_spill] sm:$0xff] }
 0x165   : > { %5711 = vmatprep.subr.bf16.mxu0 %v10756_v39  ;;  %v10802_v31 = vsel %vm7858_vm8, 4294967295, %v10801_v31  ;;  %v410_v62 = vadd.s32 232, %v7049_v14 }
 0x166   : > { %vm7838_vm9 = vcmp.eq.s32.totalorder %v536_v2, 15  ;;  %10803 = vst [vmem:[#allocation75_spill] sm:$0xff] %v10802_v31  ;;  %v10807_v2 = vld [vmem:[#allocation36_spill] sm:$0xff]  ;;  %v404_v31 = vadd.s32 184, %v7049_v14 }
 0x167   : > { %2114 = vmatmul.mubr.f32.gmra.mrb[28].mxu0 %v7339_v24  ;;  %v10797_v43 = vsel %vm7838_vm9, 4294967295, %v10796_v43 }
 0x168   : > { %2118 = vmatprep.mubr.f32.mxu0 %v7405_v27  ;;  %5713 = vmatpush1.bf16.msra.mxu0 %v5712_v51  ;;  %v1074_v51 = vsel %vm10795_vm10, %v10794_v18, %v10793_v46  ;;  %10798 = vst [vmem:[#allocation74_spill] sm:$0xff] %v10797_v43  ;;  %v10805_v46 = vld [vmem:[#allocation32_spill] sm:$0xff]  ;;  %v578_v20 = vand.u32 15, %v404_v31 }
 0x169   : > { %5714 = vmatprep.subr.bf16.mxu0 %v10756_v39  ;;  %v7834_v36 = vsel %vm7817_vm11, %v7405_v27, %v1074_v51  ;;  %v10806_v18 = vrot.slane %v10805_v46, 1  ;;  %v10815_v46 = vld [vmem:[#allocation37_spill] sm:$0xff]  ;;  %v10845_v27 = vmov 0 }
 0x16a   : > { %vm7898_vm6 = vcmp.eq.s32.totalorder %v578_v20, 15 }
 0x16b   : > { %2119 = vmatmul.mubr.f32.gmra.mrb[30].mxu0 %v7812_v47  ;;  %v1070_v51 = vsel %vm10795_vm10, %v10806_v18, %v10804_v9  ;;  %v10814_v9 = vrot.slane %v10813_v41, 1  ;;  %v10816_v18 = vrot.slane %v10815_v46, 1  ;;  %v10820_v46 = vmov 0 }
 0x16c   : > { %2123 = vmatprep.mubr.f32.mxu0 %v7433_v50  ;;  %5716 = vmatpush1.bf16.msra.mxu0 %v5715_v33  ;;  %v7854_v33 = vsel %vm7838_vm9, %v7443_v0, %v1072_v8  ;;  %v7874_v13 = vsel %vm7858_vm8, %v7481_v4, %v1070_v51  ;;  %v564_v8 = vand.u32 15, %v402_v59  ;;  %v10817_v51 = vld [vmem:[#allocation41_spill] sm:$0xff]  ;;  %v10818_v59 = vld [vmem:[#allocation51_spill] sm:$0xff]  ;;  %v10821_v46 = vsel %vm7898_vm6, 4294967295, %v10820_v46 }
 0x16d   : > { %5717 = vmatprep.subr.bf16.mxu0 %v10756_v39  ;;  %v1068_v43 = vsel %vm10795_vm10, %v10816_v18, %v10814_v9  ;;  %10822 = vst [vmem:[#allocation36_spill] sm:$0xff] %v10821_v46  ;;  %v10823_v9 = vld [vmem:[#allocation48_spill] sm:$0xff]  ;;  %vm10850_vm8 = vcmp.lt.s32.totalorder %v7049_v14, 1 }
 0x16e   : > { %vm7878_vm7 = vcmp.eq.s32.totalorder %v564_v8, 15  ;;  %v10824_v18 = vrot.slane %v10823_v9, 1 }
 0x16f   : > { %2124 = vmatmul.mubr.f32.gmra.mrb[32].mxu0 %v7379_v29  ;;  %v10811_v54 = vsel %vm7878_vm7, 4294967295, %v10810_v54  ;;  %v7894_v8 = vsel %vm7878_vm7, %v10808_v57, %v1068_v43  ;;  %v1731_v43 = vld [vmem:[#allocation5 + $0x400] sm:$0xff] }
 0x170   : > { %2128 = vmatprep.mubr.f32.mxu0 %v7443_v0  ;;  %10812 = vst [vmem:[#allocation32_spill] sm:$0xff] %v10811_v54  ;;  %v1066_v61 = vsel %vm10795_vm10, %v10826_v30, %v10824_v18  ;;  %v406_v54 = vadd.s32 200, %v7049_v14  ;;  %v5765_v31 = vpack.c.bf16 %v1732_v10, %v1731_v43  ;;  %v1734_v30 = vld [vmem:[#allocation5 + $0x418] sm:$0xff]  ;;  %v10828_v10 = vmov 0  ;;  %v10831_v43 = vld [vmem:[#allocation54_spill] sm:$0xff] }
 0x171   : > { %v7914_v20 = vsel %vm7898_vm6, %v10818_v59, %v1066_v61  ;;  %v10832_v46 = vrot.slane %v10831_v43, 1  ;;  %v10833_v61 = vld [vmem:[#allocation49_spill] sm:$0xff]  ;;  %vm10835_vm6 = vcmp.lt.s32.totalorder %v7049_v14, 7  ;;  %v1738_v0 = vld [vmem:[#allocation5 + $0x438] sm:$0xff] }
 0x172   : > { %5766 = vmatprep.subr.bf16.mxu1 %v5765_v31 }
 0x173   : > { %2129 = vmatmul.mubr.f32.gmra.mrb[34].mxu0 %v7834_v36  ;;  %5768 = vmatpush3.bf16.msra.mxu1 %v5765_v31  ;;  %v408_v31 = vadd.s32 216, %v7049_v14 }
 0x174   : > { %2133 = vmatprep.mubr.f32.mxu0 %v7471_v32 }
 0x177   : > { %2134 = vmatmul.mubr.f32.gmra.mrb[36].mxu0 %v7419_v44 }
 0x178   : > { %2138 = vmatprep.mubr.f32.mxu0 %v7481_v4  ;;  %v7932_v4 = vld [vmem:[%s7032_s24 + $0xf0] sm:$0xff] }
 0x179   : > { %v991_v50 = vrot.slane %v7932_v4, 7 }
 0x17b   : > { %2139 = vmatmul.mubr.f32.gmra.mrb[38].mxu0 %v7854_v33 }
 0x17c   : > { %2143 = vmatprep.mubr.f32.mxu0 %v7509_v58 }
 0x17f   : > { %2144 = vmatmul.mubr.f32.gmra.mrb[40].mxu0 %v10807_v2 }
 0x180   : > { %2148 = vmatprep.mubr.f32.mxu0 %v10808_v57  ;;  %v1733_v57 = vld [vmem:[#allocation5 + $0x410] sm:$0xff] }
 0x181   : > { %v5769_v18 = vpack.c.bf16 %v1734_v30, %v1733_v57  ;;  %v411_v57 = vadd.s32 240, %v7049_v14  ;;  %v1735_v30 = vld [vmem:[#allocation5 + $0x420] sm:$0xff] }
 0x183   : > { %2149 = vmatmul.mubr.f32.gmra.mrb[42].mxu0 %v7874_v13  ;;  %5770 = vmatprep.subr.bf16.mxu1 %v5769_v18 }
 0x184   : > { %2153 = vmatprep.mubr.f32.mxu0 %v10809_v6  ;;  %v10827_v6 = vld [vmem:[#allocation47_spill] sm:$0xff]  ;;  %5772 = vmatpush3.bf16.msra.mxu1 %v5769_v18 }
 0x185   : > { %v1737_v18 = vld [vmem:[#allocation5 + $0x430] sm:$0xff] }
 0x186   : > { %v5777_v45 = vpack.c.bf16 %v1738_v0, %v1737_v18  ;;  %v1739_v0 = vld [vmem:[#allocation5 + $0x440] sm:$0xff]  ;;  %v1740_v18 = vld [vmem:[#allocation5 + $0x448] sm:$0xff] }
 0x187   : > { %2154 = vmatmul.mubr.f32.gmra.mrb[44].mxu0 %v10817_v51 }
 0x188   : > { %2158 = vmatprep.mubr.f32.mxu0 %v10818_v59  ;;  %v10834_v59 = vrot.slane %v10833_v61, 1 }
 0x18b   : > { %2159 = vmatmul.mubr.f32.gmra.mrb[46].mxu0 %v7894_v8 }
 0x18c   : > { %2163 = vmatprep.mubr.f32.mxu0 %v10819_v55  ;;  %v592_v55 = vand.u32 15, %v406_v54  ;;  %v1064_v54 = vsel %vm10835_vm6, %v10834_v59, %v10832_v46  ;;  %v606_v59 = vand.u32 15, %v408_v31  ;;  %v627_v46 = vand.u32 15, %v411_v57  ;;  %v10842_v57 = vld [vmem:[#allocation55_spill] sm:$0xff] }
 0x18e   : > { %vm7918_vm10 = vcmp.eq.s32.totalorder %v592_v55, 15  ;;  %v10836_v55 = vld [vmem:[#allocation53_spill] sm:$0xff]  ;;  %vm7948_vm6 = vcmp.eq.s32.totalorder %v606_v59, 15  ;;  %vm7959_vm7 = vcmp.eq.s32.totalorder %v627_v46, 0  ;;  %v620_v46 = vand.u32 15, %v410_v62 }
 0x18f   : > { %2164 = vmatmul.mubr.f32.gmra.mrb[48].mxu0 %v10827_v6  ;;  %v10829_v10 = vsel %vm7918_vm10, 4294967295, %v10828_v10  ;;  %v7938_v32 = vsel %vm7918_vm10, %v7595_v16, %v1064_v54  ;;  %v10837_v54 = vmov 0  ;;  %vm10844_vm10 = vcmp.lt.s32.totalorder %v7049_v14, 7  ;;  %v10848_v59 = vld [vmem:[#allocation61_spill] sm:$0xff] }
 0x190   : > { %2168 = vmatprep.mubr.f32.mxu0 %v7595_v16  ;;  %10830 = vst [vmem:[#allocation42_spill] sm:$0xff] %v10829_v10  ;;  %v10838_v54 = vsel %vm7948_vm6, 4294967295, %v10837_v54  ;;  %v10843_v10 = vrot.slane %v10842_v57, 1  ;;  %v10846_v27 = vsel %vm7959_vm7, 4294967295, %v10845_v27  ;;  %vm10852_vm5 = vmmov %vm10844_vm10  ;;  %v1743_v62 = vld [vmem:[#allocation5 + $0x460] sm:$0xff] }
 0x191   : > { %10839 = vst [vmem:[#allocation37_spill] sm:$0xff] %v10838_v54  ;;  %10847 = vst [vmem:[#allocation41_spill] sm:$0xff] %v10846_v27  ;;  %v10858_v27 = vmov 0 }
 0x193   : > { %2169 = vmatmul.mubr.f32.gmra.mrb[50].mxu0 %v7914_v20 }
 0x194   : > { %2173 = vmatprep.mubr.f32.mxu0 %v7623_v12  ;;  %v1736_v12 = vld [vmem:[#allocation5 + $0x428] sm:$0xff] }
 0x195   : > { %v5773_v58 = vpack.c.bf16 %v1736_v12, %v1735_v30  ;;  %v1056_v12 = vrot.slane %v7932_v4, 1  ;;  %v7943_v30 = vld [vmem:[%s7032_s24 + $0xf8] sm:$0xff] }
 0x196   : > { %v10851_v60 = vrot.slane %v7943_v30, 1 }
 0x197   : > { %2174 = vmatmul.mubr.f32.gmra.mrb[52].mxu0 %v10836_v55  ;;  %5774 = vmatprep.subr.bf16.mxu1 %v5773_v58 }
 0x198   : > { %2178 = vmatprep.mubr.f32.mxu0 %v7633_v11  ;;  %5776 = vmatpush3.bf16.msra.mxu1 %v5773_v58  ;;  %v10840_v58 = vld [vmem:[#allocation60_spill] sm:$0xff]  ;;  %v7971_v35 = vsel %vm10852_vm5, %v1056_v12, %v10851_v60  ;;  %v1741_v60 = vld [vmem:[#allocation5 + $0x450] sm:$0xff]  ;;  %vm10857_vm5 = vmmov %vm10850_vm8 }
 0x199   : > { %5778 = vmatprep.subr.bf16.mxu1 %v5777_v45  ;;  %v10841_v31 = vrot.slane %v10840_v58, 1 }
 0x19b   : > { %2179 = vmatmul.mubr.f32.gmra.mrb[54].mxu0 %v7938_v32  ;;  %v1062_v16 = vsel %vm10844_vm10, %v10843_v10, %v10841_v31  ;;  %v5781_v10 = vpack.c.bf16 %v1740_v18, %v1739_v0  ;;  %v10853_v31 = vld [vmem:[#allocation59_spill] sm:$0xff]  ;;  %v5785_v0 = vpack.c.bf16 %v1742_v1, %v1741_v60  ;;  %v10855_v18 = vld [vmem:[#allocation16_spill] sm:$0xff] }
 0x19c   : > { %2183 = vmatprep.mubr.f32.mxu0 %v7654_v56  ;;  %5780 = vmatpush3.bf16.msra.mxu1 %v5777_v45  ;;  %v10849_v56 = vrot.slane %v10848_v59, 7  ;;  %v7978_v45 = vsel %vm7948_vm6, %v7633_v11, %v1062_v16  ;;  %v10856_v54 = vrot.slane %v10855_v18, 7  ;;  %v1745_v18 = vld [vmem:[#allocation5 + $0x470] sm:$0xff] }
 0x19d   : > { %5782 = vmatprep.subr.bf16.mxu1 %v5781_v10 }
 0x19e   : > { %v995_v38 = vsel %vm10850_vm8, %v10849_v56, %v991_v50  ;;  %v7991_v16 = vsel %vm10857_vm5, %v991_v50, %v10856_v54  ;;  %vm7993_vm8 = vcmp.eq.s32.totalorder %v620_v46, 15  ;;  %v1699_v54 = vld [vmem:[#allocation5 + $0x300] sm:$0xff]  ;;  %v1700_v46 = vld [vmem:[#allocation5 + $0x308] sm:$0xff] }
 0x19f   : > { %2184 = vmatmul.mubr.f32.gmra.mrb[56].mxu0 %v10853_v31  ;;  %v7983_v56 = vsel %vm7959_vm7, %v7971_v35, %v995_v38  ;;  %v10859_v27 = vsel %vm7993_vm8, 4294967295, %v10858_v27  ;;  %v10861_v38 = vrot.slane %v10848_v59, 1 }
 0x1a0   : > { %2188 = vmatprep.mubr.f32.mxu0 %v7664_v26  ;;  %10854 = vst [vmem:[#allocation48_spill] sm:$0xff] %v7983_v56  ;;  %5784 = vmatpush3.bf16.msra.mxu1 %v5781_v10  ;;  %10860 = vst [vmem:[#allocation43_spill] sm:$0xff] %v10859_v27  ;;  %v1744_v10 = vld [vmem:[#allocation5 + $0x468] sm:$0xff] }
 0x1a1   : > { %5786 = vmatprep.subr.bf16.mxu1 %v5785_v0  ;;  %v1060_v1 = vsel %vm10844_vm10, %v10861_v38, %v1056_v12  ;;  %v5789_v60 = vpack.c.bf16 %v1744_v10, %v1743_v62  ;;  %v1746_v12 = vld [vmem:[#allocation5 + $0x478] sm:$0xff]  ;;  %v5718_v38 = vpack.c.bf16 %v1700_v46, %v1699_v54  ;;  %v1701_v62 = vld [vmem:[#allocation5 + $0x310] sm:$0xff] }
 0x1a2   : > { %v8006_v50 = vsel %vm7993_vm8, %v7664_v26, %v1060_v1  ;;  %v1702_v10 = vld [vmem:[#allocation5 + $0x318] sm:$0xff]  ;;  %v6564_v1 = vld [vmem:[%s7032_s24] sm:$0xff] }
 0x1a3   : > { %2189 = vmatmul.mubr.f32.gmra.mrb[58].mxu0 %v7978_v45  ;;  %v1706_v46 = vld [vmem:[#allocation5 + $0x338] sm:$0xff] }
 0x1a4   : > { %2193 = vmatprep.mubr.f32.mxu0 %v7983_v56  ;;  %5788 = vmatpush3.bf16.msra.mxu1 %v5785_v0  ;;  %v10862_v56 = vld [vmem:[#allocation64_spill] sm:$0xff]  ;;  %v5793_v0 = vpack.c.bf16 %v1746_v12, %v1745_v18  ;;  %v1703_v18 = vld [vmem:[#allocation5 + $0x320] sm:$0xff]  ;;  %v1704_v12 = vld [vmem:[#allocation5 + $0x328] sm:$0xff] }
 0x1a5   : > { %5790 = vmatprep.subr.bf16.mxu1 %v5789_v60  ;;  %v5724_v54 = vpack.c.bf16 %v1704_v12, %v1703_v18  ;;  %v8038_v18 = vld [vmem:[%s7032_s24 + $0x20] sm:$0xff] }
 0x1a7   : > { %2194 = vmatmul.mubr.f32.gmra.mrb[60].mxu0 %v10862_v56 }
 0x1a8   : > { %2198 = vmatprep.mubr.f32.mxu0 %v7991_v16  ;;  %5792 = vmatpush3.bf16.msra.mxu1 %v5789_v60  ;;  %v5721_v60 = vpack.c.bf16 %v1702_v10, %v1701_v62  ;;  %v1708_v62 = vld [vmem:[#allocation5 + $0x348] sm:$0xff]  ;;  %v8030_v10 = vld [vmem:[%s7032_s24 + $0x18] sm:$0xff] }
 0x1a9   : > { %5794 = vmatprep.subr.bf16.mxu1 %v5793_v0 }
 0x1ab   : > { %2199 = vmatmul.mubr.f32.gmra.mrb[62].mxu0 %v8006_v50 }
 0x1ac   : > { %2268 = vmatprep.mubr.f32.mxu0 %v7135_v28  ;;  %5796 = vmatpush3.bf16.msra.mxu1 %v5793_v0  ;;  %v6565_v28 = vld [vmem:[%s7032_s24 + $0x8] sm:$0xff]  ;;  %v8022_v0 = vld [vmem:[%s7032_s24 + $0x10] sm:$0xff] }
 0x1ad   : > { %5797 = vmatprep.subr.bf16.mxu1 %v10756_v39 }
 0x1af   : > { %2269 = vmatmul.mubr.f32.vlgmr.msra.gmra.mrb[0].mxu0 %v6564_v1  ;;  %5446 = vmatmul.mubr.f32.vlgmr.msra.gmra.mrb[0].mxu1 %v7679_v3 }
 0x1b0   : > { %5719 = vmatpush1.bf16.msra.mxu0 %v5718_v38  ;;  %2273 = vmatprep.mubr.f32.mxu0 %v7695_v17  ;;  %v1705_v17 = vld [vmem:[#allocation5 + $0x330] sm:$0xff] }
 0x1b1   : > { %5720 = vmatprep.subr.bf16.mxu0 %v10756_v39  ;;  %5448 = vmatprep.mubr.f32.mxu1 %v7179_v48  ;;  %v5727_v38 = vpack.c.bf16 %v1706_v46, %v1705_v17  ;;  %v1714_v46 = vld [vmem:[#allocation5 + $0x378] sm:$0xff] }
 0x1b3   : > { %2274 = vmatmul.mubr.f32.gmra.mrb[2].mxu0 %v6565_v28  ;;  %5449 = vmatmul.mubr.f32.gmra.mrb[2].mxu1 %v7724_v34  ;;  %v1712_v28 = vld [vmem:[#allocation5 + $0x368] sm:$0xff] }
 0x1b4   : > { %2278 = vmatprep.mubr.f32.mxu0 %v7065_v22  ;;  %5722 = vmatpush1.bf16.msra.mxu0 %v5721_v60  ;;  %v1707_v22 = vld [vmem:[#allocation5 + $0x340] sm:$0xff]  ;;  %v1710_v60 = vld [vmem:[#allocation5 + $0x358] sm:$0xff] }
 0x1b5   : > { %5723 = vmatprep.subr.bf16.mxu0 %v10756_v39  ;;  %5451 = vmatprep.mubr.f32.mxu1 %v7219_v7  ;;  %v5730_v1 = vpack.c.bf16 %v1708_v62, %v1707_v22  ;;  %v1716_v62 = vld [vmem:[#allocation5 + $0x388] sm:$0xff] }
 0x1b7   : > { %2279 = vmatmul.mubr.f32.gmra.mrb[4].mxu0 %v8022_v0  ;;  %5452 = vmatmul.mubr.f32.gmra.mrb[4].mxu1 %v7746_v40 }
 0x1b8   : > { %2283 = vmatprep.mubr.f32.mxu0 %v7679_v3  ;;  %5725 = vmatpush1.bf16.msra.mxu0 %v5724_v54  ;;  %v1709_v3 = vld [vmem:[#allocation5 + $0x350] sm:$0xff]  ;;  %v8046_v54 = vld [vmem:[%s7032_s24 + $0x28] sm:$0xff] }
 0x1b9   : > { %5726 = vmatprep.subr.bf16.mxu0 %v10756_v39  ;;  %5454 = vmatprep.mubr.f32.mxu1 %v7259_v42  ;;  %v5733_v12 = vpack.c.bf16 %v1710_v60, %v1709_v3  ;;  %v1718_v60 = vld [vmem:[#allocation5 + $0x398] sm:$0xff] }
 0x1bb   : > { %2284 = vmatmul.mubr.f32.gmra.mrb[6].mxu0 %v8030_v10  ;;  %5455 = vmatmul.mubr.f32.gmra.mrb[6].mxu1 %v7768_v52 }
 0x1bc   : > { %2288 = vmatprep.mubr.f32.mxu0 %v7179_v48  ;;  %5728 = vmatpush1.bf16.msra.mxu0 %v5727_v38  ;;  %v1711_v48 = vld [vmem:[#allocation5 + $0x360] sm:$0xff]  ;;  %v8054_v38 = vld [vmem:[%s7032_s24 + $0x30] sm:$0xff] }
 0x1bd   : > { %5729 = vmatprep.subr.bf16.mxu0 %v10756_v39  ;;  %5457 = vmatprep.mubr.f32.mxu1 %v7299_v15  ;;  %v5736_v17 = vpack.c.bf16 %v1712_v28, %v1711_v48  ;;  %v1720_v28 = vld [vmem:[#allocation5 + $0x3a8] sm:$0xff] }
 0x1bf   : > { %2289 = vmatmul.mubr.f32.gmra.mrb[8].mxu0 %v8038_v18  ;;  %5458 = vmatmul.mubr.f32.gmra.mrb[8].mxu1 %v7790_v19 }
 0x1c0   : > { %2293 = vmatprep.mubr.f32.mxu0 %v7724_v34  ;;  %5731 = vmatpush1.bf16.msra.mxu0 %v5730_v1  ;;  %v1713_v34 = vld [vmem:[#allocation5 + $0x370] sm:$0xff]  ;;  %v8062_v1 = vld [vmem:[%s7032_s24 + $0x38] sm:$0xff] }
 0x1c1   : > { %5732 = vmatprep.subr.bf16.mxu0 %v10756_v39  ;;  %5460 = vmatprep.mubr.f32.mxu1 %v7339_v24  ;;  %v5739_v22 = vpack.c.bf16 %v1714_v46, %v1713_v34  ;;  %v1722_v46 = vld [vmem:[#allocation5 + $0x3b8] sm:$0xff] }
 0x1c3   : > { %2294 = vmatmul.mubr.f32.gmra.mrb[10].mxu0 %v8046_v54  ;;  %5461 = vmatmul.mubr.f32.gmra.mrb[10].mxu1 %v7812_v47 }
 0x1c4   : > { %2298 = vmatprep.mubr.f32.mxu0 %v7219_v7  ;;  %5734 = vmatpush1.bf16.msra.mxu0 %v5733_v12  ;;  %v1715_v7 = vld [vmem:[#allocation5 + $0x380] sm:$0xff] }
 0x1c5   : > { %5735 = vmatprep.subr.bf16.mxu0 %v10756_v39  ;;  %5463 = vmatprep.mubr.f32.mxu1 %v7379_v29  ;;  %v5742_v3 = vpack.c.bf16 %v1716_v62, %v1715_v7  ;;  %v8070_v12 = vld [vmem:[%s7032_s24 + $0x40] sm:$0xff]  ;;  %v1724_v62 = vld [vmem:[#allocation5 + $0x3c8] sm:$0xff] }
 0x1c7   : > { %2299 = vmatmul.mubr.f32.gmra.mrb[12].mxu0 %v8054_v38  ;;  %5464 = vmatmul.mubr.f32.gmra.mrb[12].mxu1 %v7834_v36 }
 0x1c8   : > { %2303 = vmatprep.mubr.f32.mxu0 %v7746_v40  ;;  %5737 = vmatpush1.bf16.msra.mxu0 %v5736_v17  ;;  %v1717_v40 = vld [vmem:[#allocation5 + $0x390] sm:$0xff]  ;;  %v8078_v17 = vld [vmem:[%s7032_s24 + $0x48] sm:$0xff] }
 0x1c9   : > { %5738 = vmatprep.subr.bf16.mxu0 %v10756_v39  ;;  %5466 = vmatprep.mubr.f32.mxu1 %v7419_v44  ;;  %v5745_v48 = vpack.c.bf16 %v1718_v60, %v1717_v40  ;;  %v1726_v60 = vld [vmem:[#allocation5 + $0x3d8] sm:$0xff] }
 0x1cb   : > { %2304 = vmatmul.mubr.f32.gmra.mrb[14].mxu0 %v8062_v1  ;;  %5467 = vmatmul.mubr.f32.gmra.mrb[14].mxu1 %v7854_v33 }
 0x1cc   : > { %2308 = vmatprep.mubr.f32.mxu0 %v7259_v42  ;;  %5740 = vmatpush1.bf16.msra.mxu0 %v5739_v22  ;;  %v1719_v42 = vld [vmem:[#allocation5 + $0x3a0] sm:$0xff]  ;;  %v8086_v22 = vld [vmem:[%s7032_s24 + $0x50] sm:$0xff] }
 0x1cd   : > { %5741 = vmatprep.subr.bf16.mxu0 %v10756_v39  ;;  %5469 = vmatprep.mubr.f32.mxu1 %v10807_v2  ;;  %v5748_v34 = vpack.c.bf16 %v1720_v28, %v1719_v42  ;;  %v8103_v42 = vld [vmem:[%s7032_s24 + $0x60] sm:$0xff] }
 0x1ce   : > { %v1727_v28 = vld [vmem:[#allocation5 + $0x3e0] sm:$0xff] }
 0x1cf   : > { %2309 = vmatmul.mubr.f32.gmra.mrb[16].mxu0 %v8070_v12  ;;  %5470 = vmatmul.mubr.f32.gmra.mrb[16].mxu1 %v7874_v13 }
 0x1d0   : > { %2313 = vmatprep.mubr.f32.mxu0 %v7768_v52  ;;  %5743 = vmatpush1.bf16.msra.mxu0 %v5742_v3  ;;  %v1721_v52 = vld [vmem:[#allocation5 + $0x3b0] sm:$0xff]  ;;  %v8094_v3 = vld [vmem:[%s7032_s24 + $0x58] sm:$0xff] }
 0x1d1   : > { %5744 = vmatprep.subr.bf16.mxu0 %v10756_v39  ;;  %5472 = vmatprep.mubr.f32.mxu1 %v10817_v51  ;;  %v5751_v7 = vpack.c.bf16 %v1722_v46, %v1721_v52  ;;  %v8111_v46 = vld [vmem:[%s7032_s24 + $0x68] sm:$0xff] }
 0x1d3   : > { %2314 = vmatmul.mubr.f32.gmra.mrb[18].mxu0 %v8078_v17  ;;  %5473 = vmatmul.mubr.f32.gmra.mrb[18].mxu1 %v7894_v8 }
 0x1d4   : > { %2318 = vmatprep.mubr.f32.mxu0 %v7299_v15  ;;  %5746 = vmatpush1.bf16.msra.mxu0 %v5745_v48  ;;  %v1723_v15 = vld [vmem:[#allocation5 + $0x3c0] sm:$0xff]  ;;  %v412_v48 = vadd.s32 248, %v7049_v14 }
 0x1d5   : > { %5747 = vmatprep.subr.bf16.mxu0 %v10756_v39  ;;  %5475 = vmatprep.mubr.f32.mxu1 %v10827_v6  ;;  %v5754_v40 = vpack.c.bf16 %v1724_v62, %v1723_v15  ;;  %v1730_v15 = vld [vmem:[#allocation5 + $0x3f8] sm:$0xff]  ;;  %v10863_v62 = vmov 0 }
 0x1d6   : > { %v634_v52 = vand.u32 15, %v412_v48 }
 0x1d7   : > { %2319 = vmatmul.mubr.f32.gmra.mrb[20].mxu0 %v8086_v22  ;;  %5476 = vmatmul.mubr.f32.gmra.mrb[20].mxu1 %v7914_v20 }
 0x1d8   : > { %2323 = vmatprep.mubr.f32.mxu0 %v7790_v19  ;;  %5749 = vmatpush1.bf16.msra.mxu0 %v5748_v34  ;;  %v1725_v19 = vld [vmem:[#allocation5 + $0x3d0] sm:$0xff]  ;;  %v1728_v34 = vld [vmem:[#allocation5 + $0x3e8] sm:$0xff]  ;;  %vm8116_vm5 = vcmp.eq.s32.totalorder %v634_v52, 15 }
 0x1d9   : > { %5750 = vmatprep.subr.bf16.mxu0 %v10756_v39  ;;  %5478 = vmatprep.mubr.f32.mxu1 %v10836_v55  ;;  %v10864_v62 = vsel %vm8116_vm5, 4294967295, %v10863_v62  ;;  %v8150_v52 = vld [vmem:[%s7032_s24 + $0x88] sm:$0xff] }
 0x1da   : > { %10865 = vst [vmem:[#allocation47_spill] sm:$0xff] %v10864_v62 }
 0x1db   : > { %2324 = vmatmul.mubr.f32.gmra.mrb[22].mxu0 %v8094_v3  ;;  %5479 = vmatmul.mubr.f32.gmra.mrb[22].mxu1 %v7938_v32 }
 0x1dc   : > { %2328 = vmatprep.mubr.f32.mxu0 %v7339_v24  ;;  %5752 = vmatpush1.bf16.msra.mxu0 %v5751_v7  ;;  %v5757_v24 = vpack.c.bf16 %v1726_v60, %v1725_v19  ;;  %v1729_v7 = vld [vmem:[#allocation5 + $0x3f0] sm:$0xff]  ;;  %v10868_v60 = vrot.slane %v7943_v30, 1 }
 0x1dd   : > { %5753 = vmatprep.subr.bf16.mxu0 %v10756_v39  ;;  %5481 = vmatprep.mubr.f32.mxu1 %v10853_v31 }
 0x1df   : > { %2329 = vmatmul.mubr.f32.gmra.mrb[24].mxu0 %v8103_v42  ;;  %5482 = vmatmul.mubr.f32.gmra.mrb[24].mxu1 %v7978_v45 }
 0x1e0   : > { %2333 = vmatprep.mubr.f32.mxu0 %v7812_v47  ;;  %5755 = vmatpush1.bf16.msra.mxu0 %v5754_v40  ;;  %v5760_v47 = vpack.c.bf16 %v1728_v34, %v1727_v28  ;;  %v10866_v40 = vld [vmem:[#allocation15_spill] sm:$0xff]  ;;  %v8139_v34 = vld [vmem:[%s7032_s24 + $0x78] sm:$0xff] }
 0x1e1   : > { %5756 = vmatprep.subr.bf16.mxu0 %v10756_v39  ;;  %5484 = vmatprep.mubr.f32.mxu1 %v10862_v56  ;;  %v10867_v19 = vrot.slane %v10866_v40, 1 }
 0x1e3   : > { %2334 = vmatmul.mubr.f32.gmra.mrb[26].mxu0 %v8111_v46  ;;  %v1090_v48 = vsel %vm10844_vm10, %v10868_v60, %v10867_v19  ;;  %5485 = vmatmul.mubr.f32.gmra.mrb[26].mxu1 %v8006_v50  ;;  %vm10525_vm10 = vcmask 1040384  }
 0x1e4   : > { %2338 = vmatprep.mubr.f32.mxu0 %v7379_v29  ;;  %5758 = vmatpush1.bf16.msra.mxu0 %v5757_v24  ;;  %v8129_v29 = vld [vmem:[%s7032_s24 + $0x70] sm:$0xff]  ;;  %v5763_v24 = vpack.c.bf16 %v1730_v15, %v1729_v7  ;;  %v1282_v28 = vsel %vm8116_vm5, %v7991_v16, %v1090_v48  ;;  %v6584_v7 = vld [vmem:[%s7032_s24 + $0xa0] sm:$0xff]  ;;  %v6585_v15 = vld [vmem:[%s7032_s24 + $0xa8] sm:$0xff]  ;;  %vm10918_vm5 = vcmp.lt.s32.totalorder %v7049_v14, 1 }
 0x1e5   : > { %5759 = vmatprep.subr.bf16.mxu0 %v10756_v39  ;;  %5487 = vmatprep.mubr.f32.mxu1 %v7971_v35  ;;  %vm10919_vm8 = vmmov %vm10918_vm5 }
 0x1e7   : > { %2339 = vmatmul.mubr.f32.gmra.mrb[28].mxu0 %v8129_v29  ;;  %5488 = vmatmul.mubr.f32.gmra.mrb[28].mxu1 %v1282_v28 }
 0x1e8   : > { %2343 = vmatprep.mubr.f32.mxu0 %v7834_v36  ;;  %5761 = vmatpush1.bf16.msra.mxu0 %v5760_v47  ;;  %v8145_v36 = vld [vmem:[%s7032_s24 + $0x80] sm:$0xff]  ;;  %v6582_v47 = vld [vmem:[%s7032_s24 + $0x90] sm:$0xff] }
 0x1e9   : > { %5762 = vmatprep.subr.bf16.mxu0 %v10756_v39  ;;  %5490 = vmatprep.mubr.f32.mxu1 %v10862_v56 }
 0x1eb   : > { %2344 = vmatmul.mubr.f32.gmra.mrb[30].mxu0 %v8139_v34  ;;  %5491 = vmatmul.mubr.f32.gmra.mrb[30].mxu1 %v8006_v50 }
 0x1ec   : > { %2348 = vmatprep.mubr.f32.mxu0 %v7419_v44  ;;  %5764 = vmatpush1.bf16.msra.mxu0 %v5763_v24  ;;  %v6583_v44 = vld [vmem:[%s7032_s24 + $0x98] sm:$0xff] }
 0x1ef   : > { %2349 = vmatmul.mubr.f32.gmra.mrb[32].mxu0 %v8145_v36 }
 0x1f0   : > { %2353 = vmatprep.mubr.f32.mxu0 %v7854_v33  ;;  %v10879_v33 = vld [vmem:[#allocation39_spill] sm:$0xff] }
 0x1f3   : > { %2354 = vmatmul.mubr.f32.gmra.mrb[34].mxu0 %v8150_v52 }
 0x1f4   : > { %2358 = vmatprep.mubr.f32.mxu0 %v10807_v2  ;;  %v10880_v2 = vld [vmem:[#allocation44_spill] sm:$0xff] }
 0x1f7   : > { %2359 = vmatmul.mubr.f32.gmra.mrb[36].mxu0 %v6582_v47 }
 0x1f8   : > { %2363 = vmatprep.mubr.f32.mxu0 %v7874_v13  ;;  %v10881_v13 = vld [vmem:[#allocation45_spill] sm:$0xff] }
 0x1fb   : > { %2364 = vmatmul.mubr.f32.gmra.mrb[38].mxu0 %v6583_v44 }
 0x1fc   : > { %2368 = vmatprep.mubr.f32.mxu0 %v10817_v51  ;;  %v6587_v51 = vld [vmem:[%s7032_s24 + $0xb8] sm:$0xff] }
 0x1ff   : > { %2369 = vmatmul.mubr.f32.gmra.mrb[40].mxu0 %v6584_v7 }
 0x200   : > { %2373 = vmatprep.mubr.f32.mxu0 %v7894_v8  ;;  %v10883_v8 = vld [vmem:[#allocation51_spill] sm:$0xff] }
 0x203   : > { %2374 = vmatmul.mubr.f32.gmra.mrb[42].mxu0 %v6585_v15 }
 0x204   : > { %2378 = vmatprep.mubr.f32.mxu0 %v10827_v6  ;;  %v6586_v6 = vld [vmem:[%s7032_s24 + $0xb0] sm:$0xff] }
 0x207   : > { %2379 = vmatmul.mubr.f32.gmra.mrb[44].mxu0 %v10813_v41  ;;  %v10882_v41 = vld [vmem:[#allocation50_spill] sm:$0xff] }
 0x208   : > { %2383 = vmatprep.mubr.f32.mxu0 %v7914_v20 }
 0x20b   : > { %2384 = vmatmul.mubr.f32.gmra.mrb[46].mxu0 %v10825_v25  ;;  %v10878_v25 = vld [vmem:[#allocation38_spill] sm:$0xff] }
 0x20c   : > { %2388 = vmatprep.mubr.f32.mxu0 %v10836_v55  ;;  %v6589_v55 = vld [vmem:[%s7032_s24 + $0xc8] sm:$0xff] }
 0x20f   : > { %2389 = vmatmul.mubr.f32.gmra.mrb[48].mxu0 %v10823_v9  ;;  %v6588_v9 = vld [vmem:[%s7032_s24 + $0xc0] sm:$0xff] }
 0x210   : > { %2393 = vmatprep.mubr.f32.mxu0 %v7938_v32  ;;  %v10877_v32 = vld [vmem:[#allocation34_spill] sm:$0xff] }
 0x213   : > { %2394 = vmatmul.mubr.f32.gmra.mrb[50].mxu0 %v10833_v61  ;;  %v10884_v61 = vld [vmem:[#allocation56_spill] sm:$0xff] }
 0x214   : > { %2398 = vmatprep.mubr.f32.mxu0 %v10853_v31 }
 0x217   : > { %2399 = vmatmul.mubr.f32.gmra.mrb[52].mxu0 %v10831_v43 }
 0x218   : > { %2403 = vmatprep.mubr.f32.mxu0 %v7978_v45  ;;  %v10886_v45 = vld [vmem:[#allocation62_spill] sm:$0xff] }
 0x21b   : > { %2404 = vmatmul.mubr.f32.gmra.mrb[54].mxu0 %v10842_v57 }
 0x21c   : > { %2408 = vmatprep.mubr.f32.mxu0 %v10862_v56  ;;  %v6591_v56 = vld [vmem:[%s7032_s24 + $0xd8] sm:$0xff] }
 0x21f   : > { %2409 = vmatmul.mubr.f32.gmra.mrb[56].mxu0 %v10840_v58  ;;  %v10885_v58 = vld [vmem:[#allocation57_spill] sm:$0xff] }
 0x220   : > { %2413 = vmatprep.mubr.f32.mxu0 %v8006_v50 }
 0x223   : > { %2414 = vmatmul.mubr.f32.gmra.mrb[58].mxu0 %v10848_v59  ;;  %v6590_v59 = vld [vmem:[%s7032_s24 + $0xd0] sm:$0xff] }
 0x224   : > { %2418 = vmatprep.mubr.f32.mxu0 %v7971_v35  ;;  %v10876_v35 = vld [vmem:[#allocation33_spill] sm:$0xff] }
 0x227   : > { %2419 = vmatmul.mubr.f32.gmra.mrb[60].mxu0 %v7932_v4 }
 0x228   : > { %2423 = vmatprep.mubr.f32.mxu0 %v1282_v28 }
 0x22b   : > { %2424 = vmatmul.mubr.f32.gmra.mrb[62].mxu0 %v7943_v30 }
 0x22c   : > { %2493 = vmatprep.mubr.f32.mxu0 %v8022_v0  ;;  %v6592_v0 = vld [vmem:[%s7032_s24 + $0xe0] sm:$0xff] }
 0x22f   : > { %2494 = vmatmul.mubr.f32.vlgmr.msra.gmra.mrb[0].mxu0 %v7102_v5  ;;  %v10869_v5 = vld [vmem:[#allocation21_spill] sm:$0xff] }
 0x230   : > { %2498 = vmatprep.mubr.f32.mxu0 %v8030_v10 }
 0x233   : > { %2499 = vmatmul.mubr.f32.gmra.mrb[2].mxu0 %v7115_v23  ;;  %v10870_v23 = vld [vmem:[#allocation23_spill] sm:$0xff] }
 0x234   : > { %2503 = vmatprep.mubr.f32.mxu0 %v8038_v18  ;;  %v10887_v18 = vld [vmem:[#allocation65_spill] sm:$0xff] }
 0x237   : > { %2504 = vmatmul.mubr.f32.gmra.mrb[4].mxu0 %v7194_v53  ;;  %v10871_v53 = vld [vmem:[#allocation24_spill] sm:$0xff] }
 0x238   : > { %2508 = vmatprep.mubr.f32.mxu0 %v8046_v54  ;;  %v6593_v54 = vld [vmem:[%s7032_s24 + $0xe8] sm:$0xff] }
 0x23b   : > { %2509 = vmatmul.mubr.f32.gmra.mrb[6].mxu0 %v7205_v63  ;;  %v10872_v63 = vld [vmem:[#allocation26_spill] sm:$0xff] }
 0x23c   : > { %2513 = vmatprep.mubr.f32.mxu0 %v8054_v38 }
 0x23f   : > { %2514 = vmatmul.mubr.f32.gmra.mrb[8].mxu0 %v7234_v21  ;;  %v10873_v21 = vld [vmem:[#allocation27_spill] sm:$0xff] }
 0x240   : > { %2518 = vmatprep.mubr.f32.mxu0 %v8062_v1 }
 0x243   : > { %2519 = vmatmul.mubr.f32.gmra.mrb[10].mxu0 %v7245_v37  ;;  %v10874_v37 = vld [vmem:[#allocation29_spill] sm:$0xff] }
 0x244   : > { %2523 = vmatprep.mubr.f32.mxu0 %v8070_v12  ;;  %v10888_v12 = vld [vmem:[#allocation48_spill] sm:$0xff] }
 0x247   : > { %2524 = vmatmul.mubr.f32.gmra.mrb[12].mxu0 %v7274_v49  ;;  %v10875_v49 = vld [vmem:[#allocation30_spill] sm:$0xff] }
 0x248   : > { %2528 = vmatprep.mubr.f32.mxu0 %v8078_v17 }
 0x24b   : > { %2529 = vmatmul.mubr.f32.gmra.mrb[14].mxu0 %v10869_v5  ;;  %v8299_v5 = vld [vmem:[%s10372_s2] ss:$0 sm:$0xff] }
 0x24c   : > { %2533 = vmatprep.mubr.f32.mxu0 %v8086_v22 }
 0x24f   : > { %2534 = vmatmul.mubr.f32.gmra.mrb[16].mxu0 %v10870_v23 }
 0x250   : > { %2538 = vmatprep.mubr.f32.mxu0 %v8094_v3 }
 0x253   : > { %2539 = vmatmul.mubr.f32.gmra.mrb[18].mxu0 %v10871_v53 }
 0x254   : > { %2543 = vmatprep.mubr.f32.mxu0 %v8103_v42 }
 0x257   : > { %2544 = vmatmul.mubr.f32.gmra.mrb[20].mxu0 %v10872_v63 }
 0x258   : > { %2548 = vmatprep.mubr.f32.mxu0 %v8111_v46 }
 0x25b   : > { %2549 = vmatmul.mubr.f32.gmra.mrb[22].mxu0 %v10873_v21 }
 0x25c   : > { %2553 = vmatprep.mubr.f32.mxu0 %v8129_v29 }
 0x25f   : > { %2554 = vmatmul.mubr.f32.gmra.mrb[24].mxu0 %v10874_v37 }
 0x260   : > { %2558 = vmatprep.mubr.f32.mxu0 %v8139_v34 }
 0x263   : > { %2559 = vmatmul.mubr.f32.gmra.mrb[26].mxu0 %v10875_v49 }
 0x264   : > { %2563 = vmatprep.mubr.f32.mxu0 %v8145_v36 }
 0x267   : > { %2564 = vmatmul.mubr.f32.gmra.mrb[28].mxu0 %v10876_v35 }
 0x268   : > { %2568 = vmatprep.mubr.f32.mxu0 %v8150_v52 }
 0x26b   : > { %2569 = vmatmul.mubr.f32.gmra.mrb[30].mxu0 %v10877_v32 }
 0x26c   : > { %2573 = vmatprep.mubr.f32.mxu0 %v6582_v47 }
 0x26f   : > { %2574 = vmatmul.mubr.f32.gmra.mrb[32].mxu0 %v10878_v25 }
 0x270   : > { %2578 = vmatprep.mubr.f32.mxu0 %v6583_v44 }
 0x273   : > { %2579 = vmatmul.mubr.f32.gmra.mrb[34].mxu0 %v10879_v33 }
 0x274   : > { %2583 = vmatprep.mubr.f32.mxu0 %v6584_v7 }
 0x277   : > { %2584 = vmatmul.mubr.f32.gmra.mrb[36].mxu0 %v10880_v2 }
 0x278   : > { %2588 = vmatprep.mubr.f32.mxu0 %v6585_v15 }
 0x27b   : > { %2589 = vmatmul.mubr.f32.gmra.mrb[38].mxu0 %v10881_v13 }
 0x27c   : > { %2593 = vmatprep.mubr.f32.mxu0 %v6586_v6 }
 0x27f   : > { %2594 = vmatmul.mubr.f32.gmra.mrb[40].mxu0 %v10882_v41 }
 0x280   : > { %2598 = vmatprep.mubr.f32.mxu0 %v6587_v51 }
 0x282   : > { %v8221_v20 = vpop.f32.mrb[0].mxu1 }
 0x283   : > { %2599 = vmatmul.mubr.f32.gmra.mrb[42].mxu0 %v10883_v8  ;;  %v2720_v43 = vpop.f32.mrb[1].mxu1 }
 0x284   : > { %2603 = vmatprep.mubr.f32.mxu0 %v6588_v9 }
 0x286   : > { %v8226_v57 = vpop.f32.mrb[2].mxu1 }
 0x287   : > { %2604 = vmatmul.mubr.f32.gmra.mrb[44].mxu0 %v10884_v61  ;;  %v2730_v31 = vpop.f32.mrb[3].mxu1 }
 0x288   : > { %2608 = vmatprep.mubr.f32.mxu0 %v6589_v55 }
 0x28a   : > { %v8232_v50 = vpop.f32.mrb[4].mxu1 }
 0x28b   : > { %2609 = vmatmul.mubr.f32.gmra.mrb[46].mxu0 %v10885_v58  ;;  %v2740_v10 = vpop.f32.mrb[5].mxu1 }
 0x28c   : > { %2613 = vmatprep.mubr.f32.mxu0 %v6590_v59 }
 0x28e   : > { %v8238_v38 = vpop.f32.mrb[6].mxu1 }
 0x28f   : > { %2614 = vmatmul.mubr.f32.gmra.mrb[48].mxu0 %v10886_v45  ;;  %v8241_v1 = vpop.f32.mrb[7].mxu1 }
 0x290   : > { %2618 = vmatprep.mubr.f32.mxu0 %v6591_v56  ;;  %v3571_v56 = vld [vmem:[#allocation7] sm:$0xff] }
 0x293   : > { %2619 = vmatmul.mubr.f32.gmra.mrb[50].mxu0 %v7633_v11  ;;  %v8246_v11 = vpop.f32.mrb[8].mxu1 }
 0x294   : > { %2623 = vmatprep.mubr.f32.mxu0 %v6592_v0  ;;  %v8248_v17 = vpop.f32.mrb[9].mxu1 }
 0x296   : > { %v8252_v22 = vpop.f32.mrb[10].mxu1 }
 0x297   : > { %2624 = vmatmul.mubr.f32.gmra.mrb[52].mxu0 %v10887_v18 }
 0x298   : > { %2628 = vmatprep.mubr.f32.mxu0 %v6593_v54 }
 0x29b   : > { %2629 = vmatmul.mubr.f32.gmra.mrb[54].mxu0 %v7664_v26 }
 0x29c   : > { %2633 = vmatprep.mubr.f32.mxu0 %v7932_v4  ;;  %v8254_v4 = vpop.f32.mrb[11].mxu1 }
 0x29d   : > { %v8256_v3 = vpop.f32.mrb[12].mxu1 }
 0x29e   : > { %v8258_v42 = vpop.f32.mrb[13].mxu1 }
 0x29f   : > { %2634 = vmatmul.mubr.f32.gmra.mrb[56].mxu0 %v10888_v12 }
 0x2a0   : > { %2638 = vmatprep.mubr.f32.mxu0 %v7943_v30  ;;  %v8260_v30 = vpop.f32.mrb[14].mxu1 }
 0x2a3   : > { %2639 = vmatmul.mubr.f32.gmra.mrb[58].mxu0 %v7991_v16  ;;  %v8262_v16 = vpop.f32.mrb[15].mxu1 }
 0x2a4   : > { %2643 = vmatprep.mubr.f32.mxu0 %v6592_v0  ;;  %v8264_v46 = vpop.f32.mrb[16].mxu1  ;;  %v3572_v0 = vld [vmem:[#allocation7 + $0x8] sm:$0xff] }
 0x2a5   : > { %v8266_v40 = vpop.f32.mrb[17].mxu1  ;;  %v5798_v12 = vpack.c.bf16 %v3572_v0, %v3571_v56 }
 0x2a6   : > { %v8268_v19 = vpop.f32.mrb[18].mxu1 }
 0x2a7   : > { %2644 = vmatmul.mubr.f32.gmra.mrb[60].mxu0 %v10887_v18  ;;  %v8270_v60 = vpop.f32.mrb[19].mxu1  ;;  %v3573_v18 = vld [vmem:[#allocation7 + $0x10] sm:$0xff]  ;;  %5799 = vmatpush1.bf16.msra.mxu1 %v5798_v12 }
 0x2a8   : > { %2648 = vmatprep.mubr.f32.mxu0 %v6593_v54  ;;  %5800 = vmatprep.subr.bf16.mxu1 %v10756_v39 }
 0x2ab   : > { %2649 = vmatmul.mubr.f32.gmra.mrb[62].mxu0 %v7664_v26  ;;  %v8272_v26 = vpop.f32.mrb[20].mxu1 }
 0x2ac   : > { %v8274_v48 = vpop.f32.mrb[21].mxu1 }
 0x2ae   : > { %v8276_v29 = vpop.f32.mrb[22].mxu1 }
 0x2af   : > { %v8278_v24 = vpop.f32.mrb[23].mxu1 }
 0x2b2   : > { %v8280_v28 = vpop.f32.mrb[24].mxu1 }
 0x2b3   : > { %v8282_v34 = vpop.f32.mrb[25].mxu1 }
 0x2b6   : > { %v8284_v36 = vpop.f32.mrb[26].mxu1 }
 0x2b7   : > { %v8286_v52 = vpop.f32.mrb[27].mxu1 }
 0x2ba   : > { %v8288_v47 = vpop.f32.mrb[28].mxu1 }
 0x2bb   : > { %v8290_v44 = vpop.f32.mrb[29].mxu1 }
 0x2be   : > { %v8292_v7 = vpop.f32.mrb[30].mxu1 }
 0x2bf   : > { %v8294_v15 = vpop.f32.mrb[31].mxu1 }
 0x302   : > { %v2495_v23 = vpop.f32.mrb[0].mxu0 }
 0x303   : > { %v6037_v53 = vadd.f32 %v8299_v5, %v2495_v23  ;;  %v2497_v63 = vpop.f32.mrb[1].mxu0  ;;  %v3574_v23 = vld [vmem:[#allocation7 + $0x18] sm:$0xff] }
 0x305   : > { %v8302_v21 = vadd.f32 %v6037_v53, %v2720_v43 }
 0x306   : > { %v2500_v37 = vpop.f32.mrb[2].mxu0 }
 0x307   : > { %v6038_v49 = vadd.f32 %v8299_v5, %v2500_v37  ;;  %v2502_v35 = vpop.f32.mrb[3].mxu0  ;;  %v3575_v37 = vld [vmem:[#allocation7 + $0x20] sm:$0xff] }
 0x309   : > { %v8306_v32 = vadd.f32 %v6038_v49, %v8221_v20 }
 0x30a   : > { %v2505_v25 = vpop.f32.mrb[4].mxu0 }
 0x30b   : > { %v6039_v33 = vadd.f32 %v8299_v5, %v2505_v25  ;;  %v2507_v2 = vpop.f32.mrb[5].mxu0 }
 0x30d   : > { %v8309_v13 = vadd.f32 %v6039_v33, %v2730_v31 }
 0x30e   : > { %v2510_v6 = vpop.f32.mrb[6].mxu0 }
 0x30f   : > { %v6040_v41 = vadd.f32 %v8299_v5, %v2510_v6  ;;  %v2512_v51 = vpop.f32.mrb[7].mxu0  ;;  %v3578_v6 = vld [vmem:[#allocation7 + $0x38] sm:$0xff] }
 0x311   : > { %v8313_v8 = vadd.f32 %v6040_v41, %v8226_v57 }
 0x312   : > { %v2515_v9 = vpop.f32.mrb[8].mxu0 }
 0x313   : > { %v6041_v43 = vadd.f32 %v8299_v5, %v2515_v9  ;;  %v2517_v61 = vpop.f32.mrb[9].mxu0 }
 0x315   : > { %v8316_v55 = vadd.f32 %v6041_v43, %v2740_v10  ;;  %v5801_v10 = vpack.c.bf16 %v3574_v23, %v3573_v18 }
 0x316   : > { %v2520_v20 = vpop.f32.mrb[10].mxu0 }
 0x317   : > { %v6042_v58 = vadd.f32 %v8299_v5, %v2520_v20  ;;  %v2522_v59 = vpop.f32.mrb[11].mxu0  ;;  %5802 = vmatpush1.bf16.msra.mxu1 %v5801_v10  ;;  %v3580_v20 = vld [vmem:[#allocation7 + $0x48] sm:$0xff] }
 0x318   : > { %5803 = vmatprep.subr.bf16.mxu1 %v10756_v39 }
 0x319   : > { %v8320_v31 = vadd.f32 %v6042_v58, %v8232_v50  ;;  %v3576_v50 = vld [vmem:[#allocation7 + $0x28] sm:$0xff] }
 0x31a   : > { %v2525_v45 = vpop.f32.mrb[12].mxu0  ;;  %v5804_v33 = vpack.c.bf16 %v3576_v50, %v3575_v37 }
 0x31b   : > { %v6043_v57 = vadd.f32 %v8299_v5, %v2525_v45  ;;  %v2527_v54 = vpop.f32.mrb[13].mxu0 }
 0x31c   : > { %5805 = vmatpush1.bf16.msra.mxu1 %v5804_v33 }
 0x31d   : > { %v8324_v53 = vadd.f32 %v6043_v57, %v8241_v1  ;;  %v3577_v1 = vld [vmem:[#allocation7 + $0x30] sm:$0xff]  ;;  %5806 = vmatprep.subr.bf16.mxu1 %v10756_v39 }
 0x31e   : > { %v2530_v63 = vpop.f32.mrb[14].mxu0  ;;  %v5807_v43 = vpack.c.bf16 %v3578_v6, %v3577_v1 }
 0x31f   : > { %v6044_v49 = vadd.f32 %v8299_v5, %v2530_v63  ;;  %v2532_v35 = vpop.f32.mrb[15].mxu0 }
 0x320   : > { %5808 = vmatpush1.bf16.msra.mxu1 %v5807_v43 }
 0x321   : > { %v8329_v25 = vadd.f32 %v6044_v49, %v8238_v38  ;;  %v3579_v38 = vld [vmem:[#allocation7 + $0x40] sm:$0xff]  ;;  %5809 = vmatprep.subr.bf16.mxu1 %v10756_v39 }
 0x322   : > { %v2535_v2 = vpop.f32.mrb[16].mxu0  ;;  %v5810_v56 = vpack.c.bf16 %v3580_v20, %v3579_v38 }
 0x323   : > { %v6045_v41 = vadd.f32 %v8299_v5, %v2535_v2  ;;  %v2537_v51 = vpop.f32.mrb[17].mxu0 }
 0x324   : > { %5811 = vmatpush1.bf16.msra.mxu1 %v5810_v56  ;;  %v2879_v56 = vadd.f32 %v8306_v32, %v8302_v21 }
 0x325   : > { %v8334_v9 = vadd.f32 %v6045_v41, %v8248_v17  ;;  %5812 = vmatprep.subr.bf16.mxu1 %v10756_v39 }
 0x326   : > { %v2540_v61 = vpop.f32.mrb[18].mxu0 }
 0x327   : > { %v6046_v58 = vadd.f32 %v8299_v5, %v2540_v61  ;;  %v2542_v59 = vpop.f32.mrb[19].mxu0 }
 0x329   : > { %v8339_v45 = vadd.f32 %v6046_v58, %v8246_v11 }
 0x32a   : > { %v2545_v0 = vpop.f32.mrb[20].mxu0 }
 0x32b   : > { %v6047_v17 = vadd.f32 %v8299_v5, %v2545_v0  ;;  %v2547_v18 = vpop.f32.mrb[21].mxu0 }
 0x32c   : > { %v2880_v18 = vadd.f32 %v2879_v56, %v8309_v13 }
 0x32d   : > { %v8344_v57 = vadd.f32 %v6047_v17, %v8254_v4 }
 0x32e   : > { %v2550_v54 = vpop.f32.mrb[22].mxu0 }
 0x32f   : > { %v6048_v12 = vadd.f32 %v8299_v5, %v2550_v54  ;;  %v2552_v23 = vpop.f32.mrb[23].mxu0 }
 0x331   : > { %v8349_v11 = vadd.f32 %v6048_v12, %v8252_v22 }
 0x332   : > { %v2555_v10 = vpop.f32.mrb[24].mxu0 }
 0x333   : > { %v6049_v63 = vadd.f32 %v8299_v5, %v2555_v10  ;;  %v2557_v37 = vpop.f32.mrb[25].mxu0 }
 0x334   : > { %v2922_v37 = vmul.f32 %v8316_v55, %v8316_v55 }
 0x335   : > { %v8353_v50 = vadd.f32 %v6049_v63, %v8258_v42  ;;  %v2881_v63 = vadd.f32 %v2880_v18, %v8313_v8 }
 0x336   : > { %v2560_v49 = vpop.f32.mrb[26].mxu0 }
 0x337   : > { %v6050_v4 = vadd.f32 %v8299_v5, %v2560_v49  ;;  %v2562_v35 = vpop.f32.mrb[27].mxu0 }
 0x338   : > { %v2882_v35 = vadd.f32 %v2881_v63, %v8316_v55 }
 0x339   : > { %v8357_v33 = vadd.f32 %v6050_v4, %v8256_v3  ;;  %v2919_v3 = vmul.f32 %v8306_v32, %v8306_v32 }
 0x33a   : > { %v2565_v2 = vpop.f32.mrb[28].mxu0 }
 0x33b   : > { %v6051_v1 = vadd.f32 %v8299_v5, %v2565_v2  ;;  %v2567_v6 = vpop.f32.mrb[29].mxu0 }
 0x33d   : > { %v8361_v22 = vadd.f32 %v6051_v1, %v8262_v16  ;;  %v2918_v16 = vmul.f32 %v8302_v21, %v8302_v21  ;;  %v2923_v1 = vmul.f32 %v8320_v31, %v8320_v31 }
 0x33e   : > { %v2570_v41 = vpop.f32.mrb[30].mxu0 }
 0x33f   : > { %v6052_v51 = vadd.f32 %v8299_v5, %v2570_v41  ;;  %v2572_v43 = vpop.f32.mrb[31].mxu0  ;;  %v2950_v54 = vadd.f32 %v2919_v3, %v2918_v16 }
 0x340   : > { %v2924_v43 = vmul.f32 %v8324_v53, %v8324_v53 }
 0x341   : > { %v8365_v42 = vadd.f32 %v6052_v51, %v8260_v30  ;;  %v2920_v30 = vmul.f32 %v8309_v13, %v8309_v13  ;;  %v2883_v51 = vadd.f32 %v2882_v35, %v8320_v31 }
 0x342   : > { %v2575_v61 = vpop.f32.mrb[32].mxu0 }
 0x343   : > { %v6053_v38 = vadd.f32 %v8299_v5, %v2575_v61  ;;  %v2577_v20 = vpop.f32.mrb[33].mxu0  ;;  %v2951_v10 = vadd.f32 %v2950_v54, %v2920_v30 }
 0x344   : > { %v2884_v20 = vadd.f32 %v2883_v51, %v8324_v53 }
 0x345   : > { %v8371_v58 = vadd.f32 %v6053_v38, %v8266_v40  ;;  %v2921_v40 = vmul.f32 %v8313_v8, %v8313_v8 }
 0x346   : > { %v2580_v59 = vpop.f32.mrb[34].mxu0  ;;  %v2885_v30 = vadd.f32 %v2884_v20, %v8329_v25 }
 0x347   : > { %v6054_v0 = vadd.f32 %v8299_v5, %v2580_v59  ;;  %v2582_v17 = vpop.f32.mrb[35].mxu0  ;;  %v2952_v2 = vadd.f32 %v2951_v10, %v2921_v40  ;;  %v2925_v59 = vmul.f32 %v8329_v25, %v8329_v25 }
 0x348   : > { %v2886_v54 = vadd.f32 %v2885_v30, %v8334_v9 }
 0x349   : > { %v8384_v12 = vadd.f32 %v6054_v0, %v8264_v46  ;;  %v2953_v41 = vadd.f32 %v2952_v2, %v2922_v37  ;;  %v2926_v0 = vmul.f32 %v8334_v9, %v8334_v9 }
 0x34a   : > { %v2585_v23 = vpop.f32.mrb[36].mxu0  ;;  %v2887_v37 = vadd.f32 %v2886_v54, %v8339_v45 }
 0x34b   : > { %v6055_v49 = vadd.f32 %v8299_v5, %v2585_v23  ;;  %v2587_v4 = vpop.f32.mrb[37].mxu0  ;;  %v2954_v3 = vadd.f32 %v2953_v41, %v2923_v1  ;;  %v2927_v23 = vmul.f32 %v8339_v45, %v8339_v45 }
 0x34c   : > { %v2888_v2 = vadd.f32 %v2887_v37, %v8344_v57 }
 0x34d   : > { %v8394_v6 = vadd.f32 %v6055_v49, %v8270_v60  ;;  %v2955_v56 = vadd.f32 %v2954_v3, %v2924_v43  ;;  %v2928_v49 = vmul.f32 %v8344_v57, %v8344_v57 }
 0x34e   : > { %v2590_v46 = vpop.f32.mrb[38].mxu0  ;;  %v2889_v43 = vadd.f32 %v2888_v2, %v8349_v11 }
 0x34f   : > { %v6056_v61 = vadd.f32 %v8299_v5, %v2590_v46  ;;  %v2592_v38 = vpop.f32.mrb[39].mxu0  ;;  %v2956_v40 = vadd.f32 %v2955_v56, %v2925_v59  ;;  %v2929_v46 = vmul.f32 %v8349_v11, %v8349_v11 }
 0x350   : > { %v2890_v3 = vadd.f32 %v2889_v43, %v8353_v50 }
 0x351   : > { %v8404_v16 = vadd.f32 %v6056_v61, %v8268_v19  ;;  %v2957_v63 = vadd.f32 %v2956_v40, %v2926_v0  ;;  %v2930_v61 = vmul.f32 %v8353_v50, %v8353_v50 }
 0x352   : > { %v2595_v60 = vpop.f32.mrb[40].mxu0  ;;  %v2891_v0 = vadd.f32 %v2890_v3, %v8357_v33 }
 0x353   : > { %v6057_v17 = vadd.f32 %v8299_v5, %v2595_v60  ;;  %v2597_v18 = vpop.f32.mrb[41].mxu0  ;;  %v2958_v1 = vadd.f32 %v2957_v63, %v2927_v23  ;;  %v2931_v60 = vmul.f32 %v8357_v33, %v8357_v33 }
 0x354   : > { %v2892_v40 = vadd.f32 %v2891_v0, %v8361_v22 }
 0x355   : > { %v8414_v10 = vadd.f32 %v6057_v17, %v8274_v48  ;;  %v2959_v51 = vadd.f32 %v2958_v1, %v2928_v49  ;;  %v2932_v17 = vmul.f32 %v8361_v22, %v8361_v22 }
 0x356   : > { %v2600_v19 = vpop.f32.mrb[42].mxu0  ;;  %v2893_v49 = vadd.f32 %v2892_v40, %v8365_v42 }
 0x357   : > { %v6058_v4 = vadd.f32 %v8299_v5, %v2600_v19  ;;  %v2602_v35 = vpop.f32.mrb[43].mxu0  ;;  %v2960_v59 = vadd.f32 %v2959_v51, %v2929_v46  ;;  %v2933_v19 = vmul.f32 %v8365_v42, %v8365_v42 }
 0x358   : > { %v2894_v1 = vadd.f32 %v2893_v49, %v8371_v58 }
 0x359   : > { %v8424_v41 = vadd.f32 %v6058_v4, %v8272_v26  ;;  %v2961_v30 = vadd.f32 %v2960_v59, %v2930_v61  ;;  %v2934_v4 = vmul.f32 %v8371_v58, %v8371_v58 }
 0x35a   : > { %v2605_v48 = vpop.f32.mrb[44].mxu0  ;;  %v2895_v61 = vadd.f32 %v2894_v1, %v8384_v12 }
 0x35b   : > { %v6059_v38 = vadd.f32 %v8299_v5, %v2605_v48  ;;  %v2607_v20 = vpop.f32.mrb[45].mxu0  ;;  %v2962_v23 = vadd.f32 %v2961_v30, %v2931_v60  ;;  %v2935_v48 = vmul.f32 %v8384_v12, %v8384_v12 }
 0x35c   : > { %v2896_v59 = vadd.f32 %v2895_v61, %v8394_v6 }
 0x35d   : > { %v8434_v56 = vadd.f32 %v6059_v38, %v8278_v24  ;;  %v2963_v37 = vadd.f32 %v2962_v23, %v2932_v17  ;;  %v2936_v38 = vmul.f32 %v8394_v6, %v8394_v6 }
 0x35e   : > { %v2610_v26 = vpop.f32.mrb[46].mxu0  ;;  %v2897_v17 = vadd.f32 %v2896_v59, %v8404_v16 }
 0x35f   : > { %v6060_v18 = vadd.f32 %v8299_v5, %v2610_v26  ;;  %v2612_v54 = vpop.f32.mrb[47].mxu0  ;;  %v2964_v46 = vadd.f32 %v2963_v37, %v2933_v19  ;;  %v2937_v26 = vmul.f32 %v8404_v16, %v8404_v16 }
 0x360   : > { %v2898_v23 = vadd.f32 %v2897_v17, %v8414_v10 }
 0x361   : > { %v8444_v63 = vadd.f32 %v6060_v18, %v8276_v29  ;;  %v2965_v43 = vadd.f32 %v2964_v46, %v2934_v4  ;;  %v2938_v18 = vmul.f32 %v8414_v10, %v8414_v10 }
 0x362   : > { %v2615_v24 = vpop.f32.mrb[48].mxu0  ;;  %v2899_v4 = vadd.f32 %v2898_v23, %v8424_v41 }
 0x363   : > { %v6061_v35 = vadd.f32 %v8299_v5, %v2615_v24  ;;  %v2617_v2 = vpop.f32.mrb[49].mxu0  ;;  %v2966_v60 = vadd.f32 %v2965_v43, %v2935_v48  ;;  %v2939_v24 = vmul.f32 %v8424_v41, %v8424_v41 }
 0x364   : > { %v2900_v46 = vadd.f32 %v2899_v4, %v8434_v56 }
 0x365   : > { %v8454_v51 = vadd.f32 %v6061_v35, %v8282_v34  ;;  %v2967_v0 = vadd.f32 %v2966_v60, %v2936_v38  ;;  %v2940_v35 = vmul.f32 %v8434_v56, %v8434_v56 }
 0x366   : > { %v2620_v29 = vpop.f32.mrb[50].mxu0  ;;  %v2901_v38 = vadd.f32 %v2900_v46, %v8444_v63 }
 0x367   : > { %v6062_v20 = vadd.f32 %v8299_v5, %v2620_v29  ;;  %v2622_v3 = vpop.f32.mrb[51].mxu0  ;;  %v2968_v19 = vadd.f32 %v2967_v0, %v2937_v26  ;;  %v2941_v29 = vmul.f32 %v8444_v63, %v8444_v63 }
 0x368   : > { %v2902_v60 = vadd.f32 %v2901_v38, %v8454_v51 }
 0x369   : > { %v8464_v30 = vadd.f32 %v6062_v20, %v8280_v28  ;;  %v2969_v49 = vadd.f32 %v2968_v19, %v2938_v18  ;;  %v2942_v20 = vmul.f32 %v8454_v51, %v8454_v51 }
 0x36a   : > { %v2625_v34 = vpop.f32.mrb[52].mxu0 }
 0x36b   : > { %v6063_v54 = vadd.f32 %v8299_v5, %v2625_v34  ;;  %v2627_v40 = vpop.f32.mrb[53].mxu0  ;;  %v2970_v48 = vadd.f32 %v2969_v49, %v2939_v24  ;;  %v2943_v34 = vmul.f32 %v8464_v30, %v8464_v30  ;;  %v2903_v18 = vadd.f32 %v2902_v60, %v8464_v30 }
 0x36d   : > { %v8474_v37 = vadd.f32 %v6063_v54, %v8286_v52  ;;  %v2971_v61 = vadd.f32 %v2970_v48, %v2940_v35 }
 0x36e   : > { %v2630_v28 = vpop.f32.mrb[54].mxu0 }
 0x36f   : > { %v6064_v2 = vadd.f32 %v8299_v5, %v2630_v28  ;;  %v2632_v1 = vpop.f32.mrb[55].mxu0  ;;  %v2972_v26 = vadd.f32 %v2971_v61, %v2941_v29  ;;  %v2944_v54 = vmul.f32 %v8474_v37, %v8474_v37  ;;  %v2904_v19 = vadd.f32 %v2903_v18, %v8474_v37 }
 0x371   : > { %v8484_v43 = vadd.f32 %v6064_v2, %v8284_v36  ;;  %v2973_v17 = vadd.f32 %v2972_v26, %v2942_v20 }
 0x372   : > { %v2635_v52 = vpop.f32.mrb[56].mxu0 }
 0x373   : > { %v6065_v3 = vadd.f32 %v8299_v5, %v2635_v52  ;;  %v2637_v59 = vpop.f32.mrb[57].mxu0  ;;  %v2974_v24 = vadd.f32 %v2973_v17, %v2943_v34  ;;  %v2945_v28 = vmul.f32 %v8484_v43, %v8484_v43  ;;  %v2905_v35 = vadd.f32 %v2904_v19, %v8484_v43 }
 0x375   : > { %v8494_v0 = vadd.f32 %v6065_v3, %v8290_v44  ;;  %v2975_v4 = vadd.f32 %v2974_v24, %v2944_v54  ;;  %v3581_v24 = vld [vmem:[#allocation7 + $0x50] sm:$0xff] }
 0x376   : > { %v2640_v36 = vpop.f32.mrb[58].mxu0 }
 0x377   : > { %v6066_v40 = vadd.f32 %v8299_v5, %v2640_v36  ;;  %v2642_v23 = vpop.f32.mrb[59].mxu0  ;;  %v2946_v2 = vmul.f32 %v8494_v0, %v8494_v0  ;;  %v2906_v48 = vadd.f32 %v2905_v35, %v8494_v0  ;;  %v2976_v29 = vadd.f32 %v2975_v4, %v2945_v28  ;;  %v3582_v28 = vld [vmem:[#allocation7 + $0x58] sm:$0xff] }
 0x379   : > { %v8504_v49 = vadd.f32 %v6066_v40, %v8288_v47  ;;  %v2977_v38 = vadd.f32 %v2976_v29, %v2946_v2 }
 0x37a   : > { %v2645_v44 = vpop.f32.mrb[60].mxu0 }
 0x37b   : > { %v6067_v1 = vadd.f32 %v8299_v5, %v2645_v44  ;;  %v2647_v46 = vpop.f32.mrb[61].mxu0  ;;  %v2947_v52 = vmul.f32 %v8504_v49, %v8504_v49  ;;  %v2907_v20 = vadd.f32 %v2906_v48, %v8504_v49 }
 0x37d   : > { %v8514_v61 = vadd.f32 %v6067_v1, %v8294_v15  ;;  %v2978_v34 = vadd.f32 %v2977_v38, %v2947_v52 }
 0x37e   : > { %v2650_v47 = vpop.f32.mrb[62].mxu0 }
 0x37f   : > { %v2948_v3 = vmul.f32 %v8514_v61, %v8514_v61  ;;  %v6068_v59 = vadd.f32 %v8299_v5, %v2650_v47  ;;  %v2652_v60 = vpop.f32.mrb[63].mxu0  ;;  %v2908_v26 = vadd.f32 %v2907_v20, %v8514_v61  ;;  %v5813_v5 = vpack.c.bf16 %v3582_v28, %v3581_v24  ;;  %v3583_v20 = vld [vmem:[#allocation7 + $0x60] sm:$0xff]  ;;  %v3702_v24 = vld [vmem:[#allocation7 + $0x418] sm:$0xff] }
 0x380   : > { %v3585_v60 = vld [vmem:[#allocation7 + $0x70] sm:$0xff] }
 0x381   : > { %v8522_v36 = vadd.f32 %v6068_v59, %v8292_v7  ;;  %v2979_v17 = vadd.f32 %v2978_v34, %v2948_v3  ;;  %5814 = vmatpush1.bf16.msra.mxu1 %v5813_v5  ;;  %v3584_v3 = vld [vmem:[#allocation7 + $0x68] sm:$0xff]  ;;  %v3589_v5 = vld [vmem:[#allocation7 + $0x90] sm:$0xff] }
 0x382   : > { %5815 = vmatprep.subr.bf16.mxu1 %v10756_v39  ;;  %v5816_v59 = vpack.c.bf16 %v3584_v3, %v3583_v20  ;;  %v3593_v20 = vld [vmem:[#allocation7 + $0xb0] sm:$0xff]  ;;  %v3594_v3 = vld [vmem:[#allocation7 + $0xb8] sm:$0xff] }
 0x383   : > { %v2909_v15 = vadd.f32 %v2908_v26, %v8522_v36  ;;  %v2949_v18 = vmul.f32 %v8522_v36, %v8522_v36  ;;  %v3586_v26 = vld [vmem:[#allocation7 + $0x78] sm:$0xff] }
 0x384   : > { %v5819_v34 = vpack.c.bf16 %v3586_v26, %v3585_v60  ;;  %v3707_v60 = vld [vmem:[#allocation7 + $0x440] sm:$0xff]  ;;  %v3708_v26 = vld [vmem:[#allocation7 + $0x448] sm:$0xff] }
 0x385   : > { %v2910_v54 = vrot.slane %v2909_v15, 4  ;;  %v2980_v40 = vadd.f32 %v2979_v17, %v2949_v18  ;;  %5817 = vmatpush1.bf16.msra.mxu1 %v5816_v59  ;;  %v3699_v17 = vld [vmem:[#allocation7 + $0x400] sm:$0xff]  ;;  %v5831_v59 = vpack.c.bf16 %v3594_v3, %v3593_v20  ;;  %v3601_v3 = vld [vmem:[#allocation7 + $0xf0] sm:$0xff] }
 0x386   : > { %5818 = vmatprep.subr.bf16.mxu1 %v10756_v39 }
 0x387   : > { %v2911_v23 = vadd.f32 %v2910_v54, %v2909_v15  ;;  %v2981_v19 = vrot.slane %v2980_v40, 4  ;;  %v3700_v15 = vld [vmem:[#allocation7 + $0x408] sm:$0xff]  ;;  %v3587_v54 = vld [vmem:[#allocation7 + $0x80] sm:$0xff] }
 0x388   : > { %v8537_v18 = vpack.c.bf16 %v3700_v15, %v3699_v17  ;;  %v3595_v17 = vld [vmem:[#allocation7 + $0xc0] sm:$0xff]  ;;  %v3596_v15 = vld [vmem:[#allocation7 + $0xc8] sm:$0xff] }
 0x389   : > { %v2912_v44 = vrot.slane %v2911_v23, 2  ;;  %v2982_v4 = vadd.f32 %v2981_v19, %v2980_v40  ;;  %5820 = vmatpush1.bf16.msra.mxu1 %v5819_v34  ;;  %v3588_v40 = vld [vmem:[#allocation7 + $0x88] sm:$0xff]  ;;  %v3701_v19 = vld [vmem:[#allocation7 + $0x410] sm:$0xff]  ;;  %v8557_v34 = vpack.c.bf16 %v3708_v26, %v3707_v60  ;;  %v10897_v26 = vlaneseq }
 0x38a   : > { %5821 = vmatprep.subr.bf16.mxu1 %v10756_v39  ;;  %10889 = vst [vmem:[#allocation54_spill] sm:$0xff] %v8537_v18  ;;  %5990 = vmatprep.subr.bf16.mxu0 %v8537_v18  ;;  %v8542_v28 = vpack.c.bf16 %v3702_v24, %v3701_v19  ;;  %v3597_v24 = vld [vmem:[#allocation7 + $0xd0] sm:$0xff] }
 0x38b   : > { %v2913_v35 = vadd.f32 %v2912_v44, %v2911_v23  ;;  %v2983_v2 = vrot.slane %v2982_v4, 2  ;;  %v5822_v23 = vpack.c.bf16 %v3588_v40, %v3587_v54  ;;  %5992 = vmatpush3.bf16.msra.mxu0 %v8537_v18  ;;  %v3590_v44 = vld [vmem:[#allocation7 + $0x98] sm:$0xff]  ;;  %10893 = vst [vmem:[#allocation55_spill] sm:$0xff] %v8557_v34  ;;  %v5834_v54 = vpack.c.bf16 %v3596_v15, %v3595_v17  ;;  %v3709_v40 = vld [vmem:[#allocation7 + $0x450] sm:$0xff] }
 0x38c   : > { %10890 = vst [vmem:[#allocation49_spill] sm:$0xff] %v8542_v28  ;;  %5994 = vmatprep.subr.bf16.mxu0 %v8542_v28  ;;  %v926_v17 = vand.u32 127, %v10897_v26  ;;  %v8594_v26 = vld [vmem:[#allocation7 + $0x120] sm:$0xff] }
 0x38d   : > { %v2914_v7 = vrot.slane %v2913_v35, 1  ;;  %v2984_v1 = vadd.f32 %v2983_v2, %v2982_v4  ;;  %5823 = vmatpush1.bf16.msra.mxu1 %v5822_v23  ;;  %v5825_v4 = vpack.c.bf16 %v3590_v44, %v3589_v5  ;;  %v3704_v2 = vld [vmem:[#allocation7 + $0x428] sm:$0xff]  ;;  %v3710_v23 = vld [vmem:[#allocation7 + $0x458] sm:$0xff] }
 0x38e   : > { %5824 = vmatprep.subr.bf16.mxu1 %v10756_v39  ;;  %v8562_v19 = vpack.c.bf16 %v3710_v23, %v3709_v40  ;;  %v3598_v5 = vld [vmem:[#allocation7 + $0xd8] sm:$0xff]  ;;  %v927_v15 = vand.u32 1, %v926_v17  ;;  %v10898_v40 = vmov 0  ;;  %v8598_v17 = vld [vmem:[#allocation7 + $0x130] sm:$0xff] }
 0x38f   : > { %v2915_v46 = vadd.f32 %v2914_v7, %v2913_v35  ;;  %v2985_v48 = vrot.slane %v2984_v1, 1  ;;  %5996 = vmatpush3.bf16.msra.mxu0 %v8542_v28  ;;  %v3703_v35 = vld [vmem:[#allocation7 + $0x420] sm:$0xff]  ;;  %v5837_v44 = vpack.c.bf16 %v3598_v5, %v3597_v24 }
 0x390   : > { %v8547_v7 = vpack.c.bf16 %v3704_v2, %v3703_v35  ;;  %10894 = vst [vmem:[#allocation61_spill] sm:$0xff] %v8562_v19  ;;  %v3712_v35 = vld [vmem:[#allocation7 + $0x468] sm:$0xff] }
 0x391   : > { %v2986_v29 = vadd.f32 %v2985_v48, %v2984_v1  ;;  %v2917_v52 = vmul.f32 0.00390625, %v2915_v46  ;;  %5826 = vmatpush1.bf16.msra.mxu1 %v5825_v4  ;;  %v3591_v1 = vld [vmem:[#allocation7 + $0xa0] sm:$0xff]  ;;  %v3592_v46 = vld [vmem:[#allocation7 + $0xa8] sm:$0xff] }
 0x392   : > { %5827 = vmatprep.subr.bf16.mxu1 %v10756_v39  ;;  %10891 = vst [vmem:[#allocation53_spill] sm:$0xff] %v8547_v7  ;;  %v5828_v48 = vpack.c.bf16 %v3592_v46, %v3591_v1  ;;  %5998 = vmatprep.subr.bf16.mxu0 %v8547_v7  ;;  %v3711_v4 = vld [vmem:[#allocation7 + $0x460] sm:$0xff]  ;;  %v3600_v46 = vld [vmem:[#allocation7 + $0xe8] sm:$0xff] }
 0x393   : > { %v2987_v47 = vmul.f32 0.00390625, %v2986_v29  ;;  %6000 = vmatpush3.bf16.msra.mxu0 %v8547_v7  ;;  %v3705_v29 = vld [vmem:[#allocation7 + $0x430] sm:$0xff]  ;;  %v8567_v2 = vpack.c.bf16 %v3712_v35, %v3711_v4  ;;  %v3599_v1 = vld [vmem:[#allocation7 + $0xe0] sm:$0xff] }
 0x395   : > { %v8529_v38 = vsel %vm10525_vm10, %v2917_v52, %v2987_v47  ;;  %5829 = vmatpush1.bf16.msra.mxu1 %v5828_v48  ;;  %v3706_v52 = vld [vmem:[#allocation7 + $0x438] sm:$0xff]  ;;  %10895 = vst [vmem:[#allocation59_spill] sm:$0xff] %v8567_v2  ;;  %v5840_v48 = vpack.c.bf16 %v3600_v46, %v3599_v1  ;;  %vm8578_vm10 = vcmp.eq.s32.totalorder %v927_v15, 0 }
 0x396   : > { %2990 = vrot.lane.b32.xlu0 %v8529_v38, %s6790_s18  ;;  %5830 = vmatprep.subr.bf16.mxu1 %v10756_v39  ;;  %v8552_v47 = vpack.c.bf16 %v3706_v52, %v3705_v29  ;;  %v3713_v29 = vld [vmem:[#allocation7 + $0x470] sm:$0xff]  ;;  %v3714_v52 = vld [vmem:[#allocation7 + $0x478] sm:$0xff]  ;;  %v10899_v40 = vsel %vm8578_vm10, 4294967295, %v10898_v40 }
 0x397   : > { %v8572_v20 = vpack.c.bf16 %v3714_v52, %v3713_v29  ;;  %10900 = vst [vmem:[#allocation64_spill] sm:$0xff] %v10899_v40  ;;  %v10529_v29 = vsub.s32 0, %v7049_v14  ;;  %v8586_v52 = vld [vmem:[#allocation7 + $0x100] sm:$0xff]  ;;  %v8600_v15 = vld [vmem:[#allocation7 + $0x138] sm:$0xff]  ;;  %v10902_v40 = vsub.s32 1, %v7049_v14 }
 0x398   : > { %10892 = vst [vmem:[#allocation60_spill] sm:$0xff] %v8552_v47  ;;  %6002 = vmatprep.subr.bf16.mxu0 %v8552_v47 }
 0x399   : > { %5832 = vmatpush1.bf16.msra.mxu1 %v5831_v59  ;;  %6004 = vmatpush3.bf16.msra.mxu0 %v8552_v47  ;;  %10896 = vst [vmem:[#allocation16_spill] sm:$0xff] %v8572_v20  ;;  %v3602_v59 = vld [vmem:[#allocation7 + $0xf8] sm:$0xff] }
 0x39a   : > { %2992 = vrot.lane.b32.xlu0 %v8529_v38, %s6791_s16  ;;  %5833 = vmatprep.subr.bf16.mxu1 %v10756_v39  ;;  %v5843_v60 = vpack.c.bf16 %v3602_v59, %v3601_v3  ;;  %v8588_v3 = vld [vmem:[#allocation7 + $0x108] sm:$0xff]  ;;  %v8590_v59 = vld [vmem:[#allocation7 + $0x110] sm:$0xff] }
 0x39b   : > { %6006 = vmatprep.subr.bf16.mxu0 %v8557_v34 }
 0x39d   : > { %5835 = vmatpush1.bf16.msra.mxu1 %v5834_v54  ;;  %6008 = vmatpush3.bf16.msra.mxu0 %v8557_v34 }
 0x39e   : > { %5836 = vmatprep.subr.bf16.mxu1 %v10756_v39  ;;  %6010 = vmatprep.subr.bf16.mxu0 %v8562_v19 }
 0x3a1   : > { %5838 = vmatpush1.bf16.msra.mxu1 %v5837_v44  ;;  %6012 = vmatpush3.bf16.msra.mxu0 %v8562_v19 }
 0x3a2   : > { %5839 = vmatprep.subr.bf16.mxu1 %v10756_v39  ;;  %6014 = vmatprep.subr.bf16.mxu0 %v8567_v2 }
 0x3a5   : > { %5841 = vmatpush1.bf16.msra.mxu1 %v5840_v48  ;;  %6016 = vmatpush3.bf16.msra.mxu0 %v8567_v2 }
 0x3a6   : > { %5842 = vmatprep.subr.bf16.mxu1 %v10756_v39  ;;  %6018 = vmatprep.subr.bf16.mxu0 %v8572_v20 }
 0x3a9   : > { %5844 = vmatpush1.bf16.msra.mxu1 %v5843_v60  ;;  %6020 = vmatpush3.bf16.msra.mxu0 %v8572_v20  ;;  %v8592_v60 = vld [vmem:[#allocation7 + $0x118] sm:$0xff] }
 0x3aa   : > { %5845 = vmatprep.subr.bf16.mxu1 %v10756_v39 }
 0x408   : > { %v2991_v54 = vpop.permute.xlu0 %2990 }
 0x40c   : > { %v2993_v23 = vpop.permute.xlu0 %2992 }
 0x40d   : > { %v2994_v24 = vsel %vm8578_vm10, %v2991_v54, %v2993_v23  ;;  %v8602_v54 = vld [vmem:[#allocation7 + $0x140] sm:$0xff]  ;;  %v8604_v23 = vld [vmem:[#allocation7 + $0x148] sm:$0xff]  ;;  %vm10916_vm10 = vcmp.lt.s32.totalorder %v7049_v14, 7 }
 0x40e   : > { %v2995_v5 = vadd.f32 %v2994_v24, %v8529_v38  ;;  %v8596_v38 = vld [vmem:[#allocation7 + $0x128] sm:$0xff]  ;;  %v8606_v24 = vld [vmem:[#allocation7 + $0x150] sm:$0xff] }
 0x410   : > { %v2996_v44 = vmul.f32 0.5, %v2995_v5 }
 0x412   : > { %v2997_v4 = vmul.f32 %v2996_v44, %v2996_v44 }
 0x414   : > { %v2999_v35 = vrot.slane %v2997_v4, 7  ;;  %v8611_v4 = vrot.slane %v2996_v44, %v10529_v29 }
 0x416   : > { %v3001_v1 = vsub.f32 %v2996_v44, %v2999_v35  ;;  %v8613_v35 = vld [vmem:[#allocation7 + $0x158] sm:$0xff]  ;;  %v3007_v20 = vsub.f32 %v8302_v21, %v8611_v4  ;;  %v3008_v5 = vsub.f32 %v8306_v32, %v8611_v4  ;;  %v3009_v44 = vsub.f32 %v8309_v13, %v8611_v4 }
 0x417   : > { %v3010_v29 = vsub.f32 %v8313_v8, %v8611_v4  ;;  %v3011_v2 = vsub.f32 %v8316_v55, %v8611_v4  ;;  %v3012_v19 = vsub.f32 %v8320_v31, %v8611_v4  ;;  %v3014_v21 = vsub.f32 %v8329_v25, %v8611_v4 }
 0x418   : > { %v3002_v46 = vmax.f32 %v3001_v1, 0.0  ;;  %v8615_v1 = vld [vmem:[#allocation7 + $0x160] sm:$0xff]  ;;  %v3015_v32 = vsub.f32 %v8334_v9, %v8611_v4  ;;  %v3016_v13 = vsub.f32 %v8339_v45, %v8611_v4  ;;  %v3034_v8 = vsub.f32 %v8484_v43, %v8611_v4 }
 0x419   : > { %10901 = vst [vmem:[#allocation15_spill] sm:$0xff] %v8615_v1  ;;  %v3017_v55 = vsub.f32 %v8344_v57, %v8611_v4  ;;  %v3035_v31 = vsub.f32 %v8494_v0, %v8611_v4  ;;  %v3037_v25 = vsub.f32 %v8514_v61, %v8611_v4  ;;  %v3018_v9 = vsub.f32 %v8349_v11, %v8611_v4 }
 0x41a   : > { %v3039_v48 = vadd.f32 1e-05, %v3002_v46  ;;  %v8617_v46 = vld [vmem:[#allocation7 + $0x168] sm:$0xff]  ;;  %v3019_v45 = vsub.f32 %v8353_v50, %v8611_v4  ;;  %v3020_v43 = vsub.f32 %v8357_v33, %v8611_v4  ;;  %v3021_v0 = vsub.f32 %v8361_v22, %v8611_v4 }
 0x41b   : > { %v3022_v11 = vsub.f32 %v8365_v42, %v8611_v4  ;;  %v3023_v50 = vsub.f32 %v8371_v58, %v8611_v4  ;;  %v3024_v33 = vsub.f32 %v8384_v12, %v8611_v4  ;;  %v3026_v22 = vsub.f32 %v8404_v16, %v8611_v4 }
 0x41c   : > { %6559 = vrsqrt.f32 %v3039_v48  ;;  %v3029_v42 = vsub.f32 %v8434_v56, %v8611_v4  ;;  %v3030_v58 = vsub.f32 %v8444_v63, %v8611_v4  ;;  %v3031_v12 = vsub.f32 %v8454_v51, %v8611_v4 }
 0x426   : > { %v6560_v48 = vpop.eup %6559 }
 0x427   : > { %v8635_v34 = vrot.slane %v6560_v48, %v10902_v40  ;;  %v3013_v40 = vsub.f32 %v8324_v53, %v8611_v4  ;;  %v3036_v53 = vsub.f32 %v8504_v49, %v8611_v4 }
 0x429   : > { %v3072_v57 = vmul.f32 %v8635_v34, %v3034_v8  ;;  %v3073_v48 = vmul.f32 %v8635_v34, %v3035_v31  ;;  %v3074_v49 = vmul.f32 %v8635_v34, %v3036_v53  ;;  %v3075_v61 = vmul.f32 %v8635_v34, %v3037_v25 }
 0x42a   : > { %v3025_v8 = vsub.f32 %v8394_v6, %v8611_v4  ;;  %v3027_v31 = vsub.f32 %v8414_v10, %v8611_v4  ;;  %v3028_v53 = vsub.f32 %v8424_v41, %v8611_v4  ;;  %v3032_v6 = vsub.f32 %v8464_v30, %v8611_v4  ;;  %v8706_v10 = vld [vmem:[%s10373_s3] ss:$0 sm:$0xff] }
 0x42b   : > { %v3038_v41 = vsub.f32 %v8522_v36, %v8611_v4  ;;  %v3045_v56 = vmul.f32 %v8635_v34, %v3007_v20  ;;  %v3046_v63 = vmul.f32 %v8635_v34, %v3008_v5  ;;  %v3047_v51 = vmul.f32 %v8635_v34, %v3009_v44 }
 0x42c   : > { %v3048_v25 = vmul.f32 %v8635_v34, %v3010_v29  ;;  %v3049_v30 = vmul.f32 %v8635_v34, %v3011_v2  ;;  %v3050_v16 = vmul.f32 %v8635_v34, %v3012_v19  ;;  %v3051_v47 = vmul.f32 %v8635_v34, %v3013_v40 }
 0x42d   : > { %v3052_v7 = vmul.f32 %v8635_v34, %v3014_v21  ;;  %v3053_v28 = vmul.f32 %v8635_v34, %v3015_v32  ;;  %v3054_v36 = vmul.f32 %v8635_v34, %v3016_v13  ;;  %v3055_v20 = vmul.f32 %v8635_v34, %v3017_v55 }
 0x42e   : > { %v3056_v5 = vmul.f32 %v8635_v34, %v3018_v9  ;;  %v3057_v44 = vmul.f32 %v8635_v34, %v3019_v45  ;;  %v3058_v29 = vmul.f32 %v8635_v34, %v3020_v43  ;;  %v3111_v2 = vmul.f32 %v8706_v10, %v3072_v57  ;;  %v8736_v43 = vld [vmem:[%s10374_s4] ss:$0 sm:$0xff] }
 0x42f   : > { %v3059_v19 = vmul.f32 %v8635_v34, %v3021_v0  ;;  %v3112_v40 = vmul.f32 %v8706_v10, %v3073_v48  ;;  %v3113_v21 = vmul.f32 %v8706_v10, %v3074_v49  ;;  %v3114_v32 = vmul.f32 %v8706_v10, %v3075_v61 }
 0x430   : > { %v3060_v13 = vmul.f32 %v8635_v34, %v3022_v11  ;;  %v3061_v55 = vmul.f32 %v8635_v34, %v3023_v50  ;;  %v3062_v9 = vmul.f32 %v8635_v34, %v3024_v33  ;;  %v3086_v45 = vmul.f32 %v8706_v10, %v3047_v51 }
 0x431   : > { %v8739_v57 = vmul.f32 %v8635_v34, %v3025_v8  ;;  %v8742_v0 = vmul.f32 %v8635_v34, %v3026_v22  ;;  %v8745_v48 = vmul.f32 %v8635_v34, %v3027_v31  ;;  %v8748_v49 = vmul.f32 %v8635_v34, %v3028_v53 }
 0x432   : > { %v8751_v61 = vmul.f32 %v8635_v34, %v3029_v42  ;;  %v8754_v11 = vmul.f32 %v8635_v34, %v3030_v58  ;;  %v8757_v50 = vmul.f32 %v8635_v34, %v3031_v12  ;;  %v8760_v33 = vmul.f32 %v8635_v34, %v3032_v6 }
 0x433   : > { %v3076_v8 = vmul.f32 %v8635_v34, %v3038_v41  ;;  %v8764_v22 = vmul.f32 %v8706_v10, %v3045_v56  ;;  %v3085_v31 = vmul.f32 %v8706_v10, %v3046_v63  ;;  %v3087_v53 = vmul.f32 %v8706_v10, %v3048_v25 }
 0x434   : > { %v3088_v42 = vmul.f32 %v8706_v10, %v3049_v30  ;;  %v3089_v58 = vmul.f32 %v8706_v10, %v3050_v16  ;;  %v3090_v51 = vmul.f32 %v8706_v10, %v3051_v47  ;;  %v3125_v12 = vadd.f32 %v8736_v43, %v3086_v45 }
 0x435   : > { %v3091_v6 = vmul.f32 %v8706_v10, %v3052_v7  ;;  %v3092_v62 = vmul.f32 %v8706_v10, %v3053_v28  ;;  %v3093_v41 = vmul.f32 %v8706_v10, %v3054_v36  ;;  %v3094_v56 = vmul.f32 %v8706_v10, %v3055_v20 }
 0x436   : > { %v3095_v63 = vmul.f32 %v8706_v10, %v3056_v5  ;;  %v3096_v25 = vmul.f32 %v8706_v10, %v3057_v44  ;;  %v8779_v30 = vadd.f32 %v8736_v43, %v3111_v2  ;;  %v8782_v16 = vadd.f32 %v8736_v43, %v3112_v40 }
 0x437   : > { %v3115_v47 = vmul.f32 %v8706_v10, %v3076_v8  ;;  %v3126_v7 = vadd.f32 %v8736_v43, %v3087_v53  ;;  %v8787_v28 = vadd.f32 %v8736_v43, %v3113_v21  ;;  %v8790_v36 = vadd.f32 %v8736_v43, %v3114_v32 }
 0x438   : > { %v3097_v20 = vmul.f32 %v8706_v10, %v3058_v29  ;;  %v3124_v5 = vadd.f32 %v8736_v43, %v3085_v31  ;;  %v3127_v44 = vadd.f32 %v8736_v43, %v3088_v42  ;;  %v8795_v2 = vmax.f32 %v3125_v12, 0.0 }
 0x439   : > { %10903 = vst [vmem:[#allocation21_spill] sm:$0xff] %v8787_v28  ;;  %10904 = vst [vmem:[#allocation23_spill] sm:$0xff] %v8790_v36  ;;  %v3098_v40 = vmul.f32 %v8706_v10, %v3059_v19  ;;  %v8799_v45 = vmul.f32 %v8706_v10, %v3060_v13  ;;  %v3128_v8 = vadd.f32 %v8736_v43, %v3089_v58  ;;  %v8813_v58 = vmax.f32 %v3126_v7, 0.0 }
 0x43a   : > { %10905 = vst [vmem:[#allocation24_spill] sm:$0xff] %v8795_v2  ;;  %v3129_v21 = vadd.f32 %v8736_v43, %v3090_v51  ;;  %v3130_v32 = vadd.f32 %v8736_v43, %v3091_v6  ;;  %v3131_v53 = vadd.f32 %v8736_v43, %v3092_v62  ;;  %v3132_v29 = vadd.f32 %v8736_v43, %v3093_v41 }
 0x43b   : > { %v3133_v31 = vadd.f32 %v8736_v43, %v3094_v56  ;;  %3786 = vmatprep.mubr.f32.mxu1 %v8795_v2  ;;  %v8809_v42 = vmul.f32 %v8706_v10, %v3061_v55  ;;  %v3134_v19 = vadd.f32 %v8736_v43, %v3095_v63  ;;  %v3154_v13 = vadd.f32 %v8736_v43, %v3115_v47 }
 0x43c   : > { %10906 = vst [vmem:[#allocation26_spill] sm:$0xff] %v8813_v58  ;;  %v8816_v51 = vmul.f32 %v8706_v10, %v3062_v9  ;;  %v3135_v62 = vadd.f32 %v8736_v43, %v3096_v25  ;;  %v8819_v12 = vmax.f32 %v3124_v5, 0.0  ;;  %v8821_v6 = vmax.f32 %v3127_v44, 0.0 }
 0x43d   : > { %v3136_v41 = vadd.f32 %v8736_v43, %v3097_v20  ;;  %v3137_v55 = vadd.f32 %v8736_v43, %v3098_v40  ;;  %v8825_v56 = vmax.f32 %v3128_v8, 0.0  ;;  %v8827_v63 = vmax.f32 %v3129_v21, 0.0 }
 0x43e   : > { %10907 = vst [vmem:[#allocation27_spill] sm:$0xff] %v8819_v12  ;;  %10908 = vst [vmem:[#allocation29_spill] sm:$0xff] %v8821_v6  ;;  %v8829_v47 = vmax.f32 %v3130_v32, 0.0  ;;  %v8831_v7 = vmax.f32 %v3131_v53, 0.0  ;;  %v8833_v9 = vmax.f32 %v3132_v29, 0.0  ;;  %v8835_v18 = vmax.f32 %v3133_v31, 0.0 }
 0x43f   : > { %10909 = vst [vmem:[#allocation30_spill] sm:$0xff] %v8825_v56  ;;  %10910 = vst [vmem:[#allocation33_spill] sm:$0xff] %v8827_v63  ;;  %v8837_v25 = vmax.f32 %v3134_v19, 0.0  ;;  %v8839_v5 = vmax.f32 %v3154_v13, 0.0  ;;  %v10549_v20 = vrot.slane %v8795_v2, 1  ;;  %v3254_v44 = vrot.slane %v8813_v58, 1 }
 0x440   : > { %10911 = vst [vmem:[#allocation34_spill] sm:$0xff] %v8829_v47  ;;  %10912 = vst [vmem:[#allocation38_spill] sm:$0xff] %v8831_v7  ;;  %v10550_v40 = vrot.slane %v8819_v12, 7  ;;  %v3189_v8 = vrot.slane %v8795_v2, 7  ;;  %v10552_v21 = vrot.slane %v8813_v58, 7  ;;  %v3255_v32 = vrot.slane %v8821_v6, 1 }
 0x441   : > { %10913 = vst [vmem:[#allocation39_spill] sm:$0xff] %v8833_v9  ;;  %10914 = vst [vmem:[#allocation44_spill] sm:$0xff] %v8837_v25  ;;  %v8851_v53 = vsel %vm10916_vm10, %v10549_v20, %v3254_v44  ;;  %v3256_v29 = vrot.slane %v8825_v56, 1  ;;  %v3257_v31 = vrot.slane %v8827_v63, 1  ;;  %v8870_v36 = vmax.f32 %v3135_v62, 0.0 }
 0x442   : > { %10915 = vst [vmem:[#allocation45_spill] sm:$0xff] %v8839_v5  ;;  %10917 = vst [vmem:[#allocation50_spill] sm:$0xff] %v8851_v53  ;;  %5525 = vmatprep.mubr.f32.mxu0 %v8851_v53  ;;  %v3248_v13 = vsel %vm10918_vm5, %v10550_v40, %v3189_v8  ;;  %v8865_v27 = vsel %vm10919_vm8, %v3189_v8, %v10552_v21  ;;  %v3310_v20 = vsel %vm10916_vm10, %v3254_v44, %v3255_v32 }
 0x443   : > { %v8875_v28 = vsel %vm7084_vm2, %v8851_v53, %v3248_v13  ;;  %v8880_v1 = vsel %vm7668_vm15, %v8865_v27, %v3310_v20  ;;  %v10923_v8 = vrot.slane %v8825_v56, 7  ;;  %v10924_v21 = vrot.slane %v8821_v6, 7  ;;  %vm10925_vm8 = vmmov %vm10918_vm5 }
 0x444   : > { %10922 = vst [vmem:[#allocation51_spill] sm:$0xff] %v8880_v1  ;;  %3787 = vmatmul.mubr.f32.vlgmr.msra.gmra.mrb[32].mxu1 %v8875_v28  ;;  %5526 = vmatmul.mubr.f32.vlgmr.msra.gmra.mrb[64].mxu0 %v8880_v1  ;;  %vm10927_vm2 = vmmov %vm10916_vm10  ;;  %v3123_v40 = vadd.f32 %v8736_v43, %v8764_v22  ;;  %v3258_v19 = vrot.slane %v8829_v47, 1  ;;  %v10561_v1 = vrot.slane %v8829_v47, 7  ;;  %v3102_v13 = vmul.f32 %v8706_v10, %v8739_v57 }
 0x445   : > { %v8888_v44 = vsel %vm10925_vm8, %v10924_v21, %v10923_v8  ;;  %v8894_v62 = vsel %vm10927_vm2, %v3255_v32, %v3256_v29  ;;  %vm10929_vm5 = vmmov %vm10927_vm2  ;;  %3791 = vmatprep.mubr.f32.mxu1 %v8813_v58  ;;  %v10930_v21 = vpack.c.bf16 %v8588_v3, %v8586_v52  ;;  %v3259_v52 = vrot.slane %v8831_v7, 1 }
 0x446   : > { %10926 = vst [vmem:[#allocation56_spill] sm:$0xff] %v8888_v44  ;;  %10928 = vst [vmem:[#allocation57_spill] sm:$0xff] %v8894_v62  ;;  %v3308_v20 = vsel %vm10929_vm5, %v3256_v29, %v3257_v31  ;;  %v10562_v29 = vrot.slane %v8827_v63, 7  ;;  %5528 = vmatprep.mubr.f32.mxu0 %v8894_v62  ;;  %v8914_v22 = vmax.f32 %v3123_v40, 0.0  ;;  %v3260_v3 = vrot.slane %v8833_v9, 1 }
 0x447   : > { %5847 = vmatpush1.bf16.msra.mxu1 %v10930_v21  ;;  %v8908_v8 = vsel %vm7707_vm1, %v8888_v44, %v3308_v20  ;;  %vm10934_vm1 = vmmov %vm10927_vm2  ;;  %v3261_v32 = vrot.slane %v8835_v18, 1  ;;  %v3139_v53 = vadd.f32 %v8736_v43, %v8809_v42  ;;  %v8947_v44 = vmax.f32 %v3136_v41, 0.0 }
 0x448   : > { %10932 = vst [vmem:[#allocation62_spill] sm:$0xff] %v8908_v8  ;;  %10933 = vst [vmem:[#allocation65_spill] sm:$0xff] %v8914_v22  ;;  %5848 = vmatprep.subr.bf16.mxu1 %v10756_v39  ;;  %v8922_v20 = vsel %vm10934_vm1, %v3257_v31, %v3258_v19  ;;  %3792 = vmatmul.mubr.f32.gmra.mrb[34].mxu1 %v8865_v27  ;;  %v3187_v40 = vrot.slane %v8914_v22, 7  ;;  %v10940_v57 = vrot.slane %v8819_v12, 1  ;;  %v3262_v47 = vrot.slane %v8837_v25, 1 }
 0x449   : > { %10935 = vst [vmem:[#allocation48_spill] sm:$0xff] %v8922_v20  ;;  %5529 = vmatmul.mubr.f32.gmra.mrb[66].mxu0 %v8908_v8  ;;  %vm10936_vm15 = vmmov %vm10925_vm8  ;;  %v3138_v8 = vadd.f32 %v8736_v43, %v8799_v45  ;;  %3796 = vmatprep.mubr.f32.mxu1 %v8914_v22  ;;  %v10941_v45 = vrot.slane %v8914_v22, 1  ;;  %v10943_v41 = vpack.c.bf16 %v8592_v60, %v8590_v59 }
 0x44a   : > { %v8937_v31 = vsel %vm10936_vm15, %v10562_v29, %v10561_v1  ;;  %vm10938_vm10 = vmmov %vm10934_vm1  ;;  %5531 = vmatprep.mubr.f32.mxu0 %v8922_v20  ;;  %v8951_v1 = vmax.f32 %v3137_v55, 0.0  ;;  %v10939_v29 = vrot.slane %v8839_v5, 7  ;;  %v9010_v5 = vmax.f32 %v3139_v53, 0.0 }
 0x44b   : > { %10937 = vst [vmem:[#allocation14_spill] sm:$0xff] %v8937_v31  ;;  %v3306_v21 = vsel %vm10938_vm10, %v3258_v19, %v3259_v52  ;;  %vm10942_vm2 = vmmov %vm10934_vm1  ;;  %5850 = vmatpush1.bf16.msra.mxu1 %v10943_v41  ;;  %v3140_v41 = vadd.f32 %v8736_v43, %v8816_v51  ;;  %v10966_v51 = vsub.f32 %v8474_v37, %v8611_v4 }
 0x44c   : > { %v3250_v19 = vsel %vm10925_vm8, %v10939_v29, %v3187_v40  ;;  %v8963_v42 = vsel %vm10942_vm2, %v10941_v45, %v10940_v57  ;;  %vm10944_vm5 = vmmov %vm10934_vm1  ;;  %v8980_v22 = vsel %vm7729_vm0, %v8937_v31, %v3306_v21  ;;  %v10948_v57 = vrot.slane %v8833_v9, 7  ;;  %5851 = vmatprep.subr.bf16.mxu1 %v10756_v39  ;;  %10954 = vst [vmem:[#allocation69_spill] sm:$0xff] %v9010_v5 }
 0x44d   : > { %v8970_v55 = vsel %vm10944_vm5, %v3259_v52, %v3260_v3  ;;  %v8975_v29 = vsel %vm7123_vm3, %v8963_v42, %v3250_v19  ;;  %10947 = vst [vmem:[#allocation66_spill] sm:$0xff] %v8980_v22  ;;  %v10949_v45 = vrot.slane %v8831_v7, 7  ;;  %vm10950_vm1 = vmmov %vm10925_vm8  ;;  %5532 = vmatmul.mubr.f32.gmra.mrb[68].mxu0 %v8980_v22  ;;  %v3263_v21 = vrot.slane %v8870_v36, 1 }
 0x44e   : > { %vm10952_vm15 = vmmov %vm10942_vm2  ;;  %3797 = vmatmul.mubr.f32.gmra.mrb[36].mxu1 %v8975_v29  ;;  %v3103_v19 = vmul.f32 %v8706_v10, %v8742_v0  ;;  %5534 = vmatprep.mubr.f32.mxu0 %v8970_v55  ;;  %v10955_v52 = vrot.slane %v8819_v12, 7  ;;  %v3071_v53 = vmul.f32 %v8635_v34, %v10966_v51  ;;  %v10969_v37 = vpack.c.bf16 %v8600_v15, %v8598_v17 }
 0x44f   : > { %v8988_v59 = vsel %vm10950_vm1, %v10949_v45, %v10948_v57  ;;  %v3304_v60 = vsel %vm10952_vm15, %v3260_v3, %v3261_v32  ;;  %v3104_v3 = vmul.f32 %v8706_v10, %v8745_v48  ;;  %3801 = vmatprep.mubr.f32.mxu1 %v8819_v12  ;;  %v3141_v57 = vadd.f32 %v8736_v43, %v3102_v13  ;;  %vm10956_vm3 = vmmov %vm10950_vm1 }
 0x450   : > { %10951 = vst [vmem:[#allocation68_spill] sm:$0xff] %v8988_v59  ;;  %v9008_v45 = vmax.f32 %v3138_v8, 0.0  ;;  %v9016_v0 = vsel %vm10956_vm3, %v3187_v40, %v10955_v52  ;;  %v10957_v48 = vpack.c.bf16 %v8596_v38, %v8594_v26  ;;  %v9024_v22 = vsel %vm7751_vm14, %v8988_v59, %v3304_v60  ;;  %vm10960_vm0 = vmmov %vm10942_vm2 }
 0x451   : > { %10959 = vst [vmem:[#allocation70_spill] sm:$0xff] %v9024_v22  ;;  %v3264_v8 = vrot.slane %v8947_v44, 1  ;;  %5535 = vmatmul.mubr.f32.gmra.mrb[70].mxu0 %v9024_v22  ;;  %v9034_v26 = vsel %vm10960_vm0, %v3261_v32, %v3262_v47  ;;  %v10961_v38 = vrot.slane %v8837_v25, 7  ;;  %v10962_v40 = vrot.slane %v8835_v18, 7  ;;  %vm10963_vm14 = vmmov %vm10950_vm1 }
 0x452   : > { %10953 = vst [vmem:[#allocation17_spill] sm:$0xff] %v9008_v45  ;;  %5853 = vmatpush1.bf16.msra.mxu1 %v10957_v48  ;;  %vm10965_vm10 = vmmov %vm10960_vm0  ;;  %v3265_v48 = vrot.slane %v8951_v1, 1  ;;  %v3105_v32 = vmul.f32 %v8706_v10, %v8748_v49  ;;  %v3106_v13 = vmul.f32 %v8706_v10, %v8751_v61  ;;  %5537 = vmatprep.mubr.f32.mxu0 %v9034_v26  ;;  %v9061_v22 = vmax.f32 %v3141_v57, 0.0 }
 0x453   : > { %5854 = vmatprep.subr.bf16.mxu1 %v10756_v39  ;;  %3802 = vmatmul.mubr.f32.gmra.mrb[38].mxu1 %v9016_v0  ;;  %v9042_v60 = vsel %vm10963_vm14, %v10962_v40, %v10961_v38  ;;  %v3302_v52 = vsel %vm10965_vm10, %v3262_v47, %v3263_v21  ;;  %v3142_v38 = vadd.f32 %v8736_v43, %v3103_v19  ;;  %v9059_v40 = vmax.f32 %v3140_v41, 0.0  ;;  %vm10972_vm8 = vmmov %vm10960_vm0 }
 0x454   : > { %10964 = vst [vmem:[#allocation76_spill] sm:$0xff] %v9042_v60  ;;  %3806 = vmatprep.mubr.f32.mxu1 %v8795_v2  ;;  %v3143_v47 = vadd.f32 %v8736_v43, %v3104_v3  ;;  %10968 = vst [vmem:[#allocation78_spill] sm:$0xff] %v9061_v22  ;;  %v9069_v4 = vsel %vm7773_vm13, %v9042_v60, %v3302_v52  ;;  %v9073_v49 = vsel %vm10972_vm8, %v3263_v21, %v3264_v8 }
 0x455   : > { %10967 = vst [vmem:[#allocation77_spill] sm:$0xff] %v9059_v40  ;;  %10971 = vst [vmem:[#allocation71_spill] sm:$0xff] %v9069_v4  ;;  %v10973_v61 = vrot.slane %v8947_v44, 7  ;;  %v10974_v19 = vrot.slane %v8870_v36, 7  ;;  %v3266_v17 = vrot.slane %v9008_v45, 1  ;;  %5538 = vmatmul.mubr.f32.gmra.mrb[72].mxu0 %v9069_v4  ;;  %v3267_v57 = vrot.slane %v9010_v5, 1 }
 0x456   : > { %5856 = vmatpush1.bf16.msra.mxu1 %v10969_v37  ;;  %vm10975_vm2 = vmmov %vm10950_vm1  ;;  %v3107_v52 = vmul.f32 %v8706_v10, %v8754_v11  ;;  %v3108_v51 = vmul.f32 %v8706_v10, %v8757_v50  ;;  %v3144_v37 = vadd.f32 %v8736_v43, %v3105_v32  ;;  %5540 = vmatprep.mubr.f32.mxu0 %v9073_v49  ;;  %v9100_v34 = vmax.f32 %v3142_v38, 0.0 }
 0x457   : > { %v9081_v3 = vsel %vm10975_vm2, %v10974_v19, %v10973_v61  ;;  %5857 = vmatprep.subr.bf16.mxu1 %v10756_v39  ;;  %3807 = vmatmul.mubr.f32.gmra.mrb[40].mxu1 %v8875_v28  ;;  %vm10976_vm13 = vmmov %vm10960_vm0  ;;  %v9102_v61 = vmax.f32 %v3143_v47, 0.0  ;;  %v10979_v19 = vrot.slane %v8821_v6, 7  ;;  %v10980_v21 = vrot.slane %v8813_v58, 7 }
 0x458   : > { %v3300_v15 = vsel %vm10976_vm13, %v3264_v8, %v3265_v48  ;;  %3811 = vmatprep.mubr.f32.mxu1 %v8813_v58  ;;  %v3145_v8 = vadd.f32 %v8736_v43, %v3106_v13  ;;  %10977 = vst [vmem:[#allocation79_spill] sm:$0xff] %v9100_v34  ;;  %vm10981_vm5 = vmmov %vm10950_vm1  ;;  %v10982_v50 = vpack.c.bf16 %v8604_v23, %v8602_v54  ;;  %v3268_v13 = vrot.slane %v9059_v40, 1 }
 0x459   : > { %10978 = vst [vmem:[#allocation80_spill] sm:$0xff] %v9102_v61  ;;  %v3246_v11 = vsel %vm10981_vm5, %v10980_v21, %v10979_v19  ;;  %v9116_v41 = vsel %vm7795_vm12, %v9081_v3, %v3300_v15  ;;  %vm10985_vm1 = vmmov %vm10960_vm0  ;;  %v10986_v23 = vrot.slane %v9008_v45, 7  ;;  %v10987_v15 = vrot.slane %v8951_v1, 7 }
 0x45a   : > { %5859 = vmatpush1.bf16.msra.mxu1 %v10982_v50  ;;  %10984 = vst [vmem:[#allocation72_spill] sm:$0xff] %v9116_v41  ;;  %5541 = vmatmul.mubr.f32.gmra.mrb[74].mxu0 %v9116_v41  ;;  %v9126_v54 = vsel %vm10985_vm1, %v3265_v48, %v3266_v17  ;;  %vm10988_vm12 = vmmov %vm10975_vm2  ;;  %v3269_v50 = vrot.slane %v9061_v22, 1  ;;  %v3109_v32 = vmul.f32 %v8706_v10, %v8760_v33  ;;  %v3617_v33 = vld [vmem:[#allocation7 + $0x170] sm:$0xff] }
 0x45b   : > { %5860 = vmatprep.subr.bf16.mxu1 %v10756_v39  ;;  %3812 = vmatmul.mubr.f32.gmra.mrb[42].mxu1 %v8865_v27  ;;  %v9134_v21 = vsel %vm10988_vm12, %v10987_v15, %v10986_v23  ;;  %vm10989_vm15 = vmmov %vm10960_vm0  ;;  %v3110_v38 = vmul.f32 %v8706_v10, %v3071_v53  ;;  %v3146_v48 = vadd.f32 %v8736_v43, %v3107_v52  ;;  %v9146_v23 = vmax.f32 %v3144_v37, 0.0  ;;  %v3618_v53 = vld [vmem:[#allocation7 + $0x178] sm:$0xff] }
 0x45c   : > { %v3298_v19 = vsel %vm10989_vm15, %v3266_v17, %v3267_v57  ;;  %3816 = vmatprep.mubr.f32.mxu1 %v8821_v6  ;;  %5543 = vmatprep.mubr.f32.mxu0 %v9126_v54  ;;  %v3147_v47 = vadd.f32 %v8736_v43, %v3108_v51  ;;  %v9148_v15 = vmax.f32 %v3145_v8, 0.0  ;;  %v9153_v58 = vsel %vm7169_vm4, %v8894_v62, %v3246_v11  ;;  %vm10996_vm3 = vmmov %vm10960_vm0 }
 0x45d   : > { %10990 = vst [vmem:[#allocation81_spill] sm:$0xff] %v9146_v23  ;;  %v10993_v10 = vpack.c.bf16 %v8613_v35, %v8606_v24  ;;  %v9161_v6 = vsel %vm7817_vm11, %v9134_v21, %v3298_v19  ;;  %v9165_v51 = vsel %vm10996_vm3, %v3267_v57, %v3268_v13  ;;  %v10997_v37 = vrot.slane %v9059_v40, 7  ;;  %vm10999_vm4 = vmmov %vm10975_vm2 }
 0x45e   : > { %10991 = vst [vmem:[#allocation82_spill] sm:$0xff] %v9148_v15  ;;  %10995 = vst [vmem:[#allocation18_spill] sm:$0xff] %v9161_v6  ;;  %v10998_v8 = vrot.slane %v9010_v5, 7  ;;  %v3270_v24 = vrot.slane %v9100_v34, 1  ;;  %5544 = vmatmul.mubr.f32.gmra.mrb[76].mxu0 %v9161_v6  ;;  %v3271_v17 = vrot.slane %v9102_v61, 1  ;;  %v3149_v52 = vadd.f32 %v8736_v43, %v3110_v38  ;;  %v3619_v38 = vld [vmem:[#allocation7 + $0x180] sm:$0xff] }
 0x45f   : > { %5862 = vmatpush1.bf16.msra.mxu1 %v10993_v10  ;;  %vm11000_vm11 = vmmov %vm10960_vm0  ;;  %v3148_v10 = vadd.f32 %v8736_v43, %v3109_v32  ;;  %5546 = vmatprep.mubr.f32.mxu0 %v9165_v51  ;;  %v9191_v6 = vmax.f32 %v8779_v30, 0.0  ;;  %v11004_v32 = vld [vmem:[#allocation15_spill] sm:$0xff]  ;;  %v11008_v30 = vrot.slane %v8827_v63, 7  ;;  %v3272_v57 = vrot.slane %v9146_v23, 1 }
 0x460   : > { %v9173_v11 = vsel %vm10999_vm4, %v10998_v8, %v10997_v37  ;;  %5863 = vmatprep.subr.bf16.mxu1 %v10756_v39  ;;  %3817 = vmatmul.mubr.f32.gmra.mrb[44].mxu1 %v9153_v58  ;;  %v3296_v35 = vsel %vm11000_vm11, %v3268_v13, %v3269_v50  ;;  %v9186_v37 = vmax.f32 %v3146_v48, 0.0  ;;  %v5867_v8 = vpack.c.bf16 %v3618_v53, %v3617_v33  ;;  %v3620_v48 = vld [vmem:[#allocation7 + $0x188] sm:$0xff]  ;;  %vm11010_vm0 = vmmov %vm10975_vm2 }
 0x461   : > { %3821 = vmatprep.mubr.f32.mxu1 %v8825_v56  ;;  %11002 = vst [vmem:[#allocation83_spill] sm:$0xff] %v9191_v6  ;;  %v9194_v13 = vmax.f32 %v8782_v16, 0.0  ;;  %v11005_v43 = vpack.c.bf16 %v8617_v46, %v11004_v32  ;;  %v9204_v33 = vsel %vm7838_vm9, %v9173_v11, %v3296_v35  ;;  %v11009_v16 = vrot.slane %v8825_v56, 7  ;;  %v11012_v32 = vld [vmem:[#allocation56_spill] sm:$0xff]  ;;  %vm11013_vm9 = vmmov %vm10985_vm1 }
 0x462   : > { %11001 = vst [vmem:[#allocation73_spill] sm:$0xff] %v9186_v37  ;;  %11007 = vst [vmem:[#allocation15_spill] sm:$0xff] %v9204_v33  ;;  %v3273_v19 = vrot.slane %v9148_v15, 1  ;;  %v9215_v46 = vmax.f32 %v3147_v47, 0.0  ;;  %5547 = vmatmul.mubr.f32.gmra.mrb[78].mxu0 %v9204_v33  ;;  %v9221_v41 = vsel %vm11013_vm9, %v3269_v50, %v3270_v24  ;;  %v11014_v35 = vrot.slane %v9100_v34, 7  ;;  %v11021_v33 = vld [vmem:[#allocation19_spill] sm:$0xff] }
 0x463   : > { %11003 = vst [vmem:[#allocation84_spill] sm:$0xff] %v9194_v13  ;;  %5865 = vmatpush1.bf16.msra.mxu1 %v11005_v43  ;;  %v3244_v53 = vsel %vm11010_vm0, %v11009_v16, %v11008_v30  ;;  %v11015_v43 = vrot.slane %v9061_v22, 7  ;;  %vm11016_vm14 = vmmov %vm11010_vm0  ;;  %v9233_v16 = vmax.f32 %v3148_v10, 0.0  ;;  %5549 = vmatprep.mubr.f32.mxu0 %v9221_v41  ;;  %v5870_v56 = vpack.c.bf16 %v3620_v48, %v3619_v38  ;;  %v11028_v38 = vld [vmem:[#allocation75_spill] sm:$0xff] }
 0x464   : > { %5866 = vmatprep.subr.bf16.mxu1 %v10756_v39  ;;  %11011 = vst [vmem:[#allocation74_spill] sm:$0xff] %v9215_v46  ;;  %3822 = vmatmul.mubr.f32.gmra.mrb[46].mxu1 %v11012_v32  ;;  %vm11018_vm10 = vmmov %vm10985_vm1  ;;  %v9237_v50 = vmax.f32 %v3149_v52, 0.0  ;;  %vm11022_vm8 = vnez %v11021_v33  ;;  %v3274_v10 = vrot.slane %v9186_v37, 1  ;;  %vm11029_vm13 = vnez %v11028_v38  ;;  %v3621_v33 = vld [vmem:[#allocation7 + $0x190] sm:$0xff] }
 0x465   : > { %v9229_v30 = vsel %vm11016_vm14, %v11015_v43, %v11014_v35  ;;  %v3294_v47 = vsel %vm11018_vm10, %v3270_v24, %v3271_v17  ;;  %11019 = vst [vmem:[#allocation86_spill] sm:$0xff] %v9233_v16  ;;  %3826 = vmatprep.mubr.f32.mxu1 %v8827_v63  ;;  %v9242_v4 = vsel %vm11022_vm8, %v8922_v20, %v3244_v53  ;;  %v11024_v35 = vrot.slane %v9146_v23, 7  ;;  %vm11026_vm2 = vmmov %vm11010_vm0  ;;  %v3622_v53 = vld [vmem:[#allocation7 + $0x198] sm:$0xff]  ;;  %v11032_v20 = vld [vmem:[#allocation34_spill] sm:$0xff] }
 0x466   : > { %11017 = vst [vmem:[#allocation85_spill] sm:$0xff] %v9229_v30  ;;  %11020 = vst [vmem:[#allocation87_spill] sm:$0xff] %v9237_v50  ;;  %v11025_v43 = vrot.slane %v9102_v61, 7  ;;  %v9256_v52 = vsel %vm11029_vm13, %v9229_v30, %v3294_v47  ;;  %v3275_v38 = vrot.slane %v9215_v46, 1  ;;  %v11033_v63 = vrot.slane %v8795_v2, 1 }
 0x467   : > { %11023 = vst [vmem:[#allocation19_spill] sm:$0xff] %v9242_v4  ;;  %5868 = vmatpush1.bf16.msra.mxu1 %v5867_v8  ;;  %11030 = vst [vmem:[#allocation75_spill] sm:$0xff] %v9256_v52  ;;  %5550 = vmatmul.mubr.f32.gmra.mrb[80].mxu0 %v9256_v52  ;;  %v9267_v8 = vsel %vm10985_vm1, %v3271_v17, %v3272_v57  ;;  %v11040_v62 = vrot.slane %v11032_v20, 7  ;;  %v11043_v32 = vrot.slane %v9191_v6, 1 }
 0x468   : > { %v9250_v24 = vsel %vm11026_vm2, %v11025_v43, %v11024_v35  ;;  %vm11031_vm5 = vmmov %vm10985_vm1  ;;  %5869 = vmatprep.subr.bf16.mxu1 %v10756_v39  ;;  %3827 = vmatmul.mubr.f32.gmra.mrb[48].mxu1 %v9242_v4  ;;  %v11034_v35 = vrot.slane %v8819_v12, 1  ;;  %v11039_v43 = vrot.slane %v8831_v7, 7  ;;  %v5873_v12 = vpack.c.bf16 %v3622_v53, %v3621_v33 }
 0x469   : > { %11027 = vst [vmem:[#allocation88_spill] sm:$0xff] %v9250_v24  ;;  %v3292_v48 = vsel %vm11031_vm5, %v3272_v57, %v3273_v19  ;;  %3831 = vmatprep.mubr.f32.mxu1 %v11032_v20  ;;  %5552 = vmatprep.mubr.f32.mxu0 %v9267_v8  ;;  %vm11035_vm12 = vmmov %vm10985_vm1  ;;  %v11036_v57 = vld [vmem:[#allocation32_spill] sm:$0xff]  ;;  %v11042_v4 = vrot.slane %v9194_v13, 1 }
 0x46a   : > { %v9280_v52 = vsel %vm11035_vm12, %v11034_v35, %v11033_v63  ;;  %vm11037_vm15 = vnez %v11036_v57  ;;  %vm11038_vm3 = vmmov %vm10985_vm1  ;;  %v3276_v63 = vrot.slane %v9233_v16, 1  ;;  %v3623_v57 = vld [vmem:[#allocation7 + $0x1a0] sm:$0xff] }
 0x46b   : > { %v9285_v17 = vsel %vm11037_vm15, %v9250_v24, %v3292_v48  ;;  %v9289_v47 = vsel %vm11038_vm3, %v3273_v19, %v3274_v10  ;;  %vm11041_vm4 = vmmov %vm11010_vm0  ;;  %5871 = vmatpush1.bf16.msra.mxu1 %v5870_v56  ;;  %v3624_v19 = vld [vmem:[#allocation7 + $0x1a8] sm:$0xff]  ;;  %v11046_v56 = vrot.slane %v9186_v37, 7  ;;  %v11050_v35 = vld [vmem:[#allocation45_spill] sm:$0xff] }
 0x46c   : > { %v3242_v2 = vsel %vm11041_vm4, %v11040_v62, %v11039_v43  ;;  %5872 = vmatprep.subr.bf16.mxu1 %v10756_v39  ;;  %vm11044_vm11 = vmmov %vm10985_vm1  ;;  %3832 = vmatmul.mubr.f32.gmra.mrb[50].mxu1 %v8937_v31  ;;  %v11047_v62 = vrot.slane %v9148_v15, 7  ;;  %v11051_v48 = vld [vmem:[#allocation65_spill] sm:$0xff]  ;;  %v11057_v43 = vld [vmem:[#allocation36_spill] sm:$0xff] }
 0x46d   : > { %v9307_v20 = vsel %vm11044_vm11, %v11043_v32, %v11042_v4  ;;  %5553 = vmatmul.mubr.f32.gmra.mrb[82].mxu0 %v9285_v17  ;;  %vm11049_vm9 = vmmov %vm10985_vm1  ;;  %v10603_v4 = vrot.slane %v11050_v35, 1  ;;  %3836 = vmatprep.mubr.f32.mxu1 %v8831_v7  ;;  %v5876_v32 = vpack.c.bf16 %v3624_v19, %v3623_v57  ;;  %vm11058_vm8 = vnez %v11057_v43  ;;  %v3626_v57 = vld [vmem:[#allocation7 + $0x1b8] sm:$0xff] }
 0x46e   : > { %11045 = vst [vmem:[#allocation32_spill] sm:$0xff] %v9307_v20  ;;  %v9317_v33 = vsel %vm11010_vm0, %v11047_v62, %v11046_v56  ;;  %v3290_v53 = vsel %vm11049_vm9, %v3274_v10, %v3275_v38  ;;  %5555 = vmatprep.mubr.f32.mxu0 %v9289_v47  ;;  %v11052_v20 = vrot.slane %v11051_v48, 1  ;;  %vm11053_vm14 = vmmov %vm10985_vm1  ;;  %v11055_v10 = vld [vmem:[#allocation20_spill] sm:$0xff]  ;;  %v11061_v19 = vrot.slane %v9215_v46, 7 }
 0x46f   : > { %11048 = vst [vmem:[#allocation89_spill] sm:$0xff] %v9317_v33  ;;  %5874 = vmatpush1.bf16.msra.mxu1 %v5873_v12  ;;  %vm11056_vm10 = vnez %v11055_v10  ;;  %v9341_v7 = vsel %vm11058_vm8, %v9317_v33, %v3290_v53  ;;  %v3625_v12 = vld [vmem:[#allocation7 + $0x1b0] sm:$0xff]  ;;  %vm11059_vm2 = vmmov %vm10985_vm1  ;;  %v11064_v43 = vrot.slane %v9237_v50, 1  ;;  %v3630_v48 = vld [vmem:[#allocation7 + $0x1d8] sm:$0xff] }
 0x470   : > { %v9331_v56 = vsel %vm11053_vm14, %v10603_v4, %v11052_v20  ;;  %v9336_v62 = vsel %vm11056_vm10, %v8970_v55, %v3242_v2  ;;  %5875 = vmatprep.subr.bf16.mxu1 %v10756_v39  ;;  %v9348_v20 = vsel %vm11059_vm2, %v3275_v38, %v3276_v63  ;;  %v11060_v2 = vrot.slane %v9233_v16, 7  ;;  %vm11062_vm13 = vmmov %vm11010_vm0  ;;  %v11066_v4 = vld [vmem:[#allocation42_spill] sm:$0xff] }
 0x471   : > { %11054 = vst [vmem:[#allocation45_spill] sm:$0xff] %v9331_v56  ;;  %3837 = vmatmul.mubr.f32.gmra.mrb[52].mxu1 %v9336_v62  ;;  %5556 = vmatmul.mubr.f32.gmra.mrb[84].mxu0 %v9341_v7  ;;  %vm11065_vm5 = vmmov %vm10985_vm1  ;;  %v5879_v38 = vpack.c.bf16 %v3626_v57, %v3625_v12  ;;  %vm11067_vm1 = vnez %v11066_v4  ;;  %v11071_v12 = vld [vmem:[#allocation22_spill] sm:$0xff] }
 0x472   : > { %v9356_v53 = vsel %vm11062_vm13, %v11061_v19, %v11060_v2  ;;  %v3288_v10 = vsel %vm11065_vm5, %v3276_v63, %v11064_v43  ;;  %3841 = vmatprep.mubr.f32.mxu1 %v8833_v9  ;;  %5558 = vmatprep.mubr.f32.mxu0 %v9348_v20  ;;  %v3627_v2 = vld [vmem:[#allocation7 + $0x1c0] sm:$0xff]  ;;  %v3628_v19 = vld [vmem:[#allocation7 + $0x1c8] sm:$0xff]  ;;  %v11068_v63 = vrot.slane %v8835_v18, 7  ;;  %v11069_v43 = vrot.slane %v8833_v9, 7  ;;  %vm11070_vm12 = vmmov %vm11010_vm0 }
 0x473   : > { %11063 = vst [vmem:[#allocation20_spill] sm:$0xff] %v9356_v53  ;;  %5877 = vmatpush1.bf16.msra.mxu1 %v5876_v32  ;;  %v9367_v56 = vsel %vm11067_vm1, %v9356_v53, %v3288_v10  ;;  %v5882_v4 = vpack.c.bf16 %v3628_v19, %v3627_v2  ;;  %vm11072_vm15 = vnez %v11071_v12  ;;  %v3629_v10 = vld [vmem:[#allocation7 + $0x1d0] sm:$0xff]  ;;  %v11073_v2 = vrot.slane %v8870_v36, 7  ;;  %vm11075_vm3 = vmmov %vm11010_vm0 }
 0x474   : > { %5878 = vmatprep.subr.bf16.mxu1 %v10756_v39  ;;  %v3240_v32 = vsel %vm11070_vm12, %v11069_v43, %v11068_v63  ;;  %v5885_v9 = vpack.c.bf16 %v3630_v48, %v3629_v10  ;;  %v3631_v63 = vld [vmem:[#allocation7 + $0x1e0] sm:$0xff]  ;;  %v11074_v19 = vrot.slane %v8837_v25, 7  ;;  %v3633_v12 = vld [vmem:[#allocation7 + $0x1f0] sm:$0xff]  ;;  %v3634_v10 = vld [vmem:[#allocation7 + $0x1f8] sm:$0xff] }
 0x475   : > { %3842 = vmatmul.mubr.f32.gmra.mrb[54].mxu1 %v8988_v59  ;;  %5559 = vmatmul.mubr.f32.gmra.mrb[86].mxu0 %v9367_v56  ;;  %v9382_v57 = vsel %vm11072_vm15, %v9034_v26, %v3240_v32  ;;  %vm11080_vm11 = vmmov %vm11010_vm0 }
 0x476   : > { %3846 = vmatprep.mubr.f32.mxu1 %v8835_v18  ;;  %v3238_v43 = vsel %vm11075_vm3, %v11074_v19, %v11073_v2  ;;  %v11081_v2 = vld [vmem:[#allocation28_spill] sm:$0xff]  ;;  %vm11085_vm9 = vmmov %vm11075_vm3 }
 0x477   : > { %5880 = vmatpush1.bf16.msra.mxu1 %v5879_v38  ;;  %v3632_v38 = vld [vmem:[#allocation7 + $0x1e8] sm:$0xff]  ;;  %vm11082_vm0 = vnez %v11081_v2  ;;  %vm11090_vm10 = vmmov %vm11075_vm3 }
 0x478   : > { %5881 = vmatprep.subr.bf16.mxu1 %v10756_v39  ;;  %v5888_v32 = vpack.c.bf16 %v3632_v38, %v3631_v63  ;;  %v11079_v63 = vrot.slane %v8947_v44, 7  ;;  %vm11096_vm2 = vmmov %vm11075_vm3 }
 0x479   : > { %3847 = vmatmul.mubr.f32.gmra.mrb[56].mxu1 %v9382_v57  ;;  %vm11102_vm5 = vmmov %vm11096_vm2 }
 0x47a   : > { %3851 = vmatprep.mubr.f32.mxu1 %v8837_v25  ;;  %v5891_v25 = vpack.c.bf16 %v3634_v10, %v3633_v12  ;;  %v11088_v10 = vrot.slane %v9061_v22, 7  ;;  %vm11108_vm12 = vmmov %vm11096_vm2 }
 0x47b   : > { %5883 = vmatpush1.bf16.msra.mxu1 %v5882_v4  ;;  %v11076_v4 = vld [vmem:[#allocation25_spill] sm:$0xff]  ;;  %vm11114_vm3 = vmmov %vm11096_vm2 }
 0x47c   : > { %5884 = vmatprep.subr.bf16.mxu1 %v10756_v39  ;;  %vm11077_vm4 = vnez %v11076_v4  ;;  %v11086_v4 = vld [vmem:[#allocation31_spill] sm:$0xff] }
 0x47d   : > { %3852 = vmatmul.mubr.f32.gmra.mrb[58].mxu1 %v9042_v60  ;;  %v9399_v48 = vsel %vm11077_vm4, %v9073_v49, %v3238_v43  ;;  %v11083_v43 = vrot.slane %v9010_v5, 7  ;;  %vm11087_vm14 = vnez %v11086_v4  ;;  %v11097_v4 = vld [vmem:[#allocation40_spill] sm:$0xff]  ;;  %vm11117_vm4 = vcmp.lt.s32.totalorder %v7049_v14, 7  ;;  %v3669_v14 = vld [vmem:[#allocation7 + $0x310] sm:$0xff] }
 0x47e   : > { %3856 = vmatprep.mubr.f32.mxu1 %v8870_v36  ;;  %vm11098_vm13 = vnez %v11097_v4  ;;  %v11107_v4 = vrot.slane %v9186_v37, 7 }
 0x47f   : > { %5886 = vmatpush1.bf16.msra.mxu1 %v5885_v9  ;;  %v11078_v9 = vrot.slane %v8951_v1, 7 }
 0x480   : > { %5887 = vmatprep.subr.bf16.mxu1 %v10756_v39 }
 0x481   : > { %3857 = vmatmul.mubr.f32.gmra.mrb[60].mxu1 %v9399_v48  ;;  %v3236_v38 = vsel %vm11080_vm11, %v11079_v63, %v11078_v9  ;;  %v11089_v9 = vrot.slane %v9059_v40, 7 }
 0x482   : > { %3861 = vmatprep.mubr.f32.mxu1 %v8947_v44  ;;  %v9416_v19 = vsel %vm11082_vm0, %v9126_v54, %v3236_v38  ;;  %v11091_v38 = vld [vmem:[#allocation35_spill] sm:$0xff]  ;;  %vm11121_vm0 = vmmov %vm11096_vm2 }
 0x483   : > { %5889 = vmatpush1.bf16.msra.mxu1 %v5888_v32  ;;  %v11084_v32 = vrot.slane %v9008_v45, 7  ;;  %v3232_v63 = vsel %vm11090_vm10, %v11089_v9, %v11088_v10  ;;  %vm11092_vm8 = vnez %v11091_v38  ;;  %v11100_v9 = vrot.slane %v9148_v15, 7 }
 0x484   : > { %5890 = vmatprep.subr.bf16.mxu1 %v10756_v39  ;;  %v9447_v2 = vsel %vm11092_vm8, %v9221_v41, %v3232_v63  ;;  %v11101_v63 = vrot.slane %v9146_v23, 7  ;;  %vm11129_vm8 = vmmov %vm11121_vm0 }
 0x485   : > { %3862 = vmatmul.mubr.f32.gmra.mrb[62].mxu1 %v9081_v3  ;;  %11093 = vst [vmem:[#allocation36_spill] sm:$0xff] %v9447_v2 }
 0x486   : > { %3866 = vmatprep.mubr.f32.mxu1 %v8951_v1  ;;  %v3228_v38 = vsel %vm11102_vm5, %v11101_v63, %v11100_v9  ;;  %v11109_v63 = vld [vmem:[#allocation52_spill] sm:$0xff]  ;;  %vm11166_vm5 = vmmov %vm11117_vm4 }
 0x487   : > { %5892 = vmatpush1.bf16.msra.mxu1 %v5891_v25  ;;  %v3234_v25 = vsel %vm11085_vm9, %v11084_v32, %v11083_v43  ;;  %v11094_v43 = vrot.slane %v9102_v61, 7  ;;  %v11095_v32 = vrot.slane %v9100_v34, 7  ;;  %vm11110_vm15 = vnez %v11109_v63  ;;  %vm11123_vm9 = vmmov %vm11121_vm0 }
 0x488   : > { %5893 = vmatprep.subr.bf16.mxu1 %v10756_v39  ;;  %v9432_v12 = vsel %vm11087_vm14, %v9165_v51, %v3234_v25  ;;  %v11115_v63 = vrot.slane %v9191_v6, 1  ;;  %vm11125_vm14 = vmmov %vm11117_vm4 }
 0x489   : > { %3867 = vmatmul.mubr.f32.gmra.mrb[64].mxu1 %v9416_v19  ;;  %v3230_v25 = vsel %vm11096_vm2, %v11095_v32, %v11094_v43  ;;  %v11103_v43 = vld [vmem:[#allocation46_spill] sm:$0xff] }
 0x48a   : > { %3871 = vmatprep.mubr.f32.mxu1 %v9008_v45  ;;  %v9462_v10 = vsel %vm11098_vm13, %v9267_v8, %v3230_v25  ;;  %vm11104_vm1 = vnez %v11103_v43  ;;  %v11106_v25 = vrot.slane %v9215_v46, 7  ;;  %v3213_v43 = vrot.slane %v9237_v50, 7  ;;  %v11131_v45 = vld [vmem:[#allocation51_spill] sm:$0xff]  ;;  %vm11164_vm13 = vmmov %vm11121_vm0 }
 0x48b   : > { %11099 = vst [vmem:[#allocation42_spill] sm:$0xff] %v9462_v10  ;;  %v9477_v32 = vsel %vm11104_vm1, %v9289_v47, %v3228_v38  ;;  %vm11178_vm1 = vmmov %vm11117_vm4 }
 0x48c   : > { %11105 = vst [vmem:[#allocation22_spill] sm:$0xff] %v9477_v32  ;;  %v3226_v9 = vsel %vm11108_vm12, %v11107_v4, %v11106_v25  ;;  %v11113_v25 = vrot.slane %v9233_v16, 7 }
 0x48d   : > { %3872 = vmatmul.mubr.f32.gmra.mrb[66].mxu1 %v9134_v21  ;;  %v9492_v38 = vsel %vm11110_vm15, %v9348_v20, %v3226_v9  ;;  %v11116_v9 = vrot.slane %v9237_v50, 1  ;;  %vm11258_vm15 = vcmask 1040384  }
 0x48e   : > { %3876 = vmatprep.mubr.f32.mxu1 %v9010_v5  ;;  %11111 = vst [vmem:[#allocation25_spill] sm:$0xff] %v9492_v38  ;;  %v3224_v4 = vsel %vm11114_vm3, %v11113_v25, %v3213_v43  ;;  %v3215_v25 = vrot.slane %v9194_v13, 7  ;;  %v3640_v5 = vld [vmem:[#allocation7 + $0x228] sm:$0xff] }
 0x491   : > { %3877 = vmatmul.mubr.f32.gmra.mrb[68].mxu1 %v9432_v12 }
 0x492   : > { %3881 = vmatprep.mubr.f32.mxu1 %v9059_v40  ;;  %v3639_v40 = vld [vmem:[#allocation7 + $0x220] sm:$0xff] }
 0x495   : > { %3882 = vmatmul.mubr.f32.gmra.mrb[70].mxu1 %v9173_v11 }
 0x496   : > { %3886 = vmatprep.mubr.f32.mxu1 %v9061_v22 }
 0x499   : > { %3887 = vmatmul.mubr.f32.gmra.mrb[72].mxu1 %v9447_v2 }
 0x49a   : > { %3891 = vmatprep.mubr.f32.mxu1 %v9100_v34  ;;  %v3636_v34 = vld [vmem:[#allocation7 + $0x208] sm:$0xff] }
 0x49d   : > { %3892 = vmatmul.mubr.f32.gmra.mrb[74].mxu1 %v9229_v30 }
 0x49e   : > { %3896 = vmatprep.mubr.f32.mxu1 %v9102_v61 }
 0x4a1   : > { %3897 = vmatmul.mubr.f32.gmra.mrb[76].mxu1 %v9462_v10 }
 0x4a2   : > { %3901 = vmatprep.mubr.f32.mxu1 %v9146_v23 }
 0x4a5   : > { %3902 = vmatmul.mubr.f32.gmra.mrb[78].mxu1 %v9250_v24 }
 0x4a6   : > { %3906 = vmatprep.mubr.f32.mxu1 %v9148_v15  ;;  %v11112_v15 = vld [vmem:[#allocation21_spill] sm:$0xff] }
 0x4a7   : > { %v9498_v23 = vmax.f32 %v11112_v15, 0.0  ;;  %v11118_v15 = vld [vmem:[#allocation58_spill] sm:$0xff] }
 0x4a8   : > { %vm11119_vm11 = vnez %v11118_v15 }
 0x4a9   : > { %3907 = vmatmul.mubr.f32.gmra.mrb[80].mxu1 %v9477_v32  ;;  %v10626_v61 = vrot.slane %v9498_v23, 1 }
 0x4aa   : > { %3911 = vmatprep.mubr.f32.mxu1 %v9186_v37 }
 0x4ad   : > { %3912 = vmatmul.mubr.f32.gmra.mrb[82].mxu1 %v9317_v33 }
 0x4ae   : > { %3916 = vmatprep.mubr.f32.mxu1 %v9215_v46  ;;  %v9511_v46 = vsel %vm11117_vm4, %v11116_v9, %v11115_v63  ;;  %v11124_v9 = vrot.slane %v9194_v13, 1 }
 0x4af   : > { %v9517_v37 = vsel %vm11119_vm11, %v9511_v46, %v3224_v4 }
 0x4b0   : > { %11120 = vst [vmem:[#allocation28_spill] sm:$0xff] %v9517_v37  ;;  %v9537_v15 = vsel %vm11125_vm14, %v11124_v9, %v10626_v61  ;;  %v3638_v61 = vld [vmem:[#allocation7 + $0x218] sm:$0xff] }
 0x4b1   : > { %3917 = vmatmul.mubr.f32.gmra.mrb[84].mxu1 %v9492_v38 }
 0x4b2   : > { %3921 = vmatprep.mubr.f32.mxu1 %v9233_v16  ;;  %v3214_v16 = vrot.slane %v9191_v6, 7 }
 0x4b4   : > { %v9526_v63 = vsel %vm11121_vm0, %v3213_v43, %v3214_v16  ;;  %v3222_v4 = vsel %vm11123_vm9, %v3214_v16, %v3215_v25  ;;  %v3635_v16 = vld [vmem:[#allocation7 + $0x200] sm:$0xff] }
 0x4b5   : > { %3922 = vmatmul.mubr.f32.gmra.mrb[86].mxu1 %v9356_v53  ;;  %11122 = vst [vmem:[#allocation31_spill] sm:$0xff] %v9526_v63 }
 0x4b6   : > { %3926 = vmatprep.mubr.f32.mxu1 %v9237_v50  ;;  %v10637_v50 = vrot.slane %v9498_v23, 7 }
 0x4b8   : > { %v9552_v9 = vsel %vm11129_vm8, %v3215_v25, %v10637_v50  ;;  %v5900_v25 = vpack.c.bf16 %v3640_v5, %v3639_v40  ;;  %v3645_v40 = vld [vmem:[#allocation7 + $0x250] sm:$0xff]  ;;  %v11136_v50 = vld [vmem:[#allocation57_spill] sm:$0xff] }
 0x4b9   : > { %3927 = vmatmul.mubr.f32.gmra.mrb[88].mxu1 %v9517_v37 }
 0x4ba   : > { %3931 = vmatprep.mubr.f32.mxu1 %v9191_v6  ;;  %v11126_v6 = vld [vmem:[#allocation63_spill] sm:$0xff] }
 0x4bb   : > { %vm11127_vm10 = vnez %v11126_v6  ;;  %v5894_v6 = vpack.c.bf16 %v3636_v34, %v3635_v16  ;;  %v3642_v34 = vld [vmem:[#allocation7 + $0x238] sm:$0xff]  ;;  %v3643_v16 = vld [vmem:[#allocation7 + $0x240] sm:$0xff] }
 0x4bc   : > { %v9543_v43 = vsel %vm11127_vm10, %v9537_v15, %v3222_v4  ;;  %v3637_v4 = vld [vmem:[#allocation7 + $0x210] sm:$0xff] }
 0x4bd   : > { %3932 = vmatmul.mubr.f32.gmra.mrb[90].mxu1 %v9526_v63  ;;  %11128 = vst [vmem:[#allocation35_spill] sm:$0xff] %v9543_v43  ;;  %v5897_v22 = vpack.c.bf16 %v3638_v61, %v3637_v4  ;;  %v11132_v4 = vld [vmem:[#allocation67_spill] sm:$0xff] }
 0x4be   : > { %3936 = vmatprep.mubr.f32.mxu1 %v9194_v13  ;;  %v11130_v13 = vld [vmem:[#allocation50_spill] sm:$0xff]  ;;  %vm11133_vm2 = vnez %v11132_v4  ;;  %v11135_v4 = vld [vmem:[#allocation19_spill] sm:$0xff] }
 0x4c1   : > { %3937 = vmatmul.mubr.f32.gmra.mrb[92].mxu1 %v9543_v43 }
 0x4c2   : > { %3941 = vmatprep.mubr.f32.mxu1 %v9498_v23 }
 0x4c5   : > { %3942 = vmatmul.mubr.f32.gmra.mrb[94].mxu1 %v9552_v9 }
 0x4c6   : > { %4011 = vmatprep.mubr.f32.mxu1 %v8975_v29  ;;  %v3641_v29 = vld [vmem:[#allocation7 + $0x230] sm:$0xff] }
 0x4c7   : > { %v5903_v61 = vpack.c.bf16 %v3642_v34, %v3641_v29  ;;  %v11134_v29 = vld [vmem:[#allocation56_spill] sm:$0xff] }
 0x4c9   : > { %4012 = vmatmul.mubr.f32.vlgmr.msra.gmra.mrb[32].mxu1 %v11130_v13 }
 0x4ca   : > { %4016 = vmatprep.mubr.f32.mxu1 %v9016_v0  ;;  %5895 = vmatpush1.bf16.msra.mxu1 %v5894_v6  ;;  %v3644_v6 = vld [vmem:[#allocation7 + $0x248] sm:$0xff] }
 0x4cb   : > { %5896 = vmatprep.subr.bf16.mxu1 %v10756_v39  ;;  %v5906_v5 = vpack.c.bf16 %v3644_v6, %v3643_v16  ;;  %v3649_v16 = vld [vmem:[#allocation7 + $0x270] sm:$0xff]  ;;  %v3650_v6 = vld [vmem:[#allocation7 + $0x278] sm:$0xff] }
 0x4cd   : > { %4017 = vmatmul.mubr.f32.gmra.mrb[34].mxu1 %v11131_v45 }
 0x4ce   : > { %4021 = vmatprep.mubr.f32.mxu1 %v8875_v28  ;;  %5898 = vmatpush1.bf16.msra.mxu1 %v5897_v22  ;;  %v9569_v22 = vsel %vm11133_vm2, %v9016_v0, %v9280_v52  ;;  %v3647_v0 = vld [vmem:[#allocation7 + $0x260] sm:$0xff]  ;;  %v3648_v52 = vld [vmem:[#allocation7 + $0x268] sm:$0xff] }
 0x4cf   : > { %5899 = vmatprep.subr.bf16.mxu1 %v10756_v39 }
 0x4d1   : > { %4022 = vmatmul.mubr.f32.gmra.mrb[36].mxu1 %v8963_v42 }
 0x4d2   : > { %4026 = vmatprep.mubr.f32.mxu1 %v8865_v27  ;;  %5901 = vmatpush1.bf16.msra.mxu1 %v5900_v25  ;;  %v3646_v25 = vld [vmem:[#allocation7 + $0x258] sm:$0xff] }
 0x4d3   : > { %5902 = vmatprep.subr.bf16.mxu1 %v10756_v39  ;;  %v5909_v34 = vpack.c.bf16 %v3646_v25, %v3645_v40  ;;  %v3651_v40 = vld [vmem:[#allocation7 + $0x280] sm:$0xff]  ;;  %v3652_v25 = vld [vmem:[#allocation7 + $0x288] sm:$0xff] }
 0x4d5   : > { %4027 = vmatmul.mubr.f32.gmra.mrb[38].mxu1 %v9569_v22 }
 0x4d6   : > { %4031 = vmatprep.mubr.f32.mxu1 %v9153_v58  ;;  %5904 = vmatpush1.bf16.msra.mxu1 %v5903_v61  ;;  %v5912_v61 = vpack.c.bf16 %v3648_v52, %v3647_v0  ;;  %v3653_v0 = vld [vmem:[#allocation7 + $0x290] sm:$0xff]  ;;  %v3654_v52 = vld [vmem:[#allocation7 + $0x298] sm:$0xff] }
 0x4d7   : > { %5905 = vmatprep.subr.bf16.mxu1 %v10756_v39 }
 0x4d9   : > { %4032 = vmatmul.mubr.f32.gmra.mrb[40].mxu1 %v11130_v13 }
 0x4da   : > { %4036 = vmatprep.mubr.f32.mxu1 %v11134_v29  ;;  %5907 = vmatpush1.bf16.msra.mxu1 %v5906_v5  ;;  %v5915_v5 = vpack.c.bf16 %v3650_v6, %v3649_v16  ;;  %v11137_v29 = vld [vmem:[#allocation62_spill] sm:$0xff]  ;;  %v3655_v16 = vld [vmem:[#allocation7 + $0x2a0] sm:$0xff] }
 0x4db   : > { %5908 = vmatprep.subr.bf16.mxu1 %v10756_v39  ;;  %v3656_v6 = vld [vmem:[#allocation7 + $0x2a8] sm:$0xff] }
 0x4dd   : > { %4037 = vmatmul.mubr.f32.gmra.mrb[42].mxu1 %v11131_v45 }
 0x4de   : > { %4041 = vmatprep.mubr.f32.mxu1 %v11135_v4  ;;  %5910 = vmatpush1.bf16.msra.mxu1 %v5909_v34  ;;  %v5918_v34 = vpack.c.bf16 %v3652_v25, %v3651_v40  ;;  %v11138_v4 = vld [vmem:[#allocation48_spill] sm:$0xff]  ;;  %v3657_v40 = vld [vmem:[#allocation7 + $0x2b0] sm:$0xff] }
 0x4df   : > { %5911 = vmatprep.subr.bf16.mxu1 %v10756_v39  ;;  %v3658_v25 = vld [vmem:[#allocation7 + $0x2b8] sm:$0xff] }
 0x4e1   : > { %4042 = vmatmul.mubr.f32.gmra.mrb[44].mxu1 %v11136_v50 }
 0x4e2   : > { %4046 = vmatprep.mubr.f32.mxu1 %v8937_v31  ;;  %5913 = vmatpush1.bf16.msra.mxu1 %v5912_v61  ;;  %v5921_v61 = vpack.c.bf16 %v3654_v52, %v3653_v0  ;;  %v11139_v31 = vld [vmem:[#allocation66_spill] sm:$0xff]  ;;  %v3659_v0 = vld [vmem:[#allocation7 + $0x2c0] sm:$0xff] }
 0x4e3   : > { %5914 = vmatprep.subr.bf16.mxu1 %v10756_v39  ;;  %v3660_v52 = vld [vmem:[#allocation7 + $0x2c8] sm:$0xff] }
 0x4e5   : > { %4047 = vmatmul.mubr.f32.gmra.mrb[46].mxu1 %v11137_v29 }
 0x4e6   : > { %4051 = vmatprep.mubr.f32.mxu1 %v9336_v62  ;;  %5916 = vmatpush1.bf16.msra.mxu1 %v5915_v5  ;;  %v5924_v5 = vpack.c.bf16 %v3656_v6, %v3655_v16  ;;  %v3661_v16 = vld [vmem:[#allocation7 + $0x2d0] sm:$0xff]  ;;  %v3662_v6 = vld [vmem:[#allocation7 + $0x2d8] sm:$0xff] }
 0x4e7   : > { %5917 = vmatprep.subr.bf16.mxu1 %v10756_v39 }
 0x4e9   : > { %4052 = vmatmul.mubr.f32.gmra.mrb[48].mxu1 %v11138_v4 }
 0x4ea   : > { %4056 = vmatprep.mubr.f32.mxu1 %v8988_v59  ;;  %5919 = vmatpush1.bf16.msra.mxu1 %v5918_v34  ;;  %v5927_v34 = vpack.c.bf16 %v3658_v25, %v3657_v40  ;;  %v11140_v59 = vld [vmem:[#allocation70_spill] sm:$0xff]  ;;  %v3663_v40 = vld [vmem:[#allocation7 + $0x2e0] sm:$0xff] }
 0x4eb   : > { %5920 = vmatprep.subr.bf16.mxu1 %v10756_v39  ;;  %v3664_v25 = vld [vmem:[#allocation7 + $0x2e8] sm:$0xff] }
 0x4ed   : > { %4057 = vmatmul.mubr.f32.gmra.mrb[50].mxu1 %v11139_v31 }
 0x4ee   : > { %4061 = vmatprep.mubr.f32.mxu1 %v9382_v57  ;;  %5922 = vmatpush1.bf16.msra.mxu1 %v5921_v61  ;;  %v5930_v61 = vpack.c.bf16 %v3660_v52, %v3659_v0  ;;  %v3665_v0 = vld [vmem:[#allocation7 + $0x2f0] sm:$0xff]  ;;  %v3666_v52 = vld [vmem:[#allocation7 + $0x2f8] sm:$0xff] }
 0x4ef   : > { %5923 = vmatprep.subr.bf16.mxu1 %v10756_v39 }
 0x4f1   : > { %4062 = vmatmul.mubr.f32.gmra.mrb[52].mxu1 %v8970_v55 }
 0x4f2   : > { %4066 = vmatprep.mubr.f32.mxu1 %v9042_v60  ;;  %5925 = vmatpush1.bf16.msra.mxu1 %v5924_v5  ;;  %v5933_v5 = vpack.c.bf16 %v3662_v6, %v3661_v16  ;;  %v11141_v60 = vld [vmem:[#allocation71_spill] sm:$0xff]  ;;  %v11142_v16 = vld [vmem:[#allocation72_spill] sm:$0xff]  ;;  %v11143_v6 = vld [vmem:[#allocation18_spill] sm:$0xff] }
 0x4f3   : > { %5926 = vmatprep.subr.bf16.mxu1 %v10756_v39 }
 0x4f5   : > { %4067 = vmatmul.mubr.f32.gmra.mrb[54].mxu1 %v11140_v59 }
 0x4f6   : > { %4071 = vmatprep.mubr.f32.mxu1 %v9399_v48  ;;  %5928 = vmatpush1.bf16.msra.mxu1 %v5927_v34  ;;  %v5936_v34 = vpack.c.bf16 %v3664_v25, %v3663_v40  ;;  %v11146_v25 = vld [vmem:[#allocation75_spill] sm:$0xff] }
 0x4f7   : > { %5929 = vmatprep.subr.bf16.mxu1 %v10756_v39 }
 0x4f9   : > { %4072 = vmatmul.mubr.f32.gmra.mrb[56].mxu1 %v9034_v26 }
 0x4fa   : > { %4076 = vmatprep.mubr.f32.mxu1 %v9081_v3  ;;  %5931 = vmatpush1.bf16.msra.mxu1 %v5930_v61  ;;  %v5939_v61 = vpack.c.bf16 %v3666_v52, %v3665_v0 }
 0x4fb   : > { %5932 = vmatprep.subr.bf16.mxu1 %v10756_v39 }
 0x4fd   : > { %4077 = vmatmul.mubr.f32.gmra.mrb[58].mxu1 %v11141_v60 }
 0x4fe   : > { %4081 = vmatprep.mubr.f32.mxu1 %v9416_v19  ;;  %5934 = vmatpush1.bf16.msra.mxu1 %v5933_v5  ;;  %v11144_v5 = vld [vmem:[#allocation15_spill] sm:$0xff] }
 0x4ff   : > { %5935 = vmatprep.subr.bf16.mxu1 %v10756_v39 }
 0x501   : > { %4082 = vmatmul.mubr.f32.gmra.mrb[60].mxu1 %v9073_v49 }
 0x502   : > { %4086 = vmatprep.mubr.f32.mxu1 %v9134_v21  ;;  %5937 = vmatpush1.bf16.msra.mxu1 %v5936_v34 }
 0x503   : > { %5938 = vmatprep.subr.bf16.mxu1 %v10756_v39 }
 0x505   : > { %4087 = vmatmul.mubr.f32.gmra.mrb[62].mxu1 %v11142_v16 }
 0x506   : > { %4091 = vmatprep.mubr.f32.mxu1 %v9432_v12  ;;  %5940 = vmatpush1.bf16.msra.mxu1 %v5939_v61 }
 0x507   : > { %5941 = vmatprep.subr.bf16.mxu1 %v10756_v39 }
 0x509   : > { %4092 = vmatmul.mubr.f32.gmra.mrb[64].mxu1 %v9126_v54 }
 0x50a   : > { %4096 = vmatprep.mubr.f32.mxu1 %v9173_v11 }
 0x50d   : > { %4097 = vmatmul.mubr.f32.gmra.mrb[66].mxu1 %v11143_v6 }
 0x50e   : > { %4101 = vmatprep.mubr.f32.mxu1 %v9447_v2 }
 0x511   : > { %4102 = vmatmul.mubr.f32.gmra.mrb[68].mxu1 %v9165_v51 }
 0x512   : > { %4106 = vmatprep.mubr.f32.mxu1 %v9229_v30  ;;  %v11183_v30 = vld [vmem:[#allocation65_spill] sm:$0xff] }
 0x515   : > { %4107 = vmatmul.mubr.f32.gmra.mrb[70].mxu1 %v11144_v5 }
 0x516   : > { %4111 = vmatprep.mubr.f32.mxu1 %v9462_v10 }
 0x517   : > { %v9620_v40 = vpop.f32.mrb[64].mxu0 }
 0x518   : > { %11145 = vst [vmem:[#allocation40_spill] sm:$0xff] %v9620_v40  ;;  %v9623_v34 = vpop.f32.mrb[65].mxu0 }
 0x519   : > { %4112 = vmatmul.mubr.f32.gmra.mrb[72].mxu1 %v9221_v41  ;;  %11147 = vst [vmem:[#allocation46_spill] sm:$0xff] %v9623_v34 }
 0x51a   : > { %4116 = vmatprep.mubr.f32.mxu1 %v9250_v24 }
 0x51c   : > { %v9626_v0 = vpop.f32.mrb[66].mxu0 }
 0x51d   : > { %4117 = vmatmul.mubr.f32.gmra.mrb[74].mxu1 %v11146_v25  ;;  %11148 = vst [vmem:[#allocation52_spill] sm:$0xff] %v9626_v0  ;;  %v9629_v52 = vpop.f32.mrb[67].mxu0 }
 0x51e   : > { %4121 = vmatprep.mubr.f32.mxu1 %v9477_v32  ;;  %11149 = vst [vmem:[#allocation21_spill] sm:$0xff] %v9629_v52 }
 0x520   : > { %v9632_v61 = vpop.f32.mrb[68].mxu0 }
 0x521   : > { %4122 = vmatmul.mubr.f32.gmra.mrb[76].mxu1 %v9267_v8  ;;  %11150 = vst [vmem:[#allocation58_spill] sm:$0xff] %v9632_v61  ;;  %v9635_v24 = vpop.f32.mrb[69].mxu0 }
 0x522   : > { %4126 = vmatprep.mubr.f32.mxu1 %v9317_v33  ;;  %11151 = vst [vmem:[#allocation63_spill] sm:$0xff] %v9635_v24 }
 0x524   : > { %v9638_v40 = vpop.f32.mrb[70].mxu0 }
 0x525   : > { %4127 = vmatmul.mubr.f32.gmra.mrb[78].mxu1 %v9285_v17  ;;  %11152 = vst [vmem:[#allocation50_spill] sm:$0xff] %v9638_v40  ;;  %v9641_v34 = vpop.f32.mrb[71].mxu0  ;;  %v11158_v40 = vld [vmem:[#allocation23_spill] sm:$0xff] }
 0x526   : > { %4131 = vmatprep.mubr.f32.mxu1 %v9492_v38  ;;  %11153 = vst [vmem:[#allocation51_spill] sm:$0xff] %v9641_v34  ;;  %v9656_v38 = vmax.f32 %v11158_v40, 0.0 }
 0x528   : > { %v9644_v0 = vpop.f32.mrb[72].mxu0 }
 0x529   : > { %4132 = vmatmul.mubr.f32.gmra.mrb[80].mxu1 %v9289_v47  ;;  %11154 = vst [vmem:[#allocation67_spill] sm:$0xff] %v9644_v0  ;;  %v9647_v52 = vpop.f32.mrb[73].mxu0 }
 0x52a   : > { %4136 = vmatprep.mubr.f32.mxu1 %v9356_v53  ;;  %11155 = vst [vmem:[#allocation57_spill] sm:$0xff] %v9647_v52  ;;  %v3217_v52 = vrot.slane %v9656_v38, 7 }
 0x52d   : > { %4137 = vmatmul.mubr.f32.gmra.mrb[82].mxu1 %v9341_v7  ;;  %v9650_v61 = vpop.f32.mrb[74].mxu0 }
 0x52e   : > { %4141 = vmatprep.mubr.f32.mxu1 %v9517_v37  ;;  %11156 = vst [vmem:[#allocation62_spill] sm:$0xff] %v9650_v61  ;;  %v9653_v24 = vpop.f32.mrb[75].mxu0  ;;  %v3281_v61 = vrot.slane %v9656_v38, 1 }
 0x52f   : > { %11157 = vst [vmem:[#allocation48_spill] sm:$0xff] %v9653_v24 }
 0x531   : > { %4142 = vmatmul.mubr.f32.gmra.mrb[84].mxu1 %v9348_v20  ;;  %v9659_v34 = vpop.f32.mrb[76].mxu0 }
 0x532   : > { %4146 = vmatprep.mubr.f32.mxu1 %v9526_v63  ;;  %11159 = vst [vmem:[#allocation66_spill] sm:$0xff] %v9659_v34  ;;  %v9662_v0 = vpop.f32.mrb[77].mxu0  ;;  %v11163_v34 = vrot.slane %v9498_v23, 7 }
 0x533   : > { %11160 = vst [vmem:[#allocation70_spill] sm:$0xff] %v9662_v0  ;;  %v11165_v0 = vrot.slane %v11050_v35, 1 }
 0x534   : > { %v3220_v24 = vsel %vm11164_vm13, %v11163_v34, %v3217_v52  ;;  %v3667_v34 = vld [vmem:[#allocation7 + $0x300] sm:$0xff] }
 0x535   : > { %4147 = vmatmul.mubr.f32.gmra.mrb[86].mxu1 %v9367_v56  ;;  %v9667_v37 = vpop.f32.mrb[78].mxu0 }
 0x536   : > { %4151 = vmatprep.mubr.f32.mxu1 %v9543_v43  ;;  %11161 = vst [vmem:[#allocation71_spill] sm:$0xff] %v9667_v37  ;;  %v9670_v40 = vpop.f32.mrb[79].mxu0  ;;  %v9681_v43 = vsel %vm11166_vm5, %v3281_v61, %v11165_v0  ;;  %v11168_v37 = vld [vmem:[#allocation32_spill] sm:$0xff] }
 0x537   : > { %11162 = vst [vmem:[#allocation72_spill] sm:$0xff] %v9670_v40  ;;  %v9689_v40 = vsel %vm7948_vm6, %v9526_v63, %v11168_v37  ;;  %v9697_v10 = vsel %vm7959_vm7, %v9681_v43, %v3220_v24  ;;  %v11175_v37 = vrot.slane %v11050_v35, 7  ;;  %vm11176_vm6 = vmmov %vm11121_vm0  ;;  %v11180_v63 = vld [vmem:[#allocation43_spill] sm:$0xff] }
 0x538   : > { %11172 = vst [vmem:[#allocation75_spill] sm:$0xff] %v9697_v10  ;;  %vm11181_vm7 = vnez %v11180_v63 }
 0x539   : > { %4152 = vmatmul.mubr.f32.gmra.mrb[88].mxu1 %v9511_v46  ;;  %v9709_v33 = vsel %vm11176_vm6, %v3217_v52, %v11175_v37 }
 0x53a   : > { %4156 = vmatprep.mubr.f32.mxu1 %v9552_v9  ;;  %v9683_v53 = vpop.f32.mrb[80].mxu0 }
 0x53b   : > { %11167 = vst [vmem:[#allocation18_spill] sm:$0xff] %v9683_v53  ;;  %v9692_v32 = vpop.f32.mrb[81].mxu0 }
 0x53c   : > { %11170 = vst [vmem:[#allocation15_spill] sm:$0xff] %v9692_v32  ;;  %v11177_v32 = vrot.slane %v9498_v23, 1 }
 0x53d   : > { %4157 = vmatmul.mubr.f32.gmra.mrb[90].mxu1 %v9689_v40 }
 0x53e   : > { %4161 = vmatprep.mubr.f32.mxu1 %v9697_v10  ;;  %v3284_v24 = vsel %vm11178_vm1, %v11177_v32, %v3281_v61  ;;  %v3668_v10 = vld [vmem:[#allocation7 + $0x308] sm:$0xff]  ;;  %v3670_v32 = vld [vmem:[#allocation7 + $0x318] sm:$0xff] }
 0x53f   : > { %v5942_v37 = vpack.c.bf16 %v3668_v10, %v3667_v34  ;;  %v5945_v63 = vpack.c.bf16 %v3670_v32, %v3669_v14  ;;  %v3673_v10 = vld [vmem:[#allocation7 + $0x330] sm:$0xff]  ;;  %v11185_v34 = vld [vmem:[#allocation24_spill] sm:$0xff]  ;;  %v11186_v32 = vld [vmem:[#allocation26_spill] sm:$0xff] }
 0x540   : > { %v9700_v0 = vpop.f32.mrb[82].mxu0 }
 0x541   : > { %11173 = vst [vmem:[#allocation23_spill] sm:$0xff] %v9700_v0  ;;  %4162 = vmatmul.mubr.f32.gmra.mrb[92].mxu1 %v9537_v15  ;;  %v9703_v53 = vpop.f32.mrb[83].mxu0 }
 0x542   : > { %11174 = vst [vmem:[#allocation32_spill] sm:$0xff] %v9703_v53  ;;  %4166 = vmatprep.mubr.f32.mxu1 %v9709_v33  ;;  %v9721_v53 = vsel %vm11181_vm7, %v9552_v9, %v3284_v24  ;;  %v3671_v24 = vld [vmem:[#allocation7 + $0x320] sm:$0xff] }
 0x544   : > { %v9716_v0 = vpop.f32.mrb[84].mxu0 }
 0x545   : > { %11179 = vst [vmem:[#allocation37_spill] sm:$0xff] %v9716_v0  ;;  %4167 = vmatmul.mubr.f32.gmra.mrb[94].mxu1 %v9721_v53  ;;  %v9724_v52 = vpop.f32.mrb[85].mxu0  ;;  %v3672_v0 = vld [vmem:[#allocation7 + $0x328] sm:$0xff] }
 0x546   : > { %11182 = vst [vmem:[#allocation41_spill] sm:$0xff] %v9724_v52  ;;  %4236 = vmatprep.mubr.f32.mxu1 %v8963_v42  ;;  %v11184_v52 = vld [vmem:[#allocation27_spill] sm:$0xff]  ;;  %v5948_v42 = vpack.c.bf16 %v3672_v0, %v3671_v24  ;;  %v3679_v24 = vld [vmem:[#allocation7 + $0x360] sm:$0xff] }
 0x547   : > { %v3677_v0 = vld [vmem:[#allocation7 + $0x350] sm:$0xff] }
 0x548   : > { %v9727_v61 = vpop.f32.mrb[86].mxu0 }
 0x549   : > { %4237 = vmatmul.mubr.f32.vlgmr.msra.gmra.mrb[32].mxu1 %v11183_v30  ;;  %v9730_v2 = vpop.f32.mrb[87].mxu0  ;;  %v3674_v30 = vld [vmem:[#allocation7 + $0x338] sm:$0xff] }
 0x54a   : > { %4241 = vmatprep.mubr.f32.mxu1 %v9569_v22  ;;  %5943 = vmatpush1.bf16.msra.mxu1 %v5942_v37  ;;  %v5951_v14 = vpack.c.bf16 %v3674_v30, %v3673_v10  ;;  %v3675_v22 = vld [vmem:[#allocation7 + $0x340] sm:$0xff]  ;;  %v3676_v37 = vld [vmem:[#allocation7 + $0x348] sm:$0xff]  ;;  %v3681_v30 = vld [vmem:[#allocation7 + $0x370] sm:$0xff] }
 0x54b   : > { %5944 = vmatprep.subr.bf16.mxu1 %v10756_v39  ;;  %v11188_v10 = vld [vmem:[#allocation30_spill] sm:$0xff] }
 0x54d   : > { %4242 = vmatmul.mubr.f32.gmra.mrb[34].mxu1 %v11184_v52  ;;  %v3678_v52 = vld [vmem:[#allocation7 + $0x358] sm:$0xff] }
 0x54e   : > { %4246 = vmatprep.mubr.f32.mxu1 %v11130_v13  ;;  %5946 = vmatpush1.bf16.msra.mxu1 %v5945_v63  ;;  %v5954_v13 = vpack.c.bf16 %v3676_v37, %v3675_v22  ;;  %v11187_v63 = vld [vmem:[#allocation29_spill] sm:$0xff] }
 0x54f   : > { %5947 = vmatprep.subr.bf16.mxu1 %v10756_v39  ;;  %v11189_v22 = vld [vmem:[#allocation33_spill] sm:$0xff] }
 0x550   : > { %v3683_v37 = vld [vmem:[#allocation7 + $0x380] sm:$0xff] }
 0x551   : > { %4247 = vmatmul.mubr.f32.gmra.mrb[36].mxu1 %v11185_v34 }
 0x552   : > { %4251 = vmatprep.mubr.f32.mxu1 %v11131_v45  ;;  %5949 = vmatpush1.bf16.msra.mxu1 %v5948_v42  ;;  %v5957_v45 = vpack.c.bf16 %v3678_v52, %v3677_v0  ;;  %v3680_v42 = vld [vmem:[#allocation7 + $0x368] sm:$0xff]  ;;  %v3685_v52 = vld [vmem:[#allocation7 + $0x390] sm:$0xff] }
 0x553   : > { %5950 = vmatprep.subr.bf16.mxu1 %v10756_v39  ;;  %v11190_v0 = vld [vmem:[#allocation34_spill] sm:$0xff] }
 0x555   : > { %4252 = vmatmul.mubr.f32.gmra.mrb[38].mxu1 %v11186_v32 }
 0x556   : > { %4256 = vmatprep.mubr.f32.mxu1 %v11136_v50  ;;  %5952 = vmatpush1.bf16.msra.mxu1 %v5951_v14  ;;  %v5960_v50 = vpack.c.bf16 %v3680_v42, %v3679_v24  ;;  %v3682_v14 = vld [vmem:[#allocation7 + $0x378] sm:$0xff]  ;;  %v11191_v24 = vld [vmem:[#allocation38_spill] sm:$0xff]  ;;  %v3687_v42 = vld [vmem:[#allocation7 + $0x3a0] sm:$0xff] }
 0x557   : > { %5953 = vmatprep.subr.bf16.mxu1 %v10756_v39 }
 0x559   : > { %4257 = vmatmul.mubr.f32.gmra.mrb[40].mxu1 %v11187_v63 }
 0x55a   : > { %4261 = vmatprep.mubr.f32.mxu1 %v11137_v29  ;;  %5955 = vmatpush1.bf16.msra.mxu1 %v5954_v13  ;;  %v5963_v29 = vpack.c.bf16 %v3682_v14, %v3681_v30  ;;  %v3684_v13 = vld [vmem:[#allocation7 + $0x388] sm:$0xff]  ;;  %v11192_v30 = vld [vmem:[#allocation39_spill] sm:$0xff] }
 0x55b   : > { %5956 = vmatprep.subr.bf16.mxu1 %v10756_v39  ;;  %v3689_v14 = vld [vmem:[#allocation7 + $0x3b0] sm:$0xff] }
 0x55d   : > { %4262 = vmatmul.mubr.f32.gmra.mrb[42].mxu1 %v11188_v10 }
 0x55e   : > { %4266 = vmatprep.mubr.f32.mxu1 %v11138_v4  ;;  %5958 = vmatpush1.bf16.msra.mxu1 %v5957_v45  ;;  %v5966_v4 = vpack.c.bf16 %v3684_v13, %v3683_v37  ;;  %v3686_v45 = vld [vmem:[#allocation7 + $0x398] sm:$0xff]  ;;  %v3691_v37 = vld [vmem:[#allocation7 + $0x3c0] sm:$0xff]  ;;  %v3692_v13 = vld [vmem:[#allocation7 + $0x3c8] sm:$0xff] }
 0x55f   : > { %5959 = vmatprep.subr.bf16.mxu1 %v10756_v39 }
 0x561   : > { %4267 = vmatmul.mubr.f32.gmra.mrb[44].mxu1 %v11189_v22 }
 0x562   : > { %4271 = vmatprep.mubr.f32.mxu1 %v11139_v31  ;;  %5961 = vmatpush1.bf16.msra.mxu1 %v5960_v50  ;;  %v5969_v31 = vpack.c.bf16 %v3686_v45, %v3685_v52  ;;  %v3688_v50 = vld [vmem:[#allocation7 + $0x3a8] sm:$0xff]  ;;  %v3693_v52 = vld [vmem:[#allocation7 + $0x3d0] sm:$0xff]  ;;  %v3694_v45 = vld [vmem:[#allocation7 + $0x3d8] sm:$0xff] }
 0x563   : > { %5962 = vmatprep.subr.bf16.mxu1 %v10756_v39 }
 0x565   : > { %4272 = vmatmul.mubr.f32.gmra.mrb[46].mxu1 %v11190_v0 }
 0x566   : > { %4276 = vmatprep.mubr.f32.mxu1 %v8970_v55  ;;  %5964 = vmatpush1.bf16.msra.mxu1 %v5963_v29  ;;  %v5972_v55 = vpack.c.bf16 %v3688_v50, %v3687_v42  ;;  %v3690_v29 = vld [vmem:[#allocation7 + $0x3b8] sm:$0xff]  ;;  %v3696_v42 = vld [vmem:[#allocation7 + $0x3e8] sm:$0xff]  ;;  %v3697_v50 = vld [vmem:[#allocation7 + $0x3f0] sm:$0xff] }
 0x567   : > { %5965 = vmatprep.subr.bf16.mxu1 %v10756_v39 }
 0x569   : > { %4277 = vmatmul.mubr.f32.gmra.mrb[48].mxu1 %v11191_v24 }
 0x56a   : > { %4281 = vmatprep.mubr.f32.mxu1 %v11140_v59  ;;  %5967 = vmatpush1.bf16.msra.mxu1 %v5966_v4  ;;  %v5975_v59 = vpack.c.bf16 %v3690_v29, %v3689_v14  ;;  %v11193_v4 = vld [vmem:[#allocation44_spill] sm:$0xff]  ;;  %v11194_v14 = vld [vmem:[#allocation17_spill] sm:$0xff] }
 0x56b   : > { %5968 = vmatprep.subr.bf16.mxu1 %v10756_v39  ;;  %v11196_v29 = vld [vmem:[#allocation69_spill] sm:$0xff] }
 0x56d   : > { %4282 = vmatmul.mubr.f32.gmra.mrb[50].mxu1 %v11192_v30 }
 0x56e   : > { %4286 = vmatprep.mubr.f32.mxu1 %v9034_v26  ;;  %5970 = vmatpush1.bf16.msra.mxu1 %v5969_v31  ;;  %v5978_v26 = vpack.c.bf16 %v3692_v13, %v3691_v37  ;;  %v3695_v31 = vld [vmem:[#allocation7 + $0x3e0] sm:$0xff] }
 0x56f   : > { %5971 = vmatprep.subr.bf16.mxu1 %v10756_v39  ;;  %v11201_v37 = vld [vmem:[#allocation81_spill] sm:$0xff] }
 0x571   : > { %4287 = vmatmul.mubr.f32.gmra.mrb[52].mxu1 %v8835_v18 }
 0x572   : > { %4291 = vmatprep.mubr.f32.mxu1 %v11141_v60  ;;  %5973 = vmatpush1.bf16.msra.mxu1 %v5972_v55  ;;  %v5981_v60 = vpack.c.bf16 %v3694_v45, %v3693_v52  ;;  %v3698_v55 = vld [vmem:[#allocation7 + $0x3f8] sm:$0xff]  ;;  %v11213_v52 = vld [vmem:[#allocation53_spill] sm:$0xff] }
 0x573   : > { %5974 = vmatprep.subr.bf16.mxu1 %v10756_v39 }
 0x575   : > { %4292 = vmatmul.mubr.f32.gmra.mrb[54].mxu1 %v11193_v4 }
 0x576   : > { %4296 = vmatprep.mubr.f32.mxu1 %v9073_v49  ;;  %5976 = vmatpush1.bf16.msra.mxu1 %v5975_v59  ;;  %v5984_v49 = vpack.c.bf16 %v3696_v42, %v3695_v31  ;;  %v11197_v59 = vld [vmem:[#allocation77_spill] sm:$0xff] }
 0x577   : > { %5977 = vmatprep.subr.bf16.mxu1 %v10756_v39  ;;  %v11238_v31 = vld [vmem:[#allocation21_spill] sm:$0xff] }
 0x579   : > { %4297 = vmatmul.mubr.f32.gmra.mrb[56].mxu1 %v8870_v36 }
 0x57a   : > { %4301 = vmatprep.mubr.f32.mxu1 %v11142_v16  ;;  %5979 = vmatpush1.bf16.msra.mxu1 %v5978_v26  ;;  %v5987_v16 = vpack.c.bf16 %v3698_v55, %v3697_v50  ;;  %v11212_v26 = vld [vmem:[#allocation49_spill] sm:$0xff] }
 0x57b   : > { %5980 = vmatprep.subr.bf16.mxu1 %v10756_v39 }
 0x57d   : > { %4302 = vmatmul.mubr.f32.gmra.mrb[58].mxu1 %v8947_v44 }
 0x57e   : > { %4306 = vmatprep.mubr.f32.mxu1 %v9126_v54  ;;  %5982 = vmatpush1.bf16.msra.mxu1 %v5981_v60  ;;  %v11195_v54 = vld [vmem:[#allocation54_spill] sm:$0xff] }
 0x57f   : > { %5983 = vmatprep.subr.bf16.mxu1 %v10756_v39 }
 0x581   : > { %4307 = vmatmul.mubr.f32.gmra.mrb[60].mxu1 %v8951_v1 }
 0x582   : > { %4311 = vmatprep.mubr.f32.mxu1 %v11143_v6  ;;  %5985 = vmatpush1.bf16.msra.mxu1 %v5984_v49  ;;  %v11198_v6 = vld [vmem:[#allocation78_spill] sm:$0xff] }
 0x583   : > { %5986 = vmatprep.subr.bf16.mxu1 %v10756_v39  ;;  %v11199_v39 = vld [vmem:[#allocation79_spill] sm:$0xff] }
 0x585   : > { %4312 = vmatmul.mubr.f32.gmra.mrb[62].mxu1 %v11194_v14 }
 0x586   : > { %4316 = vmatprep.mubr.f32.mxu1 %v9165_v51  ;;  %5988 = vmatpush1.bf16.msra.mxu1 %v5987_v16  ;;  %v11200_v51 = vld [vmem:[#allocation80_spill] sm:$0xff] }
 0x587   : > { %6021 = vmatprep.subr.bf16.mxu1 %v11195_v54  ;;  %v11239_v16 = vld [vmem:[#allocation52_spill] sm:$0xff] }
 0x589   : > { %4317 = vmatmul.mubr.f32.gmra.mrb[64].mxu1 %v11196_v29 }
 0x58a   : > { %4321 = vmatprep.mubr.f32.mxu1 %v11144_v5  ;;  %v11202_v5 = vld [vmem:[#allocation82_spill] sm:$0xff] }
 0x58d   : > { %4322 = vmatmul.mubr.f32.gmra.mrb[66].mxu1 %v11197_v59 }
 0x58e   : > { %4326 = vmatprep.mubr.f32.mxu1 %v9221_v41  ;;  %v11203_v41 = vld [vmem:[#allocation73_spill] sm:$0xff] }
 0x591   : > { %4327 = vmatmul.mubr.f32.gmra.mrb[68].mxu1 %v11198_v6 }
 0x592   : > { %4331 = vmatprep.mubr.f32.mxu1 %v11146_v25  ;;  %v11204_v25 = vld [vmem:[#allocation74_spill] sm:$0xff] }
 0x595   : > { %4332 = vmatmul.mubr.f32.gmra.mrb[70].mxu1 %v11199_v39 }
 0x596   : > { %4336 = vmatprep.mubr.f32.mxu1 %v9267_v8  ;;  %v11205_v8 = vld [vmem:[#allocation86_spill] sm:$0xff] }
 0x599   : > { %4337 = vmatmul.mubr.f32.gmra.mrb[72].mxu1 %v11200_v51 }
 0x59a   : > { %4341 = vmatprep.mubr.f32.mxu1 %v9285_v17  ;;  %v11206_v17 = vld [vmem:[#allocation87_spill] sm:$0xff] }
 0x59d   : > { %4342 = vmatmul.mubr.f32.gmra.mrb[74].mxu1 %v11201_v37 }
 0x59e   : > { %4346 = vmatprep.mubr.f32.mxu1 %v9289_v47  ;;  %v11207_v47 = vld [vmem:[#allocation83_spill] sm:$0xff] }
 0x5a1   : > { %4347 = vmatmul.mubr.f32.gmra.mrb[76].mxu1 %v11202_v5 }
 0x5a2   : > { %4351 = vmatprep.mubr.f32.mxu1 %v9341_v7  ;;  %v11208_v7 = vld [vmem:[#allocation84_spill] sm:$0xff] }
 0x5a5   : > { %4352 = vmatmul.mubr.f32.gmra.mrb[78].mxu1 %v11203_v41 }
 0x5a6   : > { %4356 = vmatprep.mubr.f32.mxu1 %v9348_v20  ;;  %v11210_v20 = vld [vmem:[#allocation47_spill] sm:$0xff] }
 0x5a7   : > { %vm11211_vm12 = vnez %v11210_v20 }
 0x5a9   : > { %4357 = vmatmul.mubr.f32.gmra.mrb[80].mxu1 %v11204_v25 }
 0x5aa   : > { %4361 = vmatprep.mubr.f32.mxu1 %v9367_v56  ;;  %v11209_v56 = vld [vmem:[#allocation45_spill] sm:$0xff] }
 0x5ab   : > { %v9812_v13 = vsel %vm11211_vm12, %v9709_v33, %v11209_v56 }
 0x5ad   : > { %4362 = vmatmul.mubr.f32.gmra.mrb[82].mxu1 %v11205_v8 }
 0x5ae   : > { %4366 = vmatprep.mubr.f32.mxu1 %v9511_v46 }
 0x5b1   : > { %4367 = vmatmul.mubr.f32.gmra.mrb[84].mxu1 %v11206_v17 }
 0x5b2   : > { %4371 = vmatprep.mubr.f32.mxu1 %v9689_v40 }
 0x5b5   : > { %4372 = vmatmul.mubr.f32.gmra.mrb[86].mxu1 %v11207_v47 }
 0x5b6   : > { %4376 = vmatprep.mubr.f32.mxu1 %v9537_v15 }
 0x5b9   : > { %4377 = vmatmul.mubr.f32.gmra.mrb[88].mxu1 %v11208_v7 }
 0x5ba   : > { %4381 = vmatprep.mubr.f32.mxu1 %v9721_v53 }
 0x5bd   : > { %4382 = vmatmul.mubr.f32.gmra.mrb[90].mxu1 %v9498_v23 }
 0x5be   : > { %4386 = vmatprep.mubr.f32.mxu1 %v9681_v43 }
 0x5c1   : > { %4387 = vmatmul.mubr.f32.gmra.mrb[92].mxu1 %v9656_v38 }
 0x5c2   : > { %4391 = vmatprep.mubr.f32.mxu1 %v9812_v13 }
 0x5c5   : > { %4392 = vmatmul.mubr.f32.gmra.mrb[94].mxu1 %v11050_v35 }
 0x5c6   : > { %4461 = vmatprep.mubr.f32.mxu1 %v11185_v34  ;;  %v11215_v34 = vld [vmem:[#allocation56_spill] sm:$0xff] }
 0x5c9   : > { %4462 = vmatmul.mubr.f32.vlgmr.msra.gmra.mrb[32].mxu1 %v8875_v28  ;;  %v11214_v28 = vld [vmem:[#allocation60_spill] sm:$0xff] }
 0x5ca   : > { %4466 = vmatprep.mubr.f32.mxu1 %v11186_v32  ;;  %6029 = vmatpush3.bf16.msra.mxu1 %v11195_v54  ;;  %v11217_v32 = vld [vmem:[#allocation19_spill] sm:$0xff] }
 0x5cb   : > { %6022 = vmatprep.subr.bf16.mxu1 %v11212_v26 }
 0x5cd   : > { %4467 = vmatmul.mubr.f32.gmra.mrb[34].mxu1 %v8865_v27  ;;  %v11216_v27 = vld [vmem:[#allocation55_spill] sm:$0xff] }
 0x5ce   : > { %4471 = vmatprep.mubr.f32.mxu1 %v11187_v63  ;;  %6030 = vmatpush3.bf16.msra.mxu1 %v11212_v26  ;;  %v11219_v63 = vld [vmem:[#allocation14_spill] sm:$0xff] }
 0x5cf   : > { %6023 = vmatprep.subr.bf16.mxu1 %v11213_v52 }
 0x5d1   : > { %4472 = vmatmul.mubr.f32.gmra.mrb[36].mxu1 %v9153_v58  ;;  %v11218_v58 = vld [vmem:[#allocation61_spill] sm:$0xff] }
 0x5d2   : > { %4476 = vmatprep.mubr.f32.mxu1 %v11188_v10  ;;  %6031 = vmatpush3.bf16.msra.mxu1 %v11213_v52  ;;  %v11220_v10 = vld [vmem:[#allocation59_spill] sm:$0xff]  ;;  %v11243_v52 = vld [vmem:[#allocation50_spill] sm:$0xff] }
 0x5d3   : > { %6024 = vmatprep.subr.bf16.mxu1 %v11214_v28 }
 0x5d5   : > { %4477 = vmatmul.mubr.f32.gmra.mrb[38].mxu1 %v11215_v34 }
 0x5d6   : > { %4481 = vmatprep.mubr.f32.mxu1 %v11189_v22  ;;  %6032 = vmatpush3.bf16.msra.mxu1 %v11214_v28  ;;  %v11221_v22 = vld [vmem:[#allocation16_spill] sm:$0xff] }
 0x5d7   : > { %6025 = vmatprep.subr.bf16.mxu1 %v11216_v27 }
 0x5d9   : > { %4482 = vmatmul.mubr.f32.gmra.mrb[40].mxu1 %v11217_v32 }
 0x5da   : > { %4486 = vmatprep.mubr.f32.mxu1 %v11190_v0  ;;  %6033 = vmatpush3.bf16.msra.mxu1 %v11216_v27  ;;  %v11222_v0 = vld [vmem:[#allocation68_spill] sm:$0xff] }
 0x5db   : > { %6026 = vmatprep.subr.bf16.mxu1 %v11218_v58 }
 0x5dd   : > { %4487 = vmatmul.mubr.f32.gmra.mrb[42].mxu1 %v11219_v63 }
 0x5de   : > { %4491 = vmatprep.mubr.f32.mxu1 %v11191_v24  ;;  %6034 = vmatpush3.bf16.msra.mxu1 %v11218_v58  ;;  %v11223_v24 = vld [vmem:[#allocation76_spill] sm:$0xff]  ;;  %v11244_v58 = vld [vmem:[#allocation57_spill] sm:$0xff] }
 0x5df   : > { %6027 = vmatprep.subr.bf16.mxu1 %v11220_v10 }
 0x5e1   : > { %4492 = vmatmul.mubr.f32.gmra.mrb[44].mxu1 %v9336_v62  ;;  %v11231_v62 = vld [vmem:[#allocation20_spill] sm:$0xff] }
 0x5e2   : > { %4496 = vmatprep.mubr.f32.mxu1 %v11192_v30  ;;  %6035 = vmatpush3.bf16.msra.mxu1 %v11220_v10 }
 0x5e3   : > { %6028 = vmatprep.subr.bf16.mxu1 %v11221_v22 }
 0x5e5   : > { %4497 = vmatmul.mubr.f32.gmra.mrb[46].mxu1 %v11222_v0 }
 0x5e6   : > { %4501 = vmatprep.mubr.f32.mxu1 %v8835_v18  ;;  %6036 = vmatpush3.bf16.msra.mxu1 %v11221_v22  ;;  %v11224_v18 = vld [vmem:[#allocation36_spill] sm:$0xff] }
 0x5e9   : > { %4502 = vmatmul.mubr.f32.gmra.mrb[48].mxu1 %v9382_v57  ;;  %v11232_v57 = vld [vmem:[#allocation28_spill] sm:$0xff] }
 0x5ea   : > { %4506 = vmatprep.mubr.f32.mxu1 %v11193_v4  ;;  %v11237_v4 = vld [vmem:[#allocation40_spill] sm:$0xff] }
 0x5ed   : > { %4507 = vmatmul.mubr.f32.gmra.mrb[50].mxu1 %v11223_v24  ;;  %v11245_v24 = vld [vmem:[#allocation67_spill] sm:$0xff] }
 0x5ee   : > { %4511 = vmatprep.mubr.f32.mxu1 %v8870_v36  ;;  %v11226_v36 = vld [vmem:[#allocation42_spill] sm:$0xff] }
 0x5f1   : > { %4512 = vmatmul.mubr.f32.gmra.mrb[52].mxu1 %v9399_v48  ;;  %v11233_v48 = vld [vmem:[#allocation31_spill] sm:$0xff] }
 0x5f2   : > { %4516 = vmatprep.mubr.f32.mxu1 %v8947_v44  ;;  %v11227_v44 = vld [vmem:[#allocation88_spill] sm:$0xff] }
 0x5f5   : > { %4517 = vmatmul.mubr.f32.gmra.mrb[54].mxu1 %v9081_v3  ;;  %v11228_v3 = vld [vmem:[#allocation22_spill] sm:$0xff] }
 0x5f6   : > { %4521 = vmatprep.mubr.f32.mxu1 %v8951_v1  ;;  %v11225_v1 = vld [vmem:[#allocation85_spill] sm:$0xff] }
 0x5f9   : > { %4522 = vmatmul.mubr.f32.gmra.mrb[56].mxu1 %v9416_v19  ;;  %v11234_v19 = vld [vmem:[#allocation35_spill] sm:$0xff] }
 0x5fa   : > { %4526 = vmatprep.mubr.f32.mxu1 %v11194_v14 }
 0x5fd   : > { %4527 = vmatmul.mubr.f32.gmra.mrb[58].mxu1 %v9134_v21  ;;  %v11229_v21 = vld [vmem:[#allocation89_spill] sm:$0xff] }
 0x5fe   : > { %4531 = vmatprep.mubr.f32.mxu1 %v11196_v29 }
 0x601   : > { %4532 = vmatmul.mubr.f32.gmra.mrb[60].mxu1 %v9432_v12  ;;  %v11235_v12 = vld [vmem:[#allocation75_spill] sm:$0xff] }
 0x602   : > { %4536 = vmatprep.mubr.f32.mxu1 %v11197_v59 }
 0x605   : > { %4537 = vmatmul.mubr.f32.gmra.mrb[62].mxu1 %v9173_v11  ;;  %v11230_v11 = vld [vmem:[#allocation25_spill] sm:$0xff] }
 0x606   : > { %4541 = vmatprep.mubr.f32.mxu1 %v11198_v6  ;;  %v11240_v6 = vld [vmem:[#allocation63_spill] sm:$0xff] }
 0x609   : > { %4542 = vmatmul.mubr.f32.gmra.mrb[64].mxu1 %v11224_v18 }
 0x60a   : > { %4546 = vmatprep.mubr.f32.mxu1 %v11199_v39 }
 0x60d   : > { %4547 = vmatmul.mubr.f32.gmra.mrb[66].mxu1 %v11225_v1 }
 0x60e   : > { %4551 = vmatprep.mubr.f32.mxu1 %v11200_v51 }
 0x611   : > { %4552 = vmatmul.mubr.f32.gmra.mrb[68].mxu1 %v11226_v36 }
 0x612   : > { %4556 = vmatprep.mubr.f32.mxu1 %v11201_v37 }
 0x615   : > { %4557 = vmatmul.mubr.f32.gmra.mrb[70].mxu1 %v11227_v44 }
 0x616   : > { %4561 = vmatprep.mubr.f32.mxu1 %v11202_v5 }
 0x619   : > { %4562 = vmatmul.mubr.f32.gmra.mrb[72].mxu1 %v11228_v3  ;;  %v11246_v3 = vld [vmem:[#allocation48_spill] sm:$0xff] }
 0x61a   : > { %4566 = vmatprep.mubr.f32.mxu1 %v11203_v41  ;;  %v11241_v41 = vld [vmem:[#allocation58_spill] sm:$0xff] }
 0x61d   : > { %4567 = vmatmul.mubr.f32.gmra.mrb[74].mxu1 %v11229_v21 }
 0x61e   : > { %4571 = vmatprep.mubr.f32.mxu1 %v11204_v25 }
 0x621   : > { %4572 = vmatmul.mubr.f32.gmra.mrb[76].mxu1 %v11230_v11 }
 0x622   : > { %4576 = vmatprep.mubr.f32.mxu1 %v11205_v8 }
 0x625   : > { %4577 = vmatmul.mubr.f32.gmra.mrb[78].mxu1 %v11231_v62 }
 0x626   : > { %4581 = vmatprep.mubr.f32.mxu1 %v11206_v17 }
 0x629   : > { %4582 = vmatmul.mubr.f32.gmra.mrb[80].mxu1 %v11232_v57 }
 0x62a   : > { %4586 = vmatprep.mubr.f32.mxu1 %v11207_v47 }
 0x62d   : > { %4587 = vmatmul.mubr.f32.gmra.mrb[82].mxu1 %v11233_v48  ;;  %v11247_v48 = vld [vmem:[#allocation62_spill] sm:$0xff] }
 0x62e   : > { %4591 = vmatprep.mubr.f32.mxu1 %v11208_v7 }
 0x631   : > { %4592 = vmatmul.mubr.f32.gmra.mrb[84].mxu1 %v11234_v19 }
 0x632   : > { %4596 = vmatprep.mubr.f32.mxu1 %v9498_v23 }
 0x635   : > { %4597 = vmatmul.mubr.f32.gmra.mrb[86].mxu1 %v9552_v9 }
 0x636   : > { %4601 = vmatprep.mubr.f32.mxu1 %v9656_v38 }
 0x639   : > { %4602 = vmatmul.mubr.f32.gmra.mrb[88].mxu1 %v11235_v12 }
 0x63a   : > { %4606 = vmatprep.mubr.f32.mxu1 %v11050_v35 }
 0x63d   : > { %4607 = vmatmul.mubr.f32.gmra.mrb[90].mxu1 %v9709_v33 }
 0x63e   : > { %4611 = vmatprep.mubr.f32.mxu1 %v11208_v7  ;;  %v11242_v7 = vld [vmem:[#allocation51_spill] sm:$0xff] }
 0x641   : > { %4612 = vmatmul.mubr.f32.gmra.mrb[92].mxu1 %v11234_v19 }
 0x642   : > { %4616 = vmatprep.mubr.f32.mxu1 %v9498_v23  ;;  %v9906_v23 = vld [vmem:[%s10376_s6] ss:$0 sm:$0xff] }
 0x645   : > { %4617 = vmatmul.mubr.f32.gmra.mrb[94].mxu1 %v9552_v9  ;;  %v11236_v9 = vld [vmem:[#allocation46_spill] sm:$0xff] }
 0x646   : > { %5561 = vmatprep.mubr.f32.mxu1 %v9511_v46 }
 0x649   : > { %5562 = vmatmul.mubr.f32.vlgmr.msra.gmra.mrb[96].mxu1 %v9689_v40 }
 0x64a   : > { %5564 = vmatprep.mubr.f32.mxu1 %v9537_v15 }
 0x64d   : > { %5565 = vmatmul.mubr.f32.gmra.mrb[98].mxu1 %v9721_v53 }
 0x64e   : > { %5567 = vmatprep.mubr.f32.mxu1 %v9681_v43 }
 0x651   : > { %5568 = vmatmul.mubr.f32.gmra.mrb[100].mxu1 %v9812_v13 }
 0x652   : > { %5570 = vmatprep.mubr.f32.mxu1 %v9537_v15 }
 0x655   : > { %5571 = vmatmul.mubr.f32.gmra.mrb[102].mxu1 %v9721_v53 }
 0x69c   : > { %v4463_v46 = vpop.f32.mrb[32].mxu1 }
 0x69d   : > { %v6069_v35 = vadd.f32 %v9906_v23, %v4463_v46  ;;  %v4465_v38 = vpop.f32.mrb[33].mxu1 }
 0x69e   : > { %v11248_v38 = vld [vmem:[#allocation70_spill] sm:$0xff] }
 0x69f   : > { %v9910_v40 = vadd.f32 %v6069_v35, %v11236_v9 }
 0x6a0   : > { %v4468_v33 = vpop.f32.mrb[34].mxu1 }
 0x6a1   : > { %v6070_v43 = vadd.f32 %v9906_v23, %v4468_v33  ;;  %v4470_v30 = vpop.f32.mrb[35].mxu1 }
 0x6a3   : > { %v9914_v15 = vadd.f32 %v6070_v43, %v11237_v4  ;;  %v11249_v4 = vld [vmem:[#allocation66_spill] sm:$0xff] }
 0x6a4   : > { %v4473_v53 = vpop.f32.mrb[36].mxu1 }
 0x6a5   : > { %v6071_v45 = vadd.f32 %v9906_v23, %v4473_v53  ;;  %v4475_v60 = vpop.f32.mrb[37].mxu1 }
 0x6a7   : > { %v9918_v42 = vadd.f32 %v6071_v45, %v11238_v31 }
 0x6a8   : > { %v4478_v49 = vpop.f32.mrb[38].mxu1 }
 0x6a9   : > { %v6072_v50 = vadd.f32 %v9906_v23, %v4478_v49  ;;  %v4480_v55 = vpop.f32.mrb[39].mxu1  ;;  %v11250_v49 = vld [vmem:[#allocation72_spill] sm:$0xff] }
 0x6ab   : > { %v9922_v14 = vadd.f32 %v6072_v50, %v11239_v16 }
 0x6ac   : > { %v4483_v54 = vpop.f32.mrb[40].mxu1 }
 0x6ad   : > { %v6073_v29 = vadd.f32 %v9906_v23, %v4483_v54  ;;  %v4485_v59 = vpop.f32.mrb[41].mxu1 }
 0x6af   : > { %v9926_v39 = vadd.f32 %v6073_v29, %v11240_v6  ;;  %v11251_v29 = vld [vmem:[#allocation71_spill] sm:$0xff] }
 0x6b0   : > { %v4488_v51 = vpop.f32.mrb[42].mxu1 }
 0x6b1   : > { %v6074_v37 = vadd.f32 %v9906_v23, %v4488_v51  ;;  %v4490_v5 = vpop.f32.mrb[43].mxu1 }
 0x6b2   : > { %v11252_v5 = vld [vmem:[#allocation15_spill] sm:$0xff] }
 0x6b3   : > { %v9930_v25 = vadd.f32 %v6074_v37, %v11241_v41 }
 0x6b4   : > { %v4493_v8 = vpop.f32.mrb[44].mxu1 }
 0x6b5   : > { %v6075_v17 = vadd.f32 %v9906_v23, %v4493_v8  ;;  %v4495_v47 = vpop.f32.mrb[45].mxu1 }
 0x6b7   : > { %v9934_v56 = vadd.f32 %v6075_v17, %v11242_v7  ;;  %v11253_v7 = vld [vmem:[#allocation18_spill] sm:$0xff] }
 0x6b8   : > { %v4498_v20 = vpop.f32.mrb[46].mxu1 }
 0x6b9   : > { %v6076_v13 = vadd.f32 %v9906_v23, %v4498_v20  ;;  %v4500_v26 = vpop.f32.mrb[47].mxu1 }
 0x6bb   : > { %v9938_v28 = vadd.f32 %v6076_v13, %v11243_v52 }
 0x6bc   : > { %v4503_v34 = vpop.f32.mrb[48].mxu1 }
 0x6bd   : > { %v6077_v27 = vadd.f32 %v9906_v23, %v4503_v34  ;;  %v4505_v32 = vpop.f32.mrb[49].mxu1  ;;  %v11254_v34 = vld [vmem:[#allocation32_spill] sm:$0xff] }
 0x6bf   : > { %v9942_v63 = vadd.f32 %v6077_v27, %v11244_v58 }
 0x6c0   : > { %v4508_v10 = vpop.f32.mrb[50].mxu1 }
 0x6c1   : > { %v6078_v22 = vadd.f32 %v9906_v23, %v4508_v10  ;;  %v4510_v0 = vpop.f32.mrb[51].mxu1 }
 0x6c3   : > { %v9946_v18 = vadd.f32 %v6078_v22, %v11245_v24  ;;  %v11255_v22 = vld [vmem:[#allocation23_spill] sm:$0xff] }
 0x6c4   : > { %v4513_v1 = vpop.f32.mrb[52].mxu1 }
 0x6c5   : > { %v6079_v36 = vadd.f32 %v9906_v23, %v4513_v1  ;;  %v4515_v44 = vpop.f32.mrb[53].mxu1 }
 0x6c6   : > { %v11256_v44 = vld [vmem:[#allocation41_spill] sm:$0xff] }
 0x6c7   : > { %v9950_v21 = vadd.f32 %v6079_v36, %v11246_v3 }
 0x6c8   : > { %v4518_v11 = vpop.f32.mrb[54].mxu1 }
 0x6c9   : > { %v6080_v62 = vadd.f32 %v9906_v23, %v4518_v11  ;;  %v4520_v57 = vpop.f32.mrb[55].mxu1  ;;  %v4886_v11 = vmul.f32 %v9914_v15, %v9914_v15 }
 0x6cb   : > { %v9954_v19 = vadd.f32 %v6080_v62, %v11247_v48 }
 0x6cc   : > { %v4523_v12 = vpop.f32.mrb[56].mxu1 }
 0x6cd   : > { %v6081_v46 = vadd.f32 %v9906_v23, %v4523_v12  ;;  %v4525_v35 = vpop.f32.mrb[57].mxu1  ;;  %v4885_v12 = vmul.f32 %v9910_v40, %v9910_v40 }
 0x6ce   : > { %v4887_v35 = vmul.f32 %v9918_v42, %v9918_v42 }
 0x6cf   : > { %v9958_v9 = vadd.f32 %v6081_v46, %v11248_v38  ;;  %v4847_v46 = vadd.f32 %v9914_v15, %v9910_v40  ;;  %v11257_v38 = vld [vmem:[#allocation37_spill] sm:$0xff] }
 0x6d0   : > { %v4528_v33 = vpop.f32.mrb[58].mxu1 }
 0x6d1   : > { %v6082_v43 = vadd.f32 %v9906_v23, %v4528_v33  ;;  %v4530_v30 = vpop.f32.mrb[59].mxu1 }
 0x6d2   : > { %v4848_v30 = vadd.f32 %v4847_v46, %v9918_v42  ;;  %v4896_v46 = vmul.f32 %v9954_v19, %v9954_v19 }
 0x6d3   : > { %v9962_v53 = vadd.f32 %v6082_v43, %v11249_v4  ;;  %v4917_v43 = vadd.f32 %v4886_v11, %v4885_v12  ;;  %v4888_v4 = vmul.f32 %v9922_v14, %v9922_v14 }
 0x6d4   : > { %v4533_v45 = vpop.f32.mrb[60].mxu1 }
 0x6d5   : > { %v6083_v60 = vadd.f32 %v9906_v23, %v4533_v45  ;;  %v4535_v31 = vpop.f32.mrb[61].mxu1 }
 0x6d7   : > { %v9966_v50 = vadd.f32 %v6083_v60, %v11250_v49  ;;  %v4918_v49 = vadd.f32 %v4917_v43, %v4887_v35 }
 0x6d8   : > { %v4538_v55 = vpop.f32.mrb[62].mxu1 }
 0x6d9   : > { %v6084_v16 = vadd.f32 %v9906_v23, %v4538_v55  ;;  %v4540_v54 = vpop.f32.mrb[63].mxu1  ;;  %v4849_v55 = vadd.f32 %v4848_v30, %v9922_v14 }
 0x6db   : > { %v9970_v59 = vadd.f32 %v6084_v16, %v11251_v29  ;;  %v4889_v16 = vmul.f32 %v9926_v39, %v9926_v39  ;;  %v4919_v29 = vadd.f32 %v4918_v49, %v4888_v4  ;;  %v4897_v4 = vmul.f32 %v9958_v9, %v9958_v9 }
 0x6dc   : > { %v4543_v6 = vpop.f32.mrb[64].mxu1 }
 0x6dd   : > { %v6085_v51 = vadd.f32 %v9906_v23, %v4543_v6  ;;  %v4545_v37 = vpop.f32.mrb[65].mxu1  ;;  %v4850_v6 = vadd.f32 %v4849_v55, %v9926_v39 }
 0x6df   : > { %v9974_v41 = vadd.f32 %v6085_v51, %v11252_v5  ;;  %v4890_v51 = vmul.f32 %v9930_v25, %v9930_v25 }
 0x6e0   : > { %v4548_v8 = vpop.f32.mrb[66].mxu1 }
 0x6e1   : > { %v6086_v17 = vadd.f32 %v9906_v23, %v4548_v8  ;;  %v4550_v47 = vpop.f32.mrb[67].mxu1 }
 0x6e2   : > { %v4851_v47 = vadd.f32 %v4850_v6, %v9930_v25  ;;  %v4899_v6 = vmul.f32 %v9966_v50, %v9966_v50 }
 0x6e3   : > { %v9978_v20 = vadd.f32 %v6086_v17, %v11253_v7  ;;  %v4920_v17 = vadd.f32 %v4919_v29, %v4889_v16  ;;  %v4891_v7 = vmul.f32 %v9934_v56, %v9934_v56 }
 0x6e4   : > { %v4553_v13 = vpop.f32.mrb[68].mxu1 }
 0x6e5   : > { %v6087_v26 = vadd.f32 %v9906_v23, %v4553_v13  ;;  %v4555_v52 = vpop.f32.mrb[69].mxu1 }
 0x6e6   : > { %v4892_v52 = vmul.f32 %v9938_v28, %v9938_v28 }
 0x6e7   : > { %v9982_v27 = vadd.f32 %v6087_v26, %v11254_v34  ;;  %v4852_v26 = vadd.f32 %v4851_v47, %v9934_v56 }
 0x6e8   : > { %v4558_v32 = vpop.f32.mrb[70].mxu1 }
 0x6e9   : > { %v6088_v58 = vadd.f32 %v9906_v23, %v4558_v32  ;;  %v4560_v10 = vpop.f32.mrb[71].mxu1 }
 0x6ea   : > { %v4853_v10 = vadd.f32 %v4852_v26, %v9938_v28 }
 0x6eb   : > { %v9986_v0 = vadd.f32 %v6088_v58, %v11255_v22  ;;  %v4893_v22 = vmul.f32 %v9942_v63, %v9942_v63 }
 0x6ec   : > { %v4563_v24 = vpop.f32.mrb[72].mxu1 }
 0x6ed   : > { %v6089_v1 = vadd.f32 %v9906_v23, %v4563_v24  ;;  %v4565_v36 = vpop.f32.mrb[73].mxu1 }
 0x6ef   : > { %v9990_v3 = vadd.f32 %v6089_v1, %v11256_v44  ;;  %v4854_v1 = vadd.f32 %v4853_v10, %v9942_v63 }
 0x6f0   : > { %v4568_v62 = vpop.f32.mrb[74].mxu1 }
 0x6f1   : > { %v6090_v57 = vadd.f32 %v9906_v23, %v4568_v62  ;;  %v4570_v48 = vpop.f32.mrb[75].mxu1  ;;  %v4855_v62 = vadd.f32 %v4854_v1, %v9946_v18  ;;  %v4903_v1 = vmul.f32 %v9982_v27, %v9982_v27 }
 0x6f3   : > { %v10002_v33 = vadd.f32 %v6090_v57, %v11257_v38  ;;  %v4895_v57 = vmul.f32 %v9950_v21, %v9950_v21  ;;  %v4856_v12 = vadd.f32 %v4855_v62, %v9950_v21 }
 0x6f4   : > { %v4573_v45 = vpop.f32.mrb[76].mxu1 }
 0x6f5   : > { %v6091_v60 = vadd.f32 %v9906_v23, %v4573_v45  ;;  %v4575_v31 = vpop.f32.mrb[77].mxu1  ;;  %v4857_v30 = vadd.f32 %v4856_v12, %v9954_v19 }
 0x6f6   : > { %v4898_v31 = vmul.f32 %v9962_v53, %v9962_v53 }
 0x6f7   : > { %v10012_v54 = vadd.f32 %v6091_v60, %v9730_v2  ;;  %v4921_v2 = vadd.f32 %v4920_v17, %v4890_v51  ;;  %v4858_v60 = vadd.f32 %v4857_v30, %v9958_v9  ;;  %v4906_v30 = vmul.f32 %v10002_v33, %v10002_v33 }
 0x6f8   : > { %v4578_v37 = vpop.f32.mrb[78].mxu1 }
 0x6f9   : > { %v6092_v5 = vadd.f32 %v9906_v23, %v4578_v37  ;;  %v4580_v8 = vpop.f32.mrb[79].mxu1  ;;  %v4922_v58 = vadd.f32 %v4921_v2, %v4891_v7  ;;  %v4859_v29 = vadd.f32 %v4858_v60, %v9962_v53  ;;  %v4901_v2 = vmul.f32 %v9974_v41, %v9974_v41 }
 0x6fb   : > { %v10022_v13 = vadd.f32 %v6092_v5, %v9727_v61  ;;  %v4923_v24 = vadd.f32 %v4922_v58, %v4892_v52  ;;  %v4894_v61 = vmul.f32 %v9946_v18, %v9946_v18  ;;  %v4860_v37 = vadd.f32 %v4859_v29, %v9966_v50 }
 0x6fc   : > { %v10027_v34 = vpop.f32.mrb[80].mxu1  ;;  %v4900_v5 = vmul.f32 %v9970_v59, %v9970_v59 }
 0x6fd   : > { %v4585_v32 = vpop.f32.mrb[81].mxu1  ;;  %v4924_v11 = vadd.f32 %v4923_v24, %v4893_v22  ;;  %v4861_v7 = vadd.f32 %v4860_v37, %v9970_v59  ;;  %v6093_v37 = vadd.f32 %v9906_v23, %v10027_v34 }
 0x6fe   : > { %v4902_v32 = vmul.f32 %v9978_v20, %v9978_v20 }
 0x6ff   : > { %v4925_v48 = vadd.f32 %v4924_v11, %v4894_v61  ;;  %v4862_v52 = vadd.f32 %v4861_v7, %v9974_v41  ;;  %v4904_v11 = vmul.f32 %v9986_v0, %v9986_v0 }
 0x700   : > { %v4588_v36 = vpop.f32.mrb[82].mxu1 }
 0x701   : > { %v4590_v44 = vpop.f32.mrb[83].mxu1  ;;  %v4926_v43 = vadd.f32 %v4925_v48, %v4895_v57  ;;  %v4863_v24 = vadd.f32 %v4862_v52, %v9978_v20 }
 0x703   : > { %v4927_v45 = vadd.f32 %v4926_v43, %v4896_v46  ;;  %v4864_v44 = vadd.f32 %v4863_v24, %v9982_v27  ;;  %v4905_v46 = vmul.f32 %v9990_v3, %v9990_v3 }
 0x704   : > { %v4593_v35 = vpop.f32.mrb[84].mxu1 }
 0x705   : > { %v4595_v38 = vpop.f32.mrb[85].mxu1  ;;  %v4928_v16 = vadd.f32 %v4927_v45, %v4897_v4  ;;  %v4865_v12 = vadd.f32 %v4864_v44, %v9986_v0  ;;  %v6095_v52 = vadd.f32 %v9906_v23, %v4593_v35 }
 0x707   : > { %v4929_v51 = vadd.f32 %v4928_v16, %v4898_v31  ;;  %v4866_v43 = vadd.f32 %v4865_v12, %v9990_v3  ;;  %v6094_v16 = vadd.f32 %v9906_v23, %v4588_v36 }
 0x708   : > { %v4598_v49 = vpop.f32.mrb[86].mxu1 }
 0x709   : > { %v4600_v55 = vpop.f32.mrb[87].mxu1  ;;  %v4930_v47 = vadd.f32 %v4929_v51, %v4899_v6  ;;  %v4867_v31 = vadd.f32 %v4866_v43, %v10002_v33  ;;  %v4908_v51 = vmul.f32 %v10022_v13, %v10022_v13  ;;  %v6096_v36 = vadd.f32 %v9906_v23, %v4598_v49 }
 0x70a   : > { %v4907_v55 = vmul.f32 %v10012_v54, %v10012_v54 }
 0x70b   : > { %v4931_v26 = vadd.f32 %v4930_v47, %v4900_v5  ;;  %v4868_v6 = vadd.f32 %v4867_v31, %v10012_v54 }
 0x70c   : > { %v4603_v8 = vpop.f32.mrb[88].mxu1 }
 0x70d   : > { %v4605_v17 = vpop.f32.mrb[89].mxu1  ;;  %v4932_v22 = vadd.f32 %v4931_v26, %v4901_v2  ;;  %v4869_v26 = vadd.f32 %v4868_v6, %v10022_v13 }
 0x70f   : > { %v4933_v61 = vadd.f32 %v4932_v22, %v4902_v32 }
 0x710   : > { %v4608_v58 = vpop.f32.mrb[90].mxu1 }
 0x711   : > { %v4610_v10 = vpop.f32.mrb[91].mxu1  ;;  %v4934_v48 = vadd.f32 %v4933_v61, %v4903_v1  ;;  %v6098_v35 = vadd.f32 %v9906_v23, %v4608_v58 }
 0x713   : > { %v4935_v38 = vadd.f32 %v4934_v48, %v4904_v11 }
 0x714   : > { %v4613_v62 = vpop.f32.mrb[92].mxu1 }
 0x715   : > { %v4615_v57 = vpop.f32.mrb[93].mxu1  ;;  %v4936_v60 = vadd.f32 %v4935_v38, %v4905_v46 }
 0x716   : > { %v6097_v57 = vadd.f32 %v9906_v23, %v4603_v8 }
 0x717   : > { %v4937_v29 = vadd.f32 %v4936_v60, %v4906_v30 }
 0x718   : > { %v4618_v4 = vpop.f32.mrb[94].mxu1 }
 0x719   : > { %v4620_v45 = vpop.f32.mrb[95].mxu1  ;;  %v4938_v7 = vadd.f32 %v4937_v29, %v4907_v55  ;;  %v6100_v8 = vadd.f32 %v9906_v23, %v4618_v4  ;;  %v6099_v55 = vadd.f32 %v9906_v23, %v4613_v62 }
 0x71b   : > { %v4939_v22 = vadd.f32 %v4938_v7, %v4908_v51 }
 0x71c   : > { %v5563_v5 = vpop.f32.mrb[96].mxu1 }
 0x71d   : > { %v10080_v17 = vadd.f32 %v6094_v16, %v5563_v5  ;;  %v4808_v47 = vpop.f32.mrb[97].mxu1 }
 0x71e   : > { %v10082_v2 = vadd.f32 %v6093_v37, %v4808_v47 }
 0x71f   : > { %v4910_v61 = vmul.f32 %v10080_v17, %v10080_v17 }
 0x720   : > { %v4870_v32 = vadd.f32 %v4869_v26, %v10082_v2  ;;  %v4909_v10 = vmul.f32 %v10082_v2, %v10082_v2  ;;  %v5566_v34 = vpop.f32.mrb[98].mxu1 }
 0x721   : > { %v10090_v24 = vadd.f32 %v6096_v36, %v5566_v34  ;;  %v4818_v1 = vpop.f32.mrb[99].mxu1 }
 0x722   : > { %v4940_v44 = vadd.f32 %v4939_v22, %v4909_v10  ;;  %v10094_v11 = vadd.f32 %v6095_v52, %v4818_v1  ;;  %v4871_v49 = vadd.f32 %v4870_v32, %v10080_v17 }
 0x723   : > { %v4912_v45 = vmul.f32 %v10090_v24, %v10090_v24 }
 0x724   : > { %v4872_v48 = vadd.f32 %v4871_v49, %v10094_v11  ;;  %v4911_v12 = vmul.f32 %v10094_v11, %v10094_v11  ;;  %v4941_v46 = vadd.f32 %v4940_v44, %v4910_v61  ;;  %v5569_v38 = vpop.f32.mrb[100].mxu1 }
 0x725   : > { %v10102_v43 = vadd.f32 %v6098_v35, %v5569_v38  ;;  %v4828_v30 = vpop.f32.mrb[101].mxu1 }
 0x726   : > { %v4942_v60 = vadd.f32 %v4941_v46, %v4911_v12  ;;  %v10106_v31 = vadd.f32 %v6097_v57, %v4828_v30  ;;  %v4873_v58 = vadd.f32 %v4872_v48, %v10090_v24 }
 0x727   : > { %v4914_v47 = vmul.f32 %v10102_v43, %v10102_v43 }
 0x728   : > { %v4874_v16 = vadd.f32 %v4873_v58, %v10106_v31  ;;  %v4913_v29 = vmul.f32 %v10106_v31, %v10106_v31  ;;  %v4943_v6 = vadd.f32 %v4942_v60, %v4912_v45  ;;  %v5572_v51 = vpop.f32.mrb[102].mxu1 }
 0x729   : > { %v10114_v37 = vadd.f32 %v6100_v8, %v5572_v51  ;;  %v4838_v5 = vpop.f32.mrb[103].mxu1 }
 0x72a   : > { %v4944_v7 = vadd.f32 %v4943_v6, %v4913_v29  ;;  %v10118_v26 = vadd.f32 %v6099_v55, %v4838_v5  ;;  %v4875_v4 = vadd.f32 %v4874_v16, %v10102_v43  ;;  %v11259_v16 = vld [vmem:[#allocation64_spill] sm:$0xff] }
 0x72b   : > { %v4916_v52 = vmul.f32 %v10114_v37, %v10114_v37  ;;  %vm11260_vm3 = vnez %v11259_v16 }
 0x72c   : > { %v4876_v23 = vadd.f32 %v4875_v4, %v10118_v26  ;;  %v4915_v62 = vmul.f32 %v10118_v26, %v10118_v26  ;;  %v4945_v36 = vadd.f32 %v4944_v7, %v4914_v47 }
 0x72e   : > { %v4877_v32 = vadd.f32 %v4876_v23, %v10114_v37  ;;  %v4946_v10 = vadd.f32 %v4945_v36, %v4915_v62  ;;  %v11261_v62 = vld [vmem:[#allocation13_spill] sm:$0xff] }
 0x72f   : > { %v11262_v36 = vsub.s32 0, %v11261_v62 }
 0x730   : > { %v4878_v22 = vrot.slane %v4877_v32, 4  ;;  %v4947_v34 = vadd.f32 %v4946_v10, %v4916_v52 }
 0x732   : > { %v4879_v1 = vadd.f32 %v4878_v22, %v4877_v32  ;;  %v4948_v61 = vrot.slane %v4947_v34, 4 }
 0x734   : > { %v4880_v44 = vrot.slane %v4879_v1, 2  ;;  %v4949_v49 = vadd.f32 %v4948_v61, %v4947_v34 }
 0x736   : > { %v4881_v35 = vadd.f32 %v4880_v44, %v4879_v1  ;;  %v4950_v57 = vrot.slane %v4949_v49, 2 }
 0x738   : > { %v4882_v48 = vrot.slane %v4881_v35, 1  ;;  %v4951_v12 = vadd.f32 %v4950_v57, %v4949_v49 }
 0x73a   : > { %v4883_v46 = vadd.f32 %v4882_v48, %v4881_v35  ;;  %v4952_v38 = vrot.slane %v4951_v12, 1 }
 0x73c   : > { %v4953_v30 = vadd.f32 %v4952_v38, %v4951_v12  ;;  %v4884_v45 = vmul.f32 0.00390625, %v4883_v46 }
 0x73e   : > { %v4954_v60 = vmul.f32 0.00390625, %v4953_v30 }
 0x740   : > { %v4955_v58 = vsel %vm11258_vm15, %v4884_v45, %v4954_v60 }
 0x741   : > { %4956 = vrot.lane.b32.xlu1 %v4955_v58, %s6790_s18 }
 0x745   : > { %4958 = vrot.lane.b32.xlu1 %v4955_v58, %s6791_s16 }
 0x7b3   : > { %v4957_v8 = vpop.permute.xlu1 %4956 }
 0x7b7   : > { %v4959_v55 = vpop.permute.xlu1 %4958 }
 0x7b8   : > { %v4960_v29 = vsel %vm11260_vm3, %v4957_v8, %v4959_v55 }
 0x7b9   : > { %v4961_v6 = vadd.f32 %v4960_v29, %v4955_v58 }
 0x7bb   : > { %v4962_v51 = vmul.f32 0.5, %v4961_v6 }
 0x7bd   : > { %v4963_v5 = vmul.f32 %v4962_v51, %v4962_v51  ;;  %v10134_v52 = vrot.slane %v4962_v51, %v11262_v36 }
 0x7bf   : > { %v4965_v47 = vrot.slane %v4963_v5, 7  ;;  %v4973_v32 = vsub.f32 %v9910_v40, %v10134_v52  ;;  %v4974_v10 = vsub.f32 %v9914_v15, %v10134_v52  ;;  %v4975_v22 = vsub.f32 %v9918_v42, %v10134_v52 }
 0x7c0   : > { %v4976_v34 = vsub.f32 %v9922_v14, %v10134_v52  ;;  %v4977_v1 = vsub.f32 %v9926_v39, %v10134_v52  ;;  %v4978_v61 = vsub.f32 %v9930_v25, %v10134_v52  ;;  %v4979_v44 = vsub.f32 %v9934_v56, %v10134_v52 }
 0x7c1   : > { %v4967_v7 = vsub.f32 %v4962_v51, %v4965_v47  ;;  %v4980_v40 = vsub.f32 %v9938_v28, %v10134_v52  ;;  %v4981_v15 = vsub.f32 %v9942_v63, %v10134_v52  ;;  %v4982_v42 = vsub.f32 %v9946_v18, %v10134_v52  ;;  %v5308_v51 = vld [vmem:[%s10377_s7] ss:$0 sm:$0xff] }
 0x7c2   : > { %v4983_v14 = vsub.f32 %v9950_v21, %v10134_v52  ;;  %v4984_v39 = vsub.f32 %v9954_v19, %v10134_v52  ;;  %v4985_v25 = vsub.f32 %v9958_v9, %v10134_v52  ;;  %v4986_v56 = vsub.f32 %v9962_v53, %v10134_v52 }
 0x7c3   : > { %v4968_v4 = vmax.f32 %v4967_v7, 0.0  ;;  %v4987_v28 = vsub.f32 %v9966_v50, %v10134_v52  ;;  %v4988_v63 = vsub.f32 %v9970_v59, %v10134_v52  ;;  %v4989_v18 = vsub.f32 %v9974_v41, %v10134_v52 }
 0x7c4   : > { %v4990_v21 = vsub.f32 %v9978_v20, %v10134_v52  ;;  %v4991_v19 = vsub.f32 %v9982_v27, %v10134_v52  ;;  %v4992_v9 = vsub.f32 %v9986_v0, %v10134_v52  ;;  %v4993_v53 = vsub.f32 %v9990_v3, %v10134_v52 }
 0x7c5   : > { %v5005_v23 = vadd.f32 1e-05, %v4968_v4  ;;  %v4994_v50 = vsub.f32 %v10002_v33, %v10134_v52  ;;  %v4995_v59 = vsub.f32 %v10012_v54, %v10134_v52  ;;  %v4996_v41 = vsub.f32 %v10022_v13, %v10134_v52 }
 0x7c6   : > { %v4997_v20 = vsub.f32 %v10082_v2, %v10134_v52  ;;  %v11263_v27 = vsub.s32 1, %v11261_v62  ;;  %v4998_v0 = vsub.f32 %v10080_v17, %v10134_v52  ;;  %v4999_v3 = vsub.f32 %v10094_v11, %v10134_v52 }
 0x7c7   : > { %6561 = vrsqrt.f32 %v5005_v23  ;;  %v5000_v33 = vsub.f32 %v10090_v24, %v10134_v52  ;;  %v5001_v54 = vsub.f32 %v10106_v31, %v10134_v52  ;;  %v5002_v13 = vsub.f32 %v10102_v43, %v10134_v52 }
 0x7c8   : > { %v5003_v2 = vsub.f32 %v10118_v26, %v10134_v52  ;;  %v5004_v57 = vsub.f32 %v10114_v37, %v10134_v52 }
 0x7d1   : > { %v6562_v49 = vpop.eup %6561 }
 0x7d2   : > { %v5010_v35 = vrot.slane %v6562_v49, %v11263_v27 }
 0x7d4   : > { %v5011_v48 = vmul.f32 %v5010_v35, %v4973_v32  ;;  %v5012_v17 = vmul.f32 %v5010_v35, %v4974_v10  ;;  %v5013_v12 = vmul.f32 %v5010_v35, %v4975_v22  ;;  %v5014_v46 = vmul.f32 %v5010_v35, %v4976_v34 }
 0x7d5   : > { %v5015_v11 = vmul.f32 %v5010_v35, %v4977_v1  ;;  %v5016_v38 = vmul.f32 %v5010_v35, %v4978_v61  ;;  %v5017_v30 = vmul.f32 %v5010_v35, %v4979_v44  ;;  %v5018_v24 = vmul.f32 %v5010_v35, %v4980_v40 }
 0x7d6   : > { %v5019_v45 = vmul.f32 %v5010_v35, %v4981_v15  ;;  %v5020_v60 = vmul.f32 %v5010_v35, %v4982_v42  ;;  %v5021_v31 = vmul.f32 %v5010_v35, %v4983_v14  ;;  %v5022_v58 = vmul.f32 %v5010_v35, %v4984_v39 }
 0x7d7   : > { %v5023_v8 = vmul.f32 %v5010_v35, %v4985_v25  ;;  %v5024_v43 = vmul.f32 %v5010_v35, %v4986_v56  ;;  %v5025_v55 = vmul.f32 %v5010_v35, %v4987_v28  ;;  %v5026_v16 = vmul.f32 %v5010_v35, %v4988_v63 }
 0x7d8   : > { %v5027_v26 = vmul.f32 %v5010_v35, %v4989_v18  ;;  %v5028_v29 = vmul.f32 %v5010_v35, %v4990_v21  ;;  %v5029_v6 = vmul.f32 %v5010_v35, %v4991_v19  ;;  %v5030_v37 = vmul.f32 %v5010_v35, %v4992_v9 }
 0x7d9   : > { %v5031_v5 = vmul.f32 %v5010_v35, %v4993_v53  ;;  %v5032_v47 = vmul.f32 %v5010_v35, %v4994_v50  ;;  %v5033_v7 = vmul.f32 %v5010_v35, %v4995_v59  ;;  %v5034_v4 = vmul.f32 %v5010_v35, %v4996_v41  ;;  %v5309_v41 = vld [vmem:[%s10378_s8] ss:$0 sm:$0xff] }
 0x7da   : > { %v5035_v23 = vmul.f32 %v5010_v35, %v4997_v20  ;;  %v5036_v62 = vmul.f32 %v5010_v35, %v4998_v0  ;;  %v5037_v36 = vmul.f32 %v5010_v35, %v4999_v3  ;;  %v5038_v52 = vmul.f32 %v5010_v35, %v5000_v33 }
 0x7db   : > { %v5039_v32 = vmul.f32 %v5010_v35, %v5001_v54  ;;  %v5040_v10 = vmul.f32 %v5010_v35, %v5002_v13  ;;  %v5041_v22 = vmul.f32 %v5010_v35, %v5003_v2  ;;  %v5042_v34 = vmul.f32 %v5010_v35, %v5004_v57 }
 0x7dc   : > { %v5050_v1 = vmul.f32 %v5308_v51, %v5011_v48  ;;  %v5051_v61 = vmul.f32 %v5308_v51, %v5012_v17  ;;  %v5052_v44 = vmul.f32 %v5308_v51, %v5013_v12  ;;  %v5053_v40 = vmul.f32 %v5308_v51, %v5014_v46 }
 0x7dd   : > { %v5054_v15 = vmul.f32 %v5308_v51, %v5015_v11  ;;  %v5055_v42 = vmul.f32 %v5308_v51, %v5016_v38  ;;  %v5056_v14 = vmul.f32 %v5308_v51, %v5017_v30  ;;  %v5057_v39 = vmul.f32 %v5308_v51, %v5018_v24 }
 0x7de   : > { %v5058_v25 = vmul.f32 %v5308_v51, %v5019_v45  ;;  %v5059_v56 = vmul.f32 %v5308_v51, %v5020_v60  ;;  %v5060_v28 = vmul.f32 %v5308_v51, %v5021_v31  ;;  %v5061_v63 = vmul.f32 %v5308_v51, %v5022_v58 }
 0x7df   : > { %v5062_v18 = vmul.f32 %v5308_v51, %v5023_v8  ;;  %v5063_v21 = vmul.f32 %v5308_v51, %v5024_v43  ;;  %v5064_v19 = vmul.f32 %v5308_v51, %v5025_v55  ;;  %v5065_v9 = vmul.f32 %v5308_v51, %v5026_v16 }
 0x7e0   : > { %v5066_v53 = vmul.f32 %v5308_v51, %v5027_v26  ;;  %v5067_v49 = vmul.f32 %v5308_v51, %v5028_v29  ;;  %v5068_v50 = vmul.f32 %v5308_v51, %v5029_v6  ;;  %v5069_v59 = vmul.f32 %v5308_v51, %v5030_v37 }
 0x7e1   : > { %v5070_v20 = vmul.f32 %v5308_v51, %v5031_v5  ;;  %v5071_v27 = vmul.f32 %v5308_v51, %v5032_v47  ;;  %v5072_v35 = vmul.f32 %v5308_v51, %v5033_v7  ;;  %v5073_v0 = vmul.f32 %v5308_v51, %v5034_v4 }
 0x7e2   : > { %v5074_v3 = vmul.f32 %v5308_v51, %v5035_v23  ;;  %v5075_v33 = vmul.f32 %v5308_v51, %v5036_v62  ;;  %v5076_v54 = vmul.f32 %v5308_v51, %v5037_v36  ;;  %v5077_v13 = vmul.f32 %v5308_v51, %v5038_v52 }
 0x7e3   : > { %v5078_v2 = vmul.f32 %v5308_v51, %v5039_v32  ;;  %v5079_v57 = vmul.f32 %v5308_v51, %v5040_v10  ;;  %v5080_v48 = vmul.f32 %v5308_v51, %v5041_v22  ;;  %v5081_v17 = vmul.f32 %v5308_v51, %v5042_v34 }
 0x7e4   : > { %v5089_v12 = vadd.f32 %v5309_v41, %v5050_v1  ;;  %v5090_v46 = vadd.f32 %v5309_v41, %v5051_v61  ;;  %v5091_v11 = vadd.f32 %v5309_v41, %v5052_v44  ;;  %v5092_v38 = vadd.f32 %v5309_v41, %v5053_v40  ;;  %v6594_v61 = vld [vmem:[%s7032_s24] sm:$0xff]  ;;  %v6595_v40 = vld [vmem:[%s7032_s24 + $0x8] sm:$0xff] }
 0x7e5   : > { %v5093_v30 = vadd.f32 %v5309_v41, %v5054_v15  ;;  %v5094_v24 = vadd.f32 %v5309_v41, %v5055_v42  ;;  %v5095_v45 = vadd.f32 %v5309_v41, %v5056_v14  ;;  %v5096_v60 = vadd.f32 %v5309_v41, %v5057_v39  ;;  %v6596_v42 = vld [vmem:[%s7032_s24 + $0x10] sm:$0xff]  ;;  %v6597_v39 = vld [vmem:[%s7032_s24 + $0x18] sm:$0xff] }
 0x7e6   : > { %v5097_v31 = vadd.f32 %v5309_v41, %v5058_v25  ;;  %v5098_v58 = vadd.f32 %v5309_v41, %v5059_v56  ;;  %v5099_v8 = vadd.f32 %v5309_v41, %v5060_v28  ;;  %v5100_v43 = vadd.f32 %v5309_v41, %v5061_v63  ;;  %v6598_v56 = vld [vmem:[%s7032_s24 + $0x20] sm:$0xff]  ;;  %v6599_v63 = vld [vmem:[%s7032_s24 + $0x28] sm:$0xff] }
 0x7e7   : > { %v5101_v55 = vadd.f32 %v5309_v41, %v5062_v18  ;;  %v5102_v16 = vadd.f32 %v5309_v41, %v5063_v21  ;;  %v5103_v26 = vadd.f32 %v5309_v41, %v5064_v19  ;;  %v5104_v29 = vadd.f32 %v5309_v41, %v5065_v9  ;;  %v6600_v21 = vld [vmem:[%s7032_s24 + $0x30] sm:$0xff]  ;;  %v6601_v9 = vld [vmem:[%s7032_s24 + $0x38] sm:$0xff] }
 0x7e8   : > { %v5105_v6 = vadd.f32 %v5309_v41, %v5066_v53  ;;  %v5106_v37 = vadd.f32 %v5309_v41, %v5067_v49  ;;  %v5107_v51 = vadd.f32 %v5309_v41, %v5068_v50  ;;  %v10208_v5 = vadd.f32 %v5309_v41, %v5069_v59  ;;  %v6602_v49 = vld [vmem:[%s7032_s24 + $0x40] sm:$0xff]  ;;  %v6603_v59 = vld [vmem:[%s7032_s24 + $0x48] sm:$0xff] }
 0x7e9   : > { %v10210_v47 = vadd.f32 %v5309_v41, %v5070_v20  ;;  %v10212_v7 = vadd.f32 %v5309_v41, %v5071_v27  ;;  %v10214_v4 = vadd.f32 %v5309_v41, %v5072_v35  ;;  %v10216_v23 = vadd.f32 %v5309_v41, %v5073_v0  ;;  %v6604_v20 = vld [vmem:[%s7032_s24 + $0x50] sm:$0xff]  ;;  %v6605_v35 = vld [vmem:[%s7032_s24 + $0x58] sm:$0xff] }
 0x7ea   : > { %v10218_v62 = vadd.f32 %v5309_v41, %v5074_v3  ;;  %v10220_v36 = vadd.f32 %v5309_v41, %v5075_v33  ;;  %v10222_v52 = vadd.f32 %v5309_v41, %v5076_v54  ;;  %v10224_v32 = vadd.f32 %v5309_v41, %v5077_v13  ;;  %v6606_v3 = vld [vmem:[%s7032_s24 + $0x60] sm:$0xff]  ;;  %v6607_v54 = vld [vmem:[%s7032_s24 + $0x68] sm:$0xff] }
 0x7eb   : > { %v10226_v10 = vadd.f32 %v5309_v41, %v5078_v2  ;;  %v10228_v22 = vadd.f32 %v5309_v41, %v5079_v57  ;;  %v10230_v34 = vadd.f32 %v5309_v41, %v5080_v48  ;;  %v10232_v1 = vadd.f32 %v5309_v41, %v5081_v17  ;;  %v6608_v2 = vld [vmem:[%s7032_s24 + $0x70] sm:$0xff]  ;;  %v6609_v48 = vld [vmem:[%s7032_s24 + $0x78] sm:$0xff] }
 0x7ec   : > { %v5121_v44 = vadd.f32 %v6594_v61, %v5089_v12  ;;  %v5122_v15 = vadd.f32 %v6595_v40, %v5090_v46  ;;  %v5123_v14 = vadd.f32 %v6596_v42, %v5091_v11  ;;  %v5124_v25 = vadd.f32 %v6597_v39, %v5092_v38  ;;  %v6610_v12 = vld [vmem:[%s7032_s24 + $0x80] sm:$0xff]  ;;  %v6611_v11 = vld [vmem:[%s7032_s24 + $0x88] sm:$0xff]  ;;  %v6624_v61 = vld [vmem:[%s7032_s24 + $0xf0] sm:$0xff] }
 0x7ed   : > { %v5125_v28 = vadd.f32 %v6598_v56, %v5093_v30  ;;  %v5126_v18 = vadd.f32 %v6599_v63, %v5094_v24  ;;  %v5127_v19 = vadd.f32 %v6600_v21, %v5095_v45  ;;  %v5128_v53 = vadd.f32 %v6601_v9, %v5096_v60  ;;  %v6612_v30 = vld [vmem:[%s7032_s24 + $0x90] sm:$0xff]  ;;  %v6613_v45 = vld [vmem:[%s7032_s24 + $0x98] sm:$0xff] }
 0x7ee   : > { %v5129_v50 = vadd.f32 %v6602_v49, %v5097_v31  ;;  %v5130_v41 = vadd.f32 %v6603_v59, %v5098_v58  ;;  %v5131_v27 = vadd.f32 %v6604_v20, %v5099_v8  ;;  %v5132_v0 = vadd.f32 %v6605_v35, %v5100_v43  ;;  %5153 = vst [vmem:[%s10248_s25] sm:$0xff] %v5121_v44  ;;  %v6614_v31 = vld [vmem:[%s7032_s24 + $0xa0] sm:$0xff]  ;;  %v6615_v8 = vld [vmem:[%s7032_s24 + $0xa8] sm:$0xff]  ;;  %v6625_v40 = vld [vmem:[%s7032_s24 + $0xf8] sm:$0xff] }
 0x7ef   : > { %5154 = vst [vmem:[%s10248_s25 + $0x8] sm:$0xff] %v5122_v15  ;;  %5155 = vst [vmem:[%s10248_s25 + $0x10] sm:$0xff] %v5123_v14  ;;  %v5133_v33 = vadd.f32 %v6606_v3, %v5101_v55  ;;  %v5134_v13 = vadd.f32 %v6607_v54, %v5102_v16  ;;  %v5135_v57 = vadd.f32 %v6608_v2, %v5103_v26  ;;  %v6616_v55 = vld [vmem:[%s7032_s24 + $0xb0] sm:$0xff]  ;;  %v6617_v26 = vld [vmem:[%s7032_s24 + $0xb8] sm:$0xff] }
 0x7f0   : > { %5156 = vst [vmem:[%s10248_s25 + $0x18] sm:$0xff] %v5124_v25  ;;  %v5136_v17 = vadd.f32 %v6609_v48, %v5104_v29  ;;  %5157 = vst [vmem:[%s10248_s25 + $0x20] sm:$0xff] %v5125_v28  ;;  %v5137_v46 = vadd.f32 %v6610_v12, %v5105_v6  ;;  %v5138_v38 = vadd.f32 %v6611_v11, %v5106_v37  ;;  %v6618_v6 = vld [vmem:[%s7032_s24 + $0xc0] sm:$0xff] }
 0x7f1   : > { %5158 = vst [vmem:[%s10248_s25 + $0x28] sm:$0xff] %v5126_v18  ;;  %5159 = vst [vmem:[%s10248_s25 + $0x30] sm:$0xff] %v5127_v19  ;;  %v5139_v24 = vadd.f32 %v6612_v30, %v5107_v51  ;;  %v5140_v60 = vadd.f32 %v6613_v45, %v10208_v5  ;;  %v5141_v58 = vadd.f32 %v6614_v31, %v10210_v47  ;;  %v6619_v51 = vld [vmem:[%s7032_s24 + $0xc8] sm:$0xff]  ;;  %v6620_v47 = vld [vmem:[%s7032_s24 + $0xd0] sm:$0xff] }
 0x7f2   : > { %5160 = vst [vmem:[%s10248_s25 + $0x38] sm:$0xff] %v5128_v53  ;;  %5161 = vst [vmem:[%s10248_s25 + $0x40] sm:$0xff] %v5129_v50  ;;  %v5142_v43 = vadd.f32 %v6615_v8, %v10212_v7  ;;  %v5143_v16 = vadd.f32 %v6616_v55, %v10214_v4  ;;  %v5144_v29 = vadd.f32 %v6617_v26, %v10216_v23  ;;  %v6621_v4 = vld [vmem:[%s7032_s24 + $0xd8] sm:$0xff] }
 0x7f3   : > { %5162 = vst [vmem:[%s10248_s25 + $0x48] sm:$0xff] %v5130_v41  ;;  %5163 = vst [vmem:[%s10248_s25 + $0x50] sm:$0xff] %v5131_v27  ;;  %v5145_v37 = vadd.f32 %v6618_v6, %v10218_v62  ;;  %v5146_v5 = vadd.f32 %v6619_v51, %v10220_v36  ;;  %v5147_v7 = vadd.f32 %v6620_v47, %v10222_v52  ;;  %v6622_v62 = vld [vmem:[%s7032_s24 + $0xe0] sm:$0xff]  ;;  %v6623_v52 = vld [vmem:[%s7032_s24 + $0xe8] sm:$0xff]  ;;  %s6792_s24 = smov [#allocation8]  }
 0x7f4   : > { %5164 = vst [vmem:[%s10248_s25 + $0x58] sm:$0xff] %v5132_v0  ;;  %5165 = vst [vmem:[%s10248_s25 + $0x60] sm:$0xff] %v5133_v33  ;;  %v5148_v23 = vadd.f32 %v6621_v4, %v10224_v32  ;;  %v5149_v36 = vadd.f32 %v6622_v62, %v10226_v10  ;;  %v5150_v32 = vadd.f32 %v6623_v52, %v10228_v22  ;;  %s6716_s15 = sshll.u32 %s6792_s24, 4  ;;  %s6717_s15 = int_to_ptr.vmem [resolvable:$false] %s6716_s15 }
 0x7f5   : > { %5166 = vst [vmem:[%s10248_s25 + $0x68] sm:$0xff] %v5134_v13  ;;  %5167 = vst [vmem:[%s10248_s25 + $0x70] sm:$0xff] %v5135_v57  ;;  %v5151_v44 = vadd.f32 %v6624_v61, %v10230_v34  ;;  %v5152_v15 = vadd.f32 %v6625_v40, %v10232_v1  ;;  %s6718_s17 = scalar_lea.vmem %s6717_s15, 8192  ;;  %p6719_p7 = scmp.lt.s32.totalorder %s10306_s22, %s6717_s15 }
 0x7f6   : > { %5168 = vst [vmem:[%s10248_s25 + $0x78] sm:$0xff] %v5136_v17  ;;  %5169 = vst [vmem:[%s10248_s25 + $0x80] sm:$0xff] %v5137_v46  ;;  %p6720_p9 = scmp.lt.s32.totalorder %s6718_s17, %s6712_s29 }
 0x7f7   : > { %5170 = vst [vmem:[%s10248_s25 + $0x88] sm:$0xff] %v5138_v38  ;;  %5171 = vst [vmem:[%s10248_s25 + $0x90] sm:$0xff] %v5139_v24 }
 0x7f8   : > { %5172 = vst [vmem:[%s10248_s25 + $0x98] sm:$0xff] %v5140_v60  ;;  %5173 = vst [vmem:[%s10248_s25 + $0xa0] sm:$0xff] %v5141_v58  ;;  %p6721_p12 = por %p6720_p9, %p6719_p7 }
 0x7f9   : > { %5174 = vst [vmem:[%s10248_s25 + $0xa8] sm:$0xff] %v5142_v43  ;;  %5175 = vst [vmem:[%s10248_s25 + $0xb0] sm:$0xff] %v5143_v16 }
 0x7fa   : > { %5176 = vst [vmem:[%s10248_s25 + $0xb8] sm:$0xff] %v5144_v29  ;;  %5177 = vst [vmem:[%s10248_s25 + $0xc0] sm:$0xff] %v5145_v37  ;;  %p6722_p1 = pnand %p6721_p12, %p6715_p3 }
 0x7fb   : > { %5178 = vst [vmem:[%s10248_s25 + $0xc8] sm:$0xff] %v5146_v5  ;;  %5179 = vst [vmem:[%s10248_s25 + $0xd0] sm:$0xff] %v5147_v7 }
 0x7fc   : > { %5180 = vst [vmem:[%s10248_s25 + $0xd8] sm:$0xff] %v5148_v23  ;;  %5181 = vst [vmem:[%s10248_s25 + $0xe0] sm:$0xff] %v5149_v36 }
 0x7fd   : > { %5182 = vst [vmem:[%s10248_s25 + $0xe8] sm:$0xff] %v5150_v32  ;;  %5183 = vst [vmem:[%s10248_s25 + $0xf0] sm:$0xff] %v5151_v44 }
 0x7fe   : > { %5184 = vst [vmem:[%s10248_s25 + $0xf8] sm:$0xff] %v5152_v15 }
 0x7ff   : > { %6725 = shalt.err (!%p6722_p1)
}
 0x800   : > { %s6726_s18 = scalar_lea.hbm %s10302_s14, 4096  ;;  %s6730_s28 = scalar_lea.hbm %s10379_s9, 8192 }
 0x801   : > { %p6727_p13 = scmp.ne.s32.totalorder %s10302_s14, %s6726_s18  ;;  %p6731_p4 = scmp.lt.u32.totalorder %s10302_s14, %s10379_s9 }
 0x802   : > { %p6732_p5 = scmp.lt.u32.totalorder %s6730_s28, %s6726_s18  ;;  %p6734_p11 = scmp.lt.u32.totalorder %s6726_s18, %s10302_s14 }
 0x803   : > { %p6728_p6 = pnand %p6727_p13, %p11264_p0 }
 0x804   : > { %p6733_p8 = por %p6732_p5, %p6731_p4 }
 0x805   : > { %p6729_p10 = pneg %p6728_p6 }
 0x806   : > { %p6735_p2 = por %p6734_p11, %p6733_p8 }
 0x808   : > { %p6736_p3 = pnand %p6735_p2, %p6729_p10 }
 0x80a   : > { %6739 = shalt.err (!%p6736_p3)
}
 0x80b   : > { %s6793_s29 = smov 128   ;;  %s6794_s24 = smov 8  }
 0x80c   : > { %6495 = dma.vmem_to_hbm [thread:$0]  (%p11264_p0), %s10306_s22, 4096, %s10302_s14, %s5186_s13, %s6793_s29, %s6793_s29, %s6794_s24  }
 0x80d PF: > { %s11265_s15 = sld [smem:[#allocation12_spill]]  ;;  %s5214_s17 = sand.u32 1, %s6770_s30  }
 0x80e   : > { %p11267_p9 = scmp.ge.s32.totalorder %s6782_s12, 2  ;;  %s5215_s18 = scalar_lea.sflag [#allocation4], %s5214_s17 }
 0x813   : > { %p11266_p7 = scmp.ne.s32.totalorder %s11265_s15, 0 }
 0x815   : > { %p6509_p12 = pnand %p11267_p9, %p11266_p7 }
 0x817   : > { %6765 = dma.done.wait (!%p6509_p12), %s5215_s18, 4096  }
 0x818   : > { %6767 = vsyncadd (!%p6509_p12), %s5215_s18, 4294963200  ;;  %p23_p1 = scmp.ge.s32.totalorder %s6961_s20, 4   ;;  %s11268_s30 = smov %s6774_s10 }
 0x819   : > { %s11269_s10 = smov %s6778_s11  ;;  %s11270_s11 = smov %s6977_s27 }
 0x81a   : > { %s11271_s12 = smov %s6961_s20  ;;  %25 = sbr.rel (!%p23_p1) target bundleno = 6 (0x6), region = 109 }
 0x821   :  { %5220 = vsyncpa [#allocation3], 1 }
 0x822   :  { %5222 = vsyncpa [#allocation3 + $0x1], 1 }
 0x823   :  { %5223 = vsyncpa [#allocation6], 1 }
 0x824   :  { %5224 = vsyncpa [#allocation4], 1 }
 0x825   :  { %5226 = vsyncpa [#allocation4 + $0x1], 1 }

</bundles_post_ra>
